<compile_context>
chip_gen: v7x
topology: tpu7x:2x2x1
jax: 0.10.0
libtpu: 0.0.40
codegen_flags: <defaults>
</compile_context>

<pallas_src>
import math
import functools

import jax
import jax.numpy as jnp
from jax.experimental import pallas as pl
from jax.experimental.pallas import tpu as pltpu

# ----------------------------- model config ---------------------------------
D_MODEL = 32
N_HEADS = 4
D_K = D_MODEL // N_HEADS
D_FF = 64
N_LAYERS = 2
SRC_VOCAB = 16
TGT_VOCAB = 16
LN_EPS = 1e-6
MAX_LEN = 64

_SCALE = 1.0 / math.sqrt(D_K)
_SQRT_D = math.sqrt(D_MODEL)
_NEG_INF = -1e9

ENC_STACKED = ("ln1_a", "ln1_b", "wqkv", "bqkv", "wo", "bo",
               "ln2_a", "ln2_b", "w1", "b1", "w2", "b2")
DEC_STACKED = ("ln1_a", "ln1_b", "wqkv", "bqkv", "wo1", "bo1",
               "ln2_a", "ln2_b", "wq", "bq", "wkv", "bkv", "wo2", "bo2",
               "ln3_a", "ln3_b", "w1", "b1", "w2", "b2")


# --------------------------- in-kernel helpers -------------------------------
def _layer_norm(x, a, b):
    # Annotated-Transformer LayerNorm: a * (x - mean) / (std + eps) + b,
    # with torch's unbiased std (ddof=1).
    mean = jnp.mean(x, axis=-1, keepdims=True)
    cent = x - mean
    var = jnp.sum(cent * cent, axis=-1, keepdims=True) * (1.0 / (D_MODEL - 1))
    return a * (cent / (jnp.sqrt(var) + LN_EPS)) + b


def _project(x, w_ref, b_ref):
    # x: (M, K) f32; w_ref block: (1, K, N) bf16; b_ref block: (1, 1, N) f32.
    return jnp.dot(x.astype(jnp.bfloat16), w_ref[0],
                   preferred_element_type=jnp.float32) + b_ref[0]


def _mh_attention(q, k, v, mask):
    # q: (Lq, D), k/v: (Lk, D) with heads packed along lanes;
    # mask broadcastable to (Lq, Lk), int32 (0 = masked out).
    heads = []
    for h in range(N_HEADS):
        sl = slice(h * D_K, (h + 1) * D_K)
        qh, kh, vh = q[:, sl], k[:, sl], v[:, sl]
        s = jnp.einsum("qd,kd->qk", qh, kh,
                       preferred_element_type=jnp.float32) * _SCALE
        s = jnp.where(mask == 0, _NEG_INF, s)
        m = jnp.max(s, axis=-1, keepdims=True)
        p = jnp.exp(s - m)
        p = p * pl.reciprocal(jnp.sum(p, axis=-1, keepdims=True), approx=True)
        heads.append(jnp.dot(p, vh, preferred_element_type=jnp.float32))
    return jnp.concatenate(heads, axis=-1)  # (Lq, D)


def _embed(tok_ref, emb_ref, pe_ref, seq, vocab):
    # Embeddings(x) * sqrt(d_model) + PositionalEncoding (dropout = identity).
    tok = tok_ref[0]                                               # (seq, 1)
    pos = jax.lax.broadcasted_iota(jnp.int32, (seq, vocab), 1)
    onehot = jnp.where(pos == tok, 1.0, 0.0)                       # (seq, V)
    x = jnp.dot(onehot, emb_ref[...], preferred_element_type=jnp.float32)
    return x * _SQRT_D + pe_ref[...]


# ------------------------------ fused kernels --------------------------------
def _encoder_kernel(tok_ref, emb_ref, pe_ref, mask_ref,
                    ln1a_ref, ln1b_ref, wqkv_ref, bqkv_ref, wo_ref, bo_ref,
                    ln2a_ref, ln2b_ref, w1_ref, b1_ref, w2_ref, b2_ref,
                    lnfa_ref, lnfb_ref,
                    out_ref, x_scr, *, seq, vocab):
    layer = pl.program_id(1)

    @pl.when(layer == 0)
    def _():
        x_scr[...] = _embed(tok_ref, emb_ref, pe_ref, seq, vocab)

    x = x_scr[...]
    mask = mask_ref[0]                                             # (1, LS)

    # -- self-attention sublayer (pre-norm + residual) --
    nx = _layer_norm(x, ln1a_ref[0], ln1b_ref[0])
    qkv = _project(nx, wqkv_ref, bqkv_ref)                         # (LS, 3D)
    q = qkv[:, 0 * D_MODEL:1 * D_MODEL]
    k = qkv[:, 1 * D_MODEL:2 * D_MODEL]
    v = qkv[:, 2 * D_MODEL:3 * D_MODEL]
    x = x + _project(_mh_attention(q, k, v, mask), wo_ref, bo_ref)

    # -- position-wise feed-forward sublayer --
    nx = _layer_norm(x, ln2a_ref[0], ln2b_ref[0])
    h = jnp.maximum(_project(nx, w1_ref, b1_ref), 0.0)
    x = x + _project(h, w2_ref, b2_ref)

    x_scr[...] = x

    @pl.when(layer == N_LAYERS - 1)
    def _():
        out_ref[0] = _layer_norm(x, lnfa_ref[...], lnfb_ref[...])


def _decoder_kernel(tok_ref, emb_ref, pe_ref, mem_ref, smask_ref, tmask_ref,
                    ln1a_ref, ln1b_ref, wqkv_ref, bqkv_ref, wo1_ref, bo1_ref,
                    ln2a_ref, ln2b_ref, wq_ref, bq_ref, wkv_ref, bkv_ref,
                    wo2_ref, bo2_ref, ln3a_ref, ln3b_ref,
                    w1_ref, b1_ref, w2_ref, b2_ref,
                    lnfa_ref, lnfb_ref,
                    out_ref, x_scr, *, seq, vocab):
    layer = pl.program_id(1)

    @pl.when(layer == 0)
    def _():
        x_scr[...] = _embed(tok_ref, emb_ref, pe_ref, seq, vocab)

    x = x_scr[...]
    smask = smask_ref[0]                                           # (1, LS)
    tmask = tmask_ref[0]                                           # (LT, LT)
    memory = mem_ref[0]                                            # (LS, D)

    # -- masked self-attention sublayer --
    nx = _layer_norm(x, ln1a_ref[0], ln1b_ref[0])
    qkv = _project(nx, wqkv_ref, bqkv_ref)
    q = qkv[:, 0 * D_MODEL:1 * D_MODEL]
    k = qkv[:, 1 * D_MODEL:2 * D_MODEL]
    v = qkv[:, 2 * D_MODEL:3 * D_MODEL]
    x = x + _project(_mh_attention(q, k, v, tmask), wo1_ref, bo1_ref)

    # -- cross-attention over encoder memory --
    nx = _layer_norm(x, ln2a_ref[0], ln2b_ref[0])
    q = _project(nx, wq_ref, bq_ref)
    kv = _project(memory, wkv_ref, bkv_ref)                        # (LS, 2D)
    k = kv[:, :D_MODEL]
    v = kv[:, D_MODEL:]
    x = x + _project(_mh_attention(q, k, v, smask), wo2_ref, bo2_ref)

    # -- position-wise feed-forward sublayer --
    nx = _layer_norm(x, ln3a_ref[0], ln3b_ref[0])
    h = jnp.maximum(_project(nx, w1_ref, b1_ref), 0.0)
    x = x + _project(h, w2_ref, b2_ref)

    x_scr[...] = x

    @pl.when(layer == N_LAYERS - 1)
    def _():
        out_ref[0] = _layer_norm(x, lnfa_ref[...], lnfb_ref[...])


# ------------------------------ BlockSpec helpers ----------------------------
def _spec_stacked(a):
    # Weight stacked along layers: select block `layer` on the leading axis.
    return pl.BlockSpec((1,) + a.shape[1:], lambda b, layer: (layer, 0, 0))


def _spec_batch(a):
    # Per-batch data: select block `b` on the leading axis.
    return pl.BlockSpec((1,) + a.shape[1:],
                        lambda b, layer: (b,) + (0,) * (a.ndim - 1))


def _spec_full(a):
    # Replicated whole-array block (weights shared across the grid).
    return pl.BlockSpec(a.shape, lambda b, layer: (0,) * a.ndim)


# ------------------------------ wrappers --------------------------------------
def encode(params, src, src_mask):
    bsz, src_len = src.shape
    enc = params["enc"]
    data = [src.reshape(bsz, src_len, 1).astype(jnp.int32),
            params["src_emb"],
            params["pe"][:src_len],
            src_mask.astype(jnp.int32)]
    stacked = [enc[k] for k in ENC_STACKED]
    final_ln = [params["enc_ln_a"], params["enc_ln_b"]]
    in_specs = ([_spec_batch(data[0]), _spec_full(data[1]),
                 _spec_full(data[2]), _spec_batch(data[3])]
                + [_spec_stacked(a) for a in stacked]
                + [_spec_full(a) for a in final_ln])
    return pl.pallas_call(
        functools.partial(_encoder_kernel, seq=src_len,
                          vocab=params["src_emb"].shape[0]),
        out_shape=jax.ShapeDtypeStruct((bsz, src_len, D_MODEL), jnp.float32),
        grid_spec=pltpu.PrefetchScalarGridSpec(
            num_scalar_prefetch=0,
            grid=(bsz, N_LAYERS),
            in_specs=in_specs,
            out_specs=pl.BlockSpec((1, src_len, D_MODEL),
                                   lambda b, layer: (b, 0, 0)),
            scratch_shapes=[pltpu.VMEM((src_len, D_MODEL), jnp.float32)]),
        compiler_params=pltpu.CompilerParams(
            dimension_semantics=("parallel", "arbitrary")),
    )(*data, *stacked, *final_ln)


def decode(params, memory, src_mask, tgt, tgt_mask):
    bsz, tgt_len = tgt.shape
    dec = params["dec"]
    data = [tgt.reshape(bsz, tgt_len, 1).astype(jnp.int32),
            params["tgt_emb"],
            params["pe"][:tgt_len],
            memory,
            src_mask.astype(jnp.int32),
            tgt_mask.astype(jnp.int32)]
    stacked = [dec[k] for k in DEC_STACKED]
    final_ln = [params["dec_ln_a"], params["dec_ln_b"]]
    in_specs = ([_spec_batch(data[0]), _spec_full(data[1]),
                 _spec_full(data[2]), _spec_batch(data[3]),
                 _spec_batch(data[4]), _spec_batch(data[5])]
                + [_spec_stacked(a) for a in stacked]
                + [_spec_full(a) for a in final_ln])
    return pl.pallas_call(
        functools.partial(_decoder_kernel, seq=tgt_len,
                          vocab=params["tgt_emb"].shape[0]),
        out_shape=jax.ShapeDtypeStruct((bsz, tgt_len, D_MODEL), jnp.float32),
        grid_spec=pltpu.PrefetchScalarGridSpec(
            num_scalar_prefetch=0,
            grid=(bsz, N_LAYERS),
            in_specs=in_specs,
            out_specs=pl.BlockSpec((1, tgt_len, D_MODEL),
                                   lambda b, layer: (b, 0, 0)),
            scratch_shapes=[pltpu.VMEM((tgt_len, D_MODEL), jnp.float32)]),
        compiler_params=pltpu.CompilerParams(
            dimension_semantics=("parallel", "arbitrary")),
    )(*data, *stacked, *final_ln)


def encoder_decoder_forward(params, src, tgt, src_mask, tgt_mask):
    memory = encode(params, src, src_mask)
    return decode(params, memory, src_mask, tgt, tgt_mask)


# ------------------------------- init ----------------------------------------
def _positional_encoding(max_len, d_model):
    pos = jnp.arange(max_len, dtype=jnp.float32)[:, None]
    div = jnp.exp(jnp.arange(0, d_model, 2, dtype=jnp.float32)
                  * (-math.log(10000.0) / d_model))
    pe = jnp.zeros((max_len, d_model), jnp.float32)
    pe = pe.at[:, 0::2].set(jnp.sin(pos * div))
    pe = pe.at[:, 1::2].set(jnp.cos(pos * div))
    return pe


def init_params(key):
    keys = iter(jax.random.split(key, 512))

    def mat(shape, scale=0.05):
        return scale * jax.random.normal(next(keys), shape, jnp.float32)

    def stack(make):
        return jnp.stack([make() for _ in range(N_LAYERS)], axis=0)

    def ones_ln():
        return jnp.ones((N_LAYERS, 1, D_MODEL), jnp.float32)

    def zeros_ln():
        return jnp.zeros((N_LAYERS, 1, D_MODEL), jnp.float32)

    def fused_qkv():     # wq | wk | wv concatenated along the output axis
        return jnp.concatenate([mat((D_MODEL, D_MODEL)) for _ in range(3)], axis=1)

    def fused_kv():      # wk | wv concatenated along the output axis
        return jnp.concatenate([mat((D_MODEL, D_MODEL)) for _ in range(2)], axis=1)

    bf16 = jnp.bfloat16
    enc = {
        "ln1_a": ones_ln(), "ln1_b": zeros_ln(),
        "wqkv": stack(fused_qkv).astype(bf16),
        "bqkv": stack(lambda: mat((1, 3 * D_MODEL))),
        "wo": stack(lambda: mat((D_MODEL, D_MODEL))).astype(bf16),
        "bo": stack(lambda: mat((1, D_MODEL))),
        "ln2_a": ones_ln(), "ln2_b": zeros_ln(),
        "w1": stack(lambda: mat((D_MODEL, D_FF))).astype(bf16),
        "b1": stack(lambda: mat((1, D_FF))),
        "w2": stack(lambda: mat((D_FF, D_MODEL))).astype(bf16),
        "b2": stack(lambda: mat((1, D_MODEL))),
    }
    dec = {
        "ln1_a": ones_ln(), "ln1_b": zeros_ln(),
        "wqkv": stack(fused_qkv).astype(bf16),
        "bqkv": stack(lambda: mat((1, 3 * D_MODEL))),
        "wo1": stack(lambda: mat((D_MODEL, D_MODEL))).astype(bf16),
        "bo1": stack(lambda: mat((1, D_MODEL))),
        "ln2_a": ones_ln(), "ln2_b": zeros_ln(),
        "wq": stack(lambda: mat((D_MODEL, D_MODEL))).astype(bf16),
        "bq": stack(lambda: mat((1, D_MODEL))),
        "wkv": stack(fused_kv).astype(bf16),
        "bkv": stack(lambda: mat((1, 2 * D_MODEL))),
        "wo2": stack(lambda: mat((D_MODEL, D_MODEL))).astype(bf16),
        "bo2": stack(lambda: mat((1, D_MODEL))),
        "ln3_a": ones_ln(), "ln3_b": zeros_ln(),
        "w1": stack(lambda: mat((D_MODEL, D_FF))).astype(bf16),
        "b1": stack(lambda: mat((1, D_FF))),
        "w2": stack(lambda: mat((D_FF, D_MODEL))).astype(bf16),
        "b2": stack(lambda: mat((1, D_MODEL))),
    }
    return {
        "src_emb": mat((SRC_VOCAB, D_MODEL), scale=0.1),
        "tgt_emb": mat((TGT_VOCAB, D_MODEL), scale=0.1),
        "pe": _positional_encoding(MAX_LEN, D_MODEL),
        "enc": enc, "dec": dec,
        "enc_ln_a": jnp.ones((1, D_MODEL), jnp.float32),
        "enc_ln_b": jnp.zeros((1, D_MODEL), jnp.float32),
        "dec_ln_a": jnp.ones((1, D_MODEL), jnp.float32),
        "dec_ln_b": jnp.zeros((1, D_MODEL), jnp.float32),
    }


# ------------------------------- main -----------------------------------------
if __name__ == "__main__":
    key = jax.random.PRNGKey(0)
    k_param, k_src, k_tgt = jax.random.split(key, 3)

    B, LS, LT = 2, 8, 8
    params = init_params(k_param)

    src = jax.random.randint(k_src, (B, LS), 0, SRC_VOCAB, dtype=jnp.int32)
    tgt = jax.random.randint(k_tgt, (B, LT), 0, TGT_VOCAB, dtype=jnp.int32)

    # src_mask: (B, 1, LS) all valid; tgt_mask: (B, LT, LT) causal mask.
    src_mask = jnp.ones((B, 1, LS), jnp.int32)
    tgt_mask = jnp.tril(jnp.ones((LT, LT), jnp.int32))[None, :, :].repeat(B, axis=0)

    forward = jax.jit(encoder_decoder_forward)
    out = jax.block_until_ready(forward(params, src, tgt, src_mask, tgt_mask))

    assert out.shape == (B, LT, D_MODEL)
    assert bool(jnp.all(jnp.isfinite(out)))
    print("KERNEL_OK")
</pallas_src>

<mosaic_0001>
module attributes {stable_mosaic.version = 11 : i64} {
  func.func @_encoder_kernel(%arg0: i32, %arg1: i32, %arg2: memref<1x8x1xi32, #tpu.memory_space<vmem>>, %arg3: memref<16x32xf32, #tpu.memory_space<vmem>>, %arg4: memref<8x32xf32, #tpu.memory_space<vmem>>, %arg5: memref<1x1x8xi32, #tpu.memory_space<vmem>>, %arg6: memref<1x1x32xf32, #tpu.memory_space<vmem>>, %arg7: memref<1x1x32xf32, #tpu.memory_space<vmem>>, %arg8: memref<1x32x96xbf16, #tpu.memory_space<vmem>>, %arg9: memref<1x1x96xf32, #tpu.memory_space<vmem>>, %arg10: memref<1x32x32xbf16, #tpu.memory_space<vmem>>, %arg11: memref<1x1x32xf32, #tpu.memory_space<vmem>>, %arg12: memref<1x1x32xf32, #tpu.memory_space<vmem>>, %arg13: memref<1x1x32xf32, #tpu.memory_space<vmem>>, %arg14: memref<1x32x64xbf16, #tpu.memory_space<vmem>>, %arg15: memref<1x1x64xf32, #tpu.memory_space<vmem>>, %arg16: memref<1x64x32xbf16, #tpu.memory_space<vmem>>, %arg17: memref<1x1x32xf32, #tpu.memory_space<vmem>>, %arg18: memref<1x32xf32, #tpu.memory_space<vmem>>, %arg19: memref<1x32xf32, #tpu.memory_space<vmem>>, %arg20: memref<1x8x32xf32, #tpu.memory_space<vmem>>, %arg21: memref<8x32xf32, #tpu.memory_space<vmem>>) attributes {dimension_semantics = [#tpu.dimension_semantics<parallel>, #tpu.dimension_semantics<arbitrary>], iteration_bounds = array<i64: 2, 2>, scalar_prefetch = 0 : i64, scratch_operands = 1 : i64, tpu.core_type = #tpu.core_type<tc>, window_params = [{transform_indices = @transform_0, window_bounds = array<i64: 1, 8, 1>}, {pipeline_mode = #tpu.pipeline_mode<synchronous>, transform_indices = @transform_1, window_bounds = array<i64: 16, 32>}, {pipeline_mode = #tpu.pipeline_mode<synchronous>, transform_indices = @transform_2, window_bounds = array<i64: 8, 32>}, {transform_indices = @transform_3, window_bounds = array<i64: 1, 1, 8>}, {transform_indices = @transform_4, window_bounds = array<i64: 1, 1, 32>}, {transform_indices = @transform_5, window_bounds = array<i64: 1, 1, 32>}, {transform_indices = @transform_6, window_bounds = array<i64: 1, 32, 96>}, {transform_indices = @transform_7, window_bounds = array<i64: 1, 1, 96>}, {transform_indices = @transform_8, window_bounds = array<i64: 1, 32, 32>}, {transform_indices = @transform_9, window_bounds = array<i64: 1, 1, 32>}, {transform_indices = @transform_10, window_bounds = array<i64: 1, 1, 32>}, {transform_indices = @transform_11, window_bounds = array<i64: 1, 1, 32>}, {transform_indices = @transform_12, window_bounds = array<i64: 1, 32, 64>}, {transform_indices = @transform_13, window_bounds = array<i64: 1, 1, 64>}, {transform_indices = @transform_14, window_bounds = array<i64: 1, 64, 32>}, {transform_indices = @transform_15, window_bounds = array<i64: 1, 1, 32>}, {pipeline_mode = #tpu.pipeline_mode<synchronous>, transform_indices = @transform_16, window_bounds = array<i64: 1, 32>}, {pipeline_mode = #tpu.pipeline_mode<synchronous>, transform_indices = @transform_17, window_bounds = array<i64: 1, 32>}, {transform_indices = @transform_18, window_bounds = array<i64: 1, 8, 32>}]} {
    %c0_i32 = arith.constant 0 : i32
    %0 = arith.cmpi eq, %arg1, %c0_i32 : i32
    %1 = arith.extui %0 : i1 to i32
    %c0_i32_0 = arith.constant 0 : i32
    %2 = arith.cmpi ne, %1, %c0_i32_0 : i32
    scf.if %2 {
      %c0_86 = arith.constant 0 : index
      %c0_87 = arith.constant 0 : index
      %c0_88 = arith.constant 0 : index
      %190 = vector.load %arg2[%c0_86, %c0_87, %c0_88] : memref<1x8x1xi32, #tpu.memory_space<vmem>>, vector<1x8x1xi32>
      %191 = vector.shape_cast %190 : vector<1x8x1xi32> to vector<8x1xi32>
      %192 = tpu.iota {dimensions = array<i32: 1>} : vector<8x16xi32>
      %193 = vector.broadcast %191 : vector<8x1xi32> to vector<8x16xi32>
      %194 = arith.cmpi eq, %192, %193 : vector<8x16xi32>
      %cst_89 = arith.constant 1.000000e+00 : f32
      %cst_90 = arith.constant 0.000000e+00 : f32
      %195 = vector.broadcast %cst_89 : f32 to vector<8x16xf32>
      %196 = vector.broadcast %cst_90 : f32 to vector<8x16xf32>
      %197 = arith.select %194, %195, %196 : vector<8x16xi1>, vector<8x16xf32>
      %c0_91 = arith.constant 0 : index
      %c0_92 = arith.constant 0 : index
      %198 = vector.load %arg3[%c0_91, %c0_92] : memref<16x32xf32, #tpu.memory_space<vmem>>, vector<16x32xf32>
      %cst_93 = arith.constant dense<0.000000e+00> : vector<8x32xf32>
      %199 = tpu.matmul %197, %198, %cst_93 {dimension_numbers = #tpu.dot_dimension_numbers<[1], [0], [0], [1], [0, 0, 1, 1], [], []>} : vector<8x16xf32>, vector<16x32xf32>, vector<8x32xf32> -> vector<8x32xf32>
      %cst_94 = arith.constant 5.65685415 : f32
      %200 = vector.broadcast %cst_94 : f32 to vector<8x32xf32>
      %201 = arith.mulf %199, %200 : vector<8x32xf32>
      %c0_95 = arith.constant 0 : index
      %c0_96 = arith.constant 0 : index
      %202 = vector.load %arg4[%c0_95, %c0_96] : memref<8x32xf32, #tpu.memory_space<vmem>>, vector<8x32xf32>
      %203 = arith.addf %201, %202 : vector<8x32xf32>
      %c0_97 = arith.constant 0 : index
      %c0_98 = arith.constant 0 : index
      %204 = vector.load %arg21[%c0_97, %c0_98] : memref<8x32xf32, #tpu.memory_space<vmem>>, vector<8x32xf32>
      tpu.vector_store %arg21[%c0_97, %c0_98], %203 {strides = array<i32>} : memref<8x32xf32, #tpu.memory_space<vmem>>, vector<8x32xf32>,
    } else {
    }
    %c0 = arith.constant 0 : index
    %c0_1 = arith.constant 0 : index
    %3 = vector.load %arg21[%c0, %c0_1] : memref<8x32xf32, #tpu.memory_space<vmem>>, vector<8x32xf32>
    %c0_2 = arith.constant 0 : index
    %c0_3 = arith.constant 0 : index
    %c0_4 = arith.constant 0 : index
    %4 = vector.load %arg5[%c0_2, %c0_3, %c0_4] : memref<1x1x8xi32, #tpu.memory_space<vmem>>, vector<1x1x8xi32>
    %5 = vector.shape_cast %4 : vector<1x1x8xi32> to vector<1x8xi32>
    %c0_5 = arith.constant 0 : index
    %c0_6 = arith.constant 0 : index
    %c0_7 = arith.constant 0 : index
    %6 = vector.load %arg6[%c0_5, %c0_6, %c0_7] : memref<1x1x32xf32, #tpu.memory_space<vmem>>, vector<1x1x32xf32>
    %7 = vector.shape_cast %6 : vector<1x1x32xf32> to vector<1x32xf32>
    %c0_8 = arith.constant 0 : index
    %c0_9 = arith.constant 0 : index
    %c0_10 = arith.constant 0 : index
    %8 = vector.load %arg7[%c0_8, %c0_9, %c0_10] : memref<1x1x32xf32, #tpu.memory_space<vmem>>, vector<1x1x32xf32>
    %9 = vector.shape_cast %8 : vector<1x1x32xf32> to vector<1x32xf32>
    %cst = arith.constant dense<0.000000e+00> : vector<8xf32>
    %10 = vector.multi_reduction <add>, %3, %cst [1] : vector<8x32xf32> to vector<8xf32>
    %11 = vector.shape_cast %10 : vector<8xf32> to vector<8x1xf32>
    %cst_11 = arith.constant 3.200000e+01 : f32
    %12 = vector.broadcast %cst_11 : f32 to vector<8x1xf32>
    %13 = arith.divf %11, %12 : vector<8x1xf32>
    %14 = vector.broadcast %13 : vector<8x1xf32> to vector<8x32xf32>
    %15 = arith.subf %3, %14 : vector<8x32xf32>
    %16 = arith.mulf %15, %15 : vector<8x32xf32>
    %cst_12 = arith.constant dense<0.000000e+00> : vector<8xf32>
    %17 = vector.multi_reduction <add>, %16, %cst_12 [1] : vector<8x32xf32> to vector<8xf32>
    %18 = vector.shape_cast %17 : vector<8xf32> to vector<8x1xf32>
    %cst_13 = arith.constant 0.0322580636 : f32
    %19 = vector.broadcast %cst_13 : f32 to vector<8x1xf32>
    %20 = arith.mulf %18, %19 : vector<8x1xf32>
    %21 = math.sqrt %20 : vector<8x1xf32>
    %cst_14 = arith.constant 9.99999997E-7 : f32
    %22 = vector.broadcast %cst_14 : f32 to vector<8x1xf32>
    %23 = arith.addf %21, %22 : vector<8x1xf32>
    %24 = vector.broadcast %23 : vector<8x1xf32> to vector<8x32xf32>
    %25 = arith.divf %15, %24 : vector<8x32xf32>
    %26 = vector.broadcast %7 : vector<1x32xf32> to vector<8x32xf32>
    %27 = arith.mulf %26, %25 : vector<8x32xf32>
    %28 = vector.broadcast %9 : vector<1x32xf32> to vector<8x32xf32>
    %29 = arith.addf %27, %28 : vector<8x32xf32>
    %30 = arith.truncf %29 : vector<8x32xf32> to vector<8x32xbf16>
    %c0_15 = arith.constant 0 : index
    %c0_16 = arith.constant 0 : index
    %c0_17 = arith.constant 0 : index
    %31 = vector.load %arg8[%c0_15, %c0_16, %c0_17] : memref<1x32x96xbf16, #tpu.memory_space<vmem>>, vector<1x32x96xbf16>
    %32 = vector.shape_cast %31 : vector<1x32x96xbf16> to vector<32x96xbf16>
    %cst_18 = arith.constant dense<0.000000e+00> : vector<8x96xf32>
    %33 = tpu.matmul %30, %32, %cst_18 {dimension_numbers = #tpu.dot_dimension_numbers<[1], [0], [0], [1], [0, 0, 1, 1], [], []>} : vector<8x32xbf16>, vector<32x96xbf16>, vector<8x96xf32> -> vector<8x96xf32>
    %c0_19 = arith.constant 0 : index
    %c0_20 = arith.constant 0 : index
    %c0_21 = arith.constant 0 : index
    %34 = vector.load %arg9[%c0_19, %c0_20, %c0_21] : memref<1x1x96xf32, #tpu.memory_space<vmem>>, vector<1x1x96xf32>
    %35 = vector.shape_cast %34 : vector<1x1x96xf32> to vector<1x96xf32>
    %36 = vector.broadcast %35 : vector<1x96xf32> to vector<8x96xf32>
    %37 = arith.addf %33, %36 : vector<8x96xf32>
    %38 = vector.extract_strided_slice %37 {offsets = [0, 0], sizes = [8, 32], strides = [1, 1]} : vector<8x96xf32> to vector<8x32xf32>
    %39 = vector.extract_strided_slice %37 {offsets = [0, 32], sizes = [8, 32], strides = [1, 1]} : vector<8x96xf32> to vector<8x32xf32>
    %40 = vector.extract_strided_slice %37 {offsets = [0, 64], sizes = [8, 32], strides = [1, 1]} : vector<8x96xf32> to vector<8x32xf32>
    %41 = vector.extract_strided_slice %38 {offsets = [0, 0], sizes = [8, 8], strides = [1, 1]} : vector<8x32xf32> to vector<8x8xf32>
    %42 = vector.extract_strided_slice %39 {offsets = [0, 0], sizes = [8, 8], strides = [1, 1]} : vector<8x32xf32> to vector<8x8xf32>
    %43 = vector.extract_strided_slice %40 {offsets = [0, 0], sizes = [8, 8], strides = [1, 1]} : vector<8x32xf32> to vector<8x8xf32>
    "tpu.trace_start"() <{level = 10 : i32, message = "qd,kd->qk"}> : () -> ()
    %cst_22 = arith.constant dense<0.000000e+00> : vector<8x8xf32>
    %44 = tpu.matmul %41, %42, %cst_22 {dimension_numbers = #tpu.dot_dimension_numbers<[1], [1], [0], [0], [0, 0, 1, 0], [], []>} : vector<8x8xf32>, vector<8x8xf32>, vector<8x8xf32> -> vector<8x8xf32>
    "tpu.trace_stop"() : () -> ()
    %cst_23 = arith.constant 0.353553385 : f32
    %45 = vector.broadcast %cst_23 : f32 to vector<8x8xf32>
    %46 = arith.mulf %44, %45 : vector<8x8xf32>
    %c0_i32_24 = arith.constant 0 : i32
    %47 = vector.broadcast %c0_i32_24 : i32 to vector<1x8xi32>
    %48 = arith.cmpi eq, %5, %47 : vector<1x8xi32>
    %cst_25 = arith.constant -1.000000e+09 : f32
    %49 = vector.shape_cast %48 : vector<1x8xi1> to vector<1x8xi1>
    %50 = vector.broadcast %49 : vector<1x8xi1> to vector<8x8xi1>
    %51 = vector.broadcast %cst_25 : f32 to vector<8x8xf32>
    %52 = arith.select %50, %51, %46 : vector<8x8xi1>, vector<8x8xf32>
    %cst_26 = arith.constant dense<0xFF800000> : vector<8xf32>
    %53 = vector.multi_reduction <maximumf>, %52, %cst_26 [1] : vector<8x8xf32> to vector<8xf32>
    %54 = vector.shape_cast %53 : vector<8xf32> to vector<8x1xf32>
    %55 = vector.broadcast %54 : vector<8x1xf32> to vector<8x8xf32>
    %56 = arith.subf %52, %55 : vector<8x8xf32>
    %57 = math.exp %56 : vector<8x8xf32>
    %cst_27 = arith.constant dense<0.000000e+00> : vector<8xf32>
    %58 = vector.multi_reduction <add>, %57, %cst_27 [1] : vector<8x8xf32> to vector<8xf32>
    %59 = vector.shape_cast %58 : vector<8xf32> to vector<8x1xf32>
    %60 = tpu.reciprocal %59 {approx = true} : vector<8x1xf32> -> vector<8x1xf32>
    %61 = vector.broadcast %60 : vector<8x1xf32> to vector<8x8xf32>
    %62 = arith.mulf %57, %61 : vector<8x8xf32>
    %cst_28 = arith.constant dense<0.000000e+00> : vector<8x8xf32>
    %63 = tpu.matmul %62, %43, %cst_28 {dimension_numbers = #tpu.dot_dimension_numbers<[1], [0], [0], [1], [0, 0, 1, 1], [], []>} : vector<8x8xf32>, vector<8x8xf32>, vector<8x8xf32> -> vector<8x8xf32>
    %64 = vector.extract_strided_slice %38 {offsets = [0, 8], sizes = [8, 8], strides = [1, 1]} : vector<8x32xf32> to vector<8x8xf32>
    %65 = vector.extract_strided_slice %39 {offsets = [0, 8], sizes = [8, 8], strides = [1, 1]} : vector<8x32xf32> to vector<8x8xf32>
    %66 = vector.extract_strided_slice %40 {offsets = [0, 8], sizes = [8, 8], strides = [1, 1]} : vector<8x32xf32> to vector<8x8xf32>
    "tpu.trace_start"() <{level = 10 : i32, message = "qd,kd->qk"}> : () -> ()
    %cst_29 = arith.constant dense<0.000000e+00> : vector<8x8xf32>
    %67 = tpu.matmul %64, %65, %cst_29 {dimension_numbers = #tpu.dot_dimension_numbers<[1], [1], [0], [0], [0, 0, 1, 0], [], []>} : vector<8x8xf32>, vector<8x8xf32>, vector<8x8xf32> -> vector<8x8xf32>
    "tpu.trace_stop"() : () -> ()
    %cst_30 = arith.constant 0.353553385 : f32
    %68 = vector.broadcast %cst_30 : f32 to vector<8x8xf32>
    %69 = arith.mulf %67, %68 : vector<8x8xf32>
    %c0_i32_31 = arith.constant 0 : i32
    %70 = vector.broadcast %c0_i32_31 : i32 to vector<1x8xi32>
    %71 = arith.cmpi eq, %5, %70 : vector<1x8xi32>
    %cst_32 = arith.constant -1.000000e+09 : f32
    %72 = vector.shape_cast %71 : vector<1x8xi1> to vector<1x8xi1>
    %73 = vector.broadcast %72 : vector<1x8xi1> to vector<8x8xi1>
    %74 = vector.broadcast %cst_32 : f32 to vector<8x8xf32>
    %75 = arith.select %73, %74, %69 : vector<8x8xi1>, vector<8x8xf32>
    %cst_33 = arith.constant dense<0xFF800000> : vector<8xf32>
    %76 = vector.multi_reduction <maximumf>, %75, %cst_33 [1] : vector<8x8xf32> to vector<8xf32>
    %77 = vector.shape_cast %76 : vector<8xf32> to vector<8x1xf32>
    %78 = vector.broadcast %77 : vector<8x1xf32> to vector<8x8xf32>
    %79 = arith.subf %75, %78 : vector<8x8xf32>
    %80 = math.exp %79 : vector<8x8xf32>
    %cst_34 = arith.constant dense<0.000000e+00> : vector<8xf32>
    %81 = vector.multi_reduction <add>, %80, %cst_34 [1] : vector<8x8xf32> to vector<8xf32>
    %82 = vector.shape_cast %81 : vector<8xf32> to vector<8x1xf32>
    %83 = tpu.reciprocal %82 {approx = true} : vector<8x1xf32> -> vector<8x1xf32>
    %84 = vector.broadcast %83 : vector<8x1xf32> to vector<8x8xf32>
    %85 = arith.mulf %80, %84 : vector<8x8xf32>
    %cst_35 = arith.constant dense<0.000000e+00> : vector<8x8xf32>
    %86 = tpu.matmul %85, %66, %cst_35 {dimension_numbers = #tpu.dot_dimension_numbers<[1], [0], [0], [1], [0, 0, 1, 1], [], []>} : vector<8x8xf32>, vector<8x8xf32>, vector<8x8xf32> -> vector<8x8xf32>
    %87 = vector.extract_strided_slice %38 {offsets = [0, 16], sizes = [8, 8], strides = [1, 1]} : vector<8x32xf32> to vector<8x8xf32>
    %88 = vector.extract_strided_slice %39 {offsets = [0, 16], sizes = [8, 8], strides = [1, 1]} : vector<8x32xf32> to vector<8x8xf32>
    %89 = vector.extract_strided_slice %40 {offsets = [0, 16], sizes = [8, 8], strides = [1, 1]} : vector<8x32xf32> to vector<8x8xf32>
    "tpu.trace_start"() <{level = 10 : i32, message = "qd,kd->qk"}> : () -> ()
    %cst_36 = arith.constant dense<0.000000e+00> : vector<8x8xf32>
    %90 = tpu.matmul %87, %88, %cst_36 {dimension_numbers = #tpu.dot_dimension_numbers<[1], [1], [0], [0], [0, 0, 1, 0], [], []>} : vector<8x8xf32>, vector<8x8xf32>, vector<8x8xf32> -> vector<8x8xf32>
    "tpu.trace_stop"() : () -> ()
    %cst_37 = arith.constant 0.353553385 : f32
    %91 = vector.broadcast %cst_37 : f32 to vector<8x8xf32>
    %92 = arith.mulf %90, %91 : vector<8x8xf32>
    %c0_i32_38 = arith.constant 0 : i32
    %93 = vector.broadcast %c0_i32_38 : i32 to vector<1x8xi32>
    %94 = arith.cmpi eq, %5, %93 : vector<1x8xi32>
    %cst_39 = arith.constant -1.000000e+09 : f32
    %95 = vector.shape_cast %94 : vector<1x8xi1> to vector<1x8xi1>
    %96 = vector.broadcast %95 : vector<1x8xi1> to vector<8x8xi1>
    %97 = vector.broadcast %cst_39 : f32 to vector<8x8xf32>
    %98 = arith.select %96, %97, %92 : vector<8x8xi1>, vector<8x8xf32>
    %cst_40 = arith.constant dense<0xFF800000> : vector<8xf32>
    %99 = vector.multi_reduction <maximumf>, %98, %cst_40 [1] : vector<8x8xf32> to vector<8xf32>
    %100 = vector.shape_cast %99 : vector<8xf32> to vector<8x1xf32>
    %101 = vector.broadcast %100 : vector<8x1xf32> to vector<8x8xf32>
    %102 = arith.subf %98, %101 : vector<8x8xf32>
    %103 = math.exp %102 : vector<8x8xf32>
    %cst_41 = arith.constant dense<0.000000e+00> : vector<8xf32>
    %104 = vector.multi_reduction <add>, %103, %cst_41 [1] : vector<8x8xf32> to vector<8xf32>
    %105 = vector.shape_cast %104 : vector<8xf32> to vector<8x1xf32>
    %106 = tpu.reciprocal %105 {approx = true} : vector<8x1xf32> -> vector<8x1xf32>
    %107 = vector.broadcast %106 : vector<8x1xf32> to vector<8x8xf32>
    %108 = arith.mulf %103, %107 : vector<8x8xf32>
    %cst_42 = arith.constant dense<0.000000e+00> : vector<8x8xf32>
    %109 = tpu.matmul %108, %89, %cst_42 {dimension_numbers = #tpu.dot_dimension_numbers<[1], [0], [0], [1], [0, 0, 1, 1], [], []>} : vector<8x8xf32>, vector<8x8xf32>, vector<8x8xf32> -> vector<8x8xf32>
    %110 = vector.extract_strided_slice %38 {offsets = [0, 24], sizes = [8, 8], strides = [1, 1]} : vector<8x32xf32> to vector<8x8xf32>
    %111 = vector.extract_strided_slice %39 {offsets = [0, 24], sizes = [8, 8], strides = [1, 1]} : vector<8x32xf32> to vector<8x8xf32>
    %112 = vector.extract_strided_slice %40 {offsets = [0, 24], sizes = [8, 8], strides = [1, 1]} : vector<8x32xf32> to vector<8x8xf32>
    "tpu.trace_start"() <{level = 10 : i32, message = "qd,kd->qk"}> : () -> ()
    %cst_43 = arith.constant dense<0.000000e+00> : vector<8x8xf32>
    %113 = tpu.matmul %110, %111, %cst_43 {dimension_numbers = #tpu.dot_dimension_numbers<[1], [1], [0], [0], [0, 0, 1, 0], [], []>} : vector<8x8xf32>, vector<8x8xf32>, vector<8x8xf32> -> vector<8x8xf32>
    "tpu.trace_stop"() : () -> ()
    %cst_44 = arith.constant 0.353553385 : f32
    %114 = vector.broadcast %cst_44 : f32 to vector<8x8xf32>
    %115 = arith.mulf %113, %114 : vector<8x8xf32>
    %c0_i32_45 = arith.constant 0 : i32
    %116 = vector.broadcast %c0_i32_45 : i32 to vector<1x8xi32>
    %117 = arith.cmpi eq, %5, %116 : vector<1x8xi32>
    %cst_46 = arith.constant -1.000000e+09 : f32
    %118 = vector.shape_cast %117 : vector<1x8xi1> to vector<1x8xi1>
    %119 = vector.broadcast %118 : vector<1x8xi1> to vector<8x8xi1>
    %120 = vector.broadcast %cst_46 : f32 to vector<8x8xf32>
    %121 = arith.select %119, %120, %115 : vector<8x8xi1>, vector<8x8xf32>
    %cst_47 = arith.constant dense<0xFF800000> : vector<8xf32>
    %122 = vector.multi_reduction <maximumf>, %121, %cst_47 [1] : vector<8x8xf32> to vector<8xf32>
    %123 = vector.shape_cast %122 : vector<8xf32> to vector<8x1xf32>
    %124 = vector.broadcast %123 : vector<8x1xf32> to vector<8x8xf32>
    %125 = arith.subf %121, %124 : vector<8x8xf32>
    %126 = math.exp %125 : vector<8x8xf32>
    %cst_48 = arith.constant dense<0.000000e+00> : vector<8xf32>
    %127 = vector.multi_reduction <add>, %126, %cst_48 [1] : vector<8x8xf32> to vector<8xf32>
    %128 = vector.shape_cast %127 : vector<8xf32> to vector<8x1xf32>
    %129 = tpu.reciprocal %128 {approx = true} : vector<8x1xf32> -> vector<8x1xf32>
    %130 = vector.broadcast %129 : vector<8x1xf32> to vector<8x8xf32>
    %131 = arith.mulf %126, %130 : vector<8x8xf32>
    %cst_49 = arith.constant dense<0.000000e+00> : vector<8x8xf32>
    %132 = tpu.matmul %131, %112, %cst_49 {dimension_numbers = #tpu.dot_dimension_numbers<[1], [0], [0], [1], [0, 0, 1, 1], [], []>} : vector<8x8xf32>, vector<8x8xf32>, vector<8x8xf32> -> vector<8x8xf32>
    %133 = tpu.concatenate %63, %86, %109, %132 in 1 : vector<8x8xf32>, vector<8x8xf32>, vector<8x8xf32>, vector<8x8xf32> -> vector<8x32xf32>
    %134 = arith.truncf %133 : vector<8x32xf32> to vector<8x32xbf16>
    %c0_50 = arith.constant 0 : index
    %c0_51 = arith.constant 0 : index
    %c0_52 = arith.constant 0 : index
    %135 = vector.load %arg10[%c0_50, %c0_51, %c0_52] : memref<1x32x32xbf16, #tpu.memory_space<vmem>>, vector<1x32x32xbf16>
    %136 = vector.shape_cast %135 : vector<1x32x32xbf16> to vector<32x32xbf16>
    %cst_53 = arith.constant dense<0.000000e+00> : vector<8x32xf32>
    %137 = tpu.matmul %134, %136, %cst_53 {dimension_numbers = #tpu.dot_dimension_numbers<[1], [0], [0], [1], [0, 0, 1, 1], [], []>} : vector<8x32xbf16>, vector<32x32xbf16>, vector<8x32xf32> -> vector<8x32xf32>
    %c0_54 = arith.constant 0 : index
    %c0_55 = arith.constant 0 : index
    %c0_56 = arith.constant 0 : index
    %138 = vector.load %arg11[%c0_54, %c0_55, %c0_56] : memref<1x1x32xf32, #tpu.memory_space<vmem>>, vector<1x1x32xf32>
    %139 = vector.shape_cast %138 : vector<1x1x32xf32> to vector<1x32xf32>
    %140 = vector.broadcast %139 : vector<1x32xf32> to vector<8x32xf32>
    %141 = arith.addf %137, %140 : vector<8x32xf32>
    %142 = arith.addf %3, %141 : vector<8x32xf32>
    %c0_57 = arith.constant 0 : index
    %c0_58 = arith.constant 0 : index
    %c0_59 = arith.constant 0 : index
    %143 = vector.load %arg12[%c0_57, %c0_58, %c0_59] : memref<1x1x32xf32, #tpu.memory_space<vmem>>, vector<1x1x32xf32>
    %144 = vector.shape_cast %143 : vector<1x1x32xf32> to vector<1x32xf32>
    %c0_60 = arith.constant 0 : index
    %c0_61 = arith.constant 0 : index
    %c0_62 = arith.constant 0 : index
    %145 = vector.load %arg13[%c0_60, %c0_61, %c0_62] : memref<1x1x32xf32, #tpu.memory_space<vmem>>, vector<1x1x32xf32>
    %146 = vector.shape_cast %145 : vector<1x1x32xf32> to vector<1x32xf32>
    %cst_63 = arith.constant dense<0.000000e+00> : vector<8xf32>
    %147 = vector.multi_reduction <add>, %142, %cst_63 [1] : vector<8x32xf32> to vector<8xf32>
    %148 = vector.shape_cast %147 : vector<8xf32> to vector<8x1xf32>
    %cst_64 = arith.constant 3.200000e+01 : f32
    %149 = vector.broadcast %cst_64 : f32 to vector<8x1xf32>
    %150 = arith.divf %148, %149 : vector<8x1xf32>
    %151 = vector.broadcast %150 : vector<8x1xf32> to vector<8x32xf32>
    %152 = arith.subf %142, %151 : vector<8x32xf32>
    %153 = arith.mulf %152, %152 : vector<8x32xf32>
    %cst_65 = arith.constant dense<0.000000e+00> : vector<8xf32>
    %154 = vector.multi_reduction <add>, %153, %cst_65 [1] : vector<8x32xf32> to vector<8xf32>
    %155 = vector.shape_cast %154 : vector<8xf32> to vector<8x1xf32>
    %cst_66 = arith.constant 0.0322580636 : f32
    %156 = vector.broadcast %cst_66 : f32 to vector<8x1xf32>
    %157 = arith.mulf %155, %156 : vector<8x1xf32>
    %158 = math.sqrt %157 : vector<8x1xf32>
    %cst_67 = arith.constant 9.99999997E-7 : f32
    %159 = vector.broadcast %cst_67 : f32 to vector<8x1xf32>
    %160 = arith.addf %158, %159 : vector<8x1xf32>
    %161 = vector.broadcast %160 : vector<8x1xf32> to vector<8x32xf32>
    %162 = arith.divf %152, %161 : vector<8x32xf32>
    %163 = vector.broadcast %144 : vector<1x32xf32> to vector<8x32xf32>
    %164 = arith.mulf %163, %162 : vector<8x32xf32>
    %165 = vector.broadcast %146 : vector<1x32xf32> to vector<8x32xf32>
    %166 = arith.addf %164, %165 : vector<8x32xf32>
    %167 = arith.truncf %166 : vector<8x32xf32> to vector<8x32xbf16>
    %c0_68 = arith.constant 0 : index
    %c0_69 = arith.constant 0 : index
    %c0_70 = arith.constant 0 : index
    %168 = vector.load %arg14[%c0_68, %c0_69, %c0_70] : memref<1x32x64xbf16, #tpu.memory_space<vmem>>, vector<1x32x64xbf16>
    %169 = vector.shape_cast %168 : vector<1x32x64xbf16> to vector<32x64xbf16>
    %cst_71 = arith.constant dense<0.000000e+00> : vector<8x64xf32>
    %170 = tpu.matmul %167, %169, %cst_71 {dimension_numbers = #tpu.dot_dimension_numbers<[1], [0], [0], [1], [0, 0, 1, 1], [], []>} : vector<8x32xbf16>, vector<32x64xbf16>, vector<8x64xf32> -> vector<8x64xf32>
    %c0_72 = arith.constant 0 : index
    %c0_73 = arith.constant 0 : index
    %c0_74 = arith.constant 0 : index
    %171 = vector.load %arg15[%c0_72, %c0_73, %c0_74] : memref<1x1x64xf32, #tpu.memory_space<vmem>>, vector<1x1x64xf32>
    %172 = vector.shape_cast %171 : vector<1x1x64xf32> to vector<1x64xf32>
    %173 = vector.broadcast %172 : vector<1x64xf32> to vector<8x64xf32>
    %174 = arith.addf %170, %173 : vector<8x64xf32>
    %cst_75 = arith.constant 0.000000e+00 : f32
    %175 = vector.broadcast %cst_75 : f32 to vector<8x64xf32>
    %176 = arith.maximumf %174, %175 : vector<8x64xf32>
    %177 = arith.truncf %176 : vector<8x64xf32> to vector<8x64xbf16>
    %c0_76 = arith.constant 0 : index
    %c0_77 = arith.constant 0 : index
    %c0_78 = arith.constant 0 : index
    %178 = vector.load %arg16[%c0_76, %c0_77, %c0_78] : memref<1x64x32xbf16, #tpu.memory_space<vmem>>, vector<1x64x32xbf16>
    %179 = vector.shape_cast %178 : vector<1x64x32xbf16> to vector<64x32xbf16>
    %cst_79 = arith.constant dense<0.000000e+00> : vector<8x32xf32>
    %180 = tpu.matmul %177, %179, %cst_79 {dimension_numbers = #tpu.dot_dimension_numbers<[1], [0], [0], [1], [0, 0, 1, 1], [], []>} : vector<8x64xbf16>, vector<64x32xbf16>, vector<8x32xf32> -> vector<8x32xf32>
    %c0_80 = arith.constant 0 : index
    %c0_81 = arith.constant 0 : index
    %c0_82 = arith.constant 0 : index
    %181 = vector.load %arg17[%c0_80, %c0_81, %c0_82] : memref<1x1x32xf32, #tpu.memory_space<vmem>>, vector<1x1x32xf32>
    %182 = vector.shape_cast %181 : vector<1x1x32xf32> to vector<1x32xf32>
    %183 = vector.broadcast %182 : vector<1x32xf32> to vector<8x32xf32>
    %184 = arith.addf %180, %183 : vector<8x32xf32>
    %185 = arith.addf %142, %184 : vector<8x32xf32>
    %c0_83 = arith.constant 0 : index
    %c0_84 = arith.constant 0 : index
    %186 = vector.load %arg21[%c0_83, %c0_84] : memref<8x32xf32, #tpu.memory_space<vmem>>, vector<8x32xf32>
    tpu.vector_store %arg21[%c0_83, %c0_84], %185 {strides = array<i32>} : memref<8x32xf32, #tpu.memory_space<vmem>>, vector<8x32xf32>,
    %c1_i32 = arith.constant 1 : i32
    %187 = arith.cmpi eq, %arg1, %c1_i32 : i32
    %188 = arith.extui %187 : i1 to i32
    %c0_i32_85 = arith.constant 0 : i32
    %189 = arith.cmpi ne, %188, %c0_i32_85 : i32
    scf.if %189 {
      %c0_86 = arith.constant 0 : index
      %c0_87 = arith.constant 0 : index
      %190 = vector.load %arg18[%c0_86, %c0_87] : memref<1x32xf32, #tpu.memory_space<vmem>>, vector<1x32xf32>
      %c0_88 = arith.constant 0 : index
      %c0_89 = arith.constant 0 : index
      %191 = vector.load %arg19[%c0_88, %c0_89] : memref<1x32xf32, #tpu.memory_space<vmem>>, vector<1x32xf32>
      %cst_90 = arith.constant dense<0.000000e+00> : vector<8xf32>
      %192 = vector.multi_reduction <add>, %185, %cst_90 [1] : vector<8x32xf32> to vector<8xf32>
      %193 = vector.shape_cast %192 : vector<8xf32> to vector<8x1xf32>
      %cst_91 = arith.constant 3.200000e+01 : f32
      %194 = vector.broadcast %cst_91 : f32 to vector<8x1xf32>
      %195 = arith.divf %193, %194 : vector<8x1xf32>
      %196 = vector.broadcast %195 : vector<8x1xf32> to vector<8x32xf32>
      %197 = arith.subf %185, %196 : vector<8x32xf32>
      %198 = arith.mulf %197, %197 : vector<8x32xf32>
      %cst_92 = arith.constant dense<0.000000e+00> : vector<8xf32>
      %199 = vector.multi_reduction <add>, %198, %cst_92 [1] : vector<8x32xf32> to vector<8xf32>
      %200 = vector.shape_cast %199 : vector<8xf32> to vector<8x1xf32>
      %cst_93 = arith.constant 0.0322580636 : f32
      %201 = vector.broadcast %cst_93 : f32 to vector<8x1xf32>
      %202 = arith.mulf %200, %201 : vector<8x1xf32>
      %203 = math.sqrt %202 : vector<8x1xf32>
      %cst_94 = arith.constant 9.99999997E-7 : f32
      %204 = vector.broadcast %cst_94 : f32 to vector<8x1xf32>
      %205 = arith.addf %203, %204 : vector<8x1xf32>
      %206 = vector.broadcast %205 : vector<8x1xf32> to vector<8x32xf32>
      %207 = arith.divf %197, %206 : vector<8x32xf32>
      %208 = vector.broadcast %190 : vector<1x32xf32> to vector<8x32xf32>
      %209 = arith.mulf %208, %207 : vector<8x32xf32>
      %210 = vector.broadcast %191 : vector<1x32xf32> to vector<8x32xf32>
      %211 = arith.addf %209, %210 : vector<8x32xf32>
      %c0_95 = arith.constant 0 : index
      %c0_96 = arith.constant 0 : index
      %c0_97 = arith.constant 0 : index
      %212 = vector.load %arg20[%c0_95, %c0_96, %c0_97] : memref<1x8x32xf32, #tpu.memory_space<vmem>>, vector<1x8x32xf32>
      %213 = vector.shape_cast %212 : vector<1x8x32xf32> to vector<8x32xf32>
      %214 = vector.shape_cast %211 : vector<8x32xf32> to vector<1x8x32xf32>
      tpu.vector_store %arg20[%c0_95, %c0_96, %c0_97], %214 {strides = array<i32>} : memref<1x8x32xf32, #tpu.memory_space<vmem>>, vector<1x8x32xf32>,
    } else {
    }
    return
  }
  func.func @transform_0(%arg0: i32, %arg1: i32) -> (i32, i32, i32) {
    %c0_i32 = arith.constant 0 : i32
    %c0_i32_0 = arith.constant 0 : i32
    %c0_i32_1 = arith.constant 0 : i32
    return %arg0, %c0_i32, %c0_i32_0 : i32, i32, i32
  }
  func.func @transform_1(%arg0: i32, %arg1: i32) -> (i32, i32) {
    %c0_i32 = arith.constant 0 : i32
    %c0_i32_0 = arith.constant 0 : i32
    %c0_i32_1 = arith.constant 0 : i32
    return %c0_i32, %c0_i32_0 : i32, i32
  }
  func.func @transform_2(%arg0: i32, %arg1: i32) -> (i32, i32) {
    %c0_i32 = arith.constant 0 : i32
    %c0_i32_0 = arith.constant 0 : i32
    %c0_i32_1 = arith.constant 0 : i32
    return %c0_i32, %c0_i32_0 : i32, i32
  }
  func.func @transform_3(%arg0: i32, %arg1: i32) -> (i32, i32, i32) {
    %c0_i32 = arith.constant 0 : i32
    %c0_i32_0 = arith.constant 0 : i32
    %c0_i32_1 = arith.constant 0 : i32
    return %arg0, %c0_i32, %c0_i32_0 : i32, i32, i32
  }
  func.func @transform_4(%arg0: i32, %arg1: i32) -> (i32, i32, i32) {
    %c0_i32 = arith.constant 0 : i32
    %c0_i32_0 = arith.constant 0 : i32
    %c0_i32_1 = arith.constant 0 : i32
    return %arg1, %c0_i32, %c0_i32_0 : i32, i32, i32
  }
  func.func @transform_5(%arg0: i32, %arg1: i32) -> (i32, i32, i32) {
    %c0_i32 = arith.constant 0 : i32
    %c0_i32_0 = arith.constant 0 : i32
    %c0_i32_1 = arith.constant 0 : i32
    return %arg1, %c0_i32, %c0_i32_0 : i32, i32, i32
  }
  func.func @transform_6(%arg0: i32, %arg1: i32) -> (i32, i32, i32) {
    %c0_i32 = arith.constant 0 : i32
    %c0_i32_0 = arith.constant 0 : i32
    %c0_i32_1 = arith.constant 0 : i32
    return %arg1, %c0_i32, %c0_i32_0 : i32, i32, i32
  }
  func.func @transform_7(%arg0: i32, %arg1: i32) -> (i32, i32, i32) {
    %c0_i32 = arith.constant 0 : i32
    %c0_i32_0 = arith.constant 0 : i32
    %c0_i32_1 = arith.constant 0 : i32
    return %arg1, %c0_i32, %c0_i32_0 : i32, i32, i32
  }
  func.func @transform_8(%arg0: i32, %arg1: i32) -> (i32, i32, i32) {
    %c0_i32 = arith.constant 0 : i32
    %c0_i32_0 = arith.constant 0 : i32
    %c0_i32_1 = arith.constant 0 : i32
    return %arg1, %c0_i32, %c0_i32_0 : i32, i32, i32
  }
  func.func @transform_9(%arg0: i32, %arg1: i32) -> (i32, i32, i32) {
    %c0_i32 = arith.constant 0 : i32
    %c0_i32_0 = arith.constant 0 : i32
    %c0_i32_1 = arith.constant 0 : i32
    return %arg1, %c0_i32, %c0_i32_0 : i32, i32, i32
  }
  func.func @transform_10(%arg0: i32, %arg1: i32) -> (i32, i32, i32) {
    %c0_i32 = arith.constant 0 : i32
    %c0_i32_0 = arith.constant 0 : i32
    %c0_i32_1 = arith.constant 0 : i32
    return %arg1, %c0_i32, %c0_i32_0 : i32, i32, i32
  }
  func.func @transform_11(%arg0: i32, %arg1: i32) -> (i32, i32, i32) {
    %c0_i32 = arith.constant 0 : i32
    %c0_i32_0 = arith.constant 0 : i32
    %c0_i32_1 = arith.constant 0 : i32
    return %arg1, %c0_i32, %c0_i32_0 : i32, i32, i32
  }
  func.func @transform_12(%arg0: i32, %arg1: i32) -> (i32, i32, i32) {
    %c0_i32 = arith.constant 0 : i32
    %c0_i32_0 = arith.constant 0 : i32
    %c0_i32_1 = arith.constant 0 : i32
    return %arg1, %c0_i32, %c0_i32_0 : i32, i32, i32
  }
  func.func @transform_13(%arg0: i32, %arg1: i32) -> (i32, i32, i32) {
    %c0_i32 = arith.constant 0 : i32
    %c0_i32_0 = arith.constant 0 : i32
    %c0_i32_1 = arith.constant 0 : i32
    return %arg1, %c0_i32, %c0_i32_0 : i32, i32, i32
  }
  func.func @transform_14(%arg0: i32, %arg1: i32) -> (i32, i32, i32) {
    %c0_i32 = arith.constant 0 : i32
    %c0_i32_0 = arith.constant 0 : i32
    %c0_i32_1 = arith.constant 0 : i32
    return %arg1, %c0_i32, %c0_i32_0 : i32, i32, i32
  }
  func.func @transform_15(%arg0: i32, %arg1: i32) -> (i32, i32, i32) {
    %c0_i32 = arith.constant 0 : i32
    %c0_i32_0 = arith.constant 0 : i32
    %c0_i32_1 = arith.constant 0 : i32
    return %arg1, %c0_i32, %c0_i32_0 : i32, i32, i32
  }
  func.func @transform_16(%arg0: i32, %arg1: i32) -> (i32, i32) {
    %c0_i32 = arith.constant 0 : i32
    %c0_i32_0 = arith.constant 0 : i32
    %c0_i32_1 = arith.constant 0 : i32
    return %c0_i32, %c0_i32_0 : i32, i32
  }
  func.func @transform_17(%arg0: i32, %arg1: i32) -> (i32, i32) {
    %c0_i32 = arith.constant 0 : i32
    %c0_i32_0 = arith.constant 0 : i32
    %c0_i32_1 = arith.constant 0 : i32
    return %c0_i32, %c0_i32_0 : i32, i32
  }
  func.func @transform_18(%arg0: i32, %arg1: i32) -> (i32, i32, i32) {
    %c0_i32 = arith.constant 0 : i32
    %c0_i32_0 = arith.constant 0 : i32
    %c0_i32_1 = arith.constant 0 : i32
    return %arg0, %c0_i32, %c0_i32_0 : i32, i32, i32
  }
}

module attributes {stable_mosaic.version = 11 : i64} {
  func.func @_decoder_kernel(%arg0: i32, %arg1: i32, %arg2: memref<1x8x1xi32, #tpu.memory_space<vmem>>, %arg3: memref<16x32xf32, #tpu.memory_space<vmem>>, %arg4: memref<8x32xf32, #tpu.memory_space<vmem>>, %arg5: memref<1x8x32xf32, #tpu.memory_space<vmem>>, %arg6: memref<1x1x8xi32, #tpu.memory_space<vmem>>, %arg7: memref<1x8x8xi32, #tpu.memory_space<vmem>>, %arg8: memref<1x1x32xf32, #tpu.memory_space<vmem>>, %arg9: memref<1x1x32xf32, #tpu.memory_space<vmem>>, %arg10: memref<1x32x96xbf16, #tpu.memory_space<vmem>>, %arg11: memref<1x1x96xf32, #tpu.memory_space<vmem>>, %arg12: memref<1x32x32xbf16, #tpu.memory_space<vmem>>, %arg13: memref<1x1x32xf32, #tpu.memory_space<vmem>>, %arg14: memref<1x1x32xf32, #tpu.memory_space<vmem>>, %arg15: memref<1x1x32xf32, #tpu.memory_space<vmem>>, %arg16: memref<1x32x32xbf16, #tpu.memory_space<vmem>>, %arg17: memref<1x1x32xf32, #tpu.memory_space<vmem>>, %arg18: memref<1x32x64xbf16, #tpu.memory_space<vmem>>, %arg19: memref<1x1x64xf32, #tpu.memory_space<vmem>>, %arg20: memref<1x32x32xbf16, #tpu.memory_space<vmem>>, %arg21: memref<1x1x32xf32, #tpu.memory_space<vmem>>, %arg22: memref<1x1x32xf32, #tpu.memory_space<vmem>>, %arg23: memref<1x1x32xf32, #tpu.memory_space<vmem>>, %arg24: memref<1x32x64xbf16, #tpu.memory_space<vmem>>, %arg25: memref<1x1x64xf32, #tpu.memory_space<vmem>>, %arg26: memref<1x64x32xbf16, #tpu.memory_space<vmem>>, %arg27: memref<1x1x32xf32, #tpu.memory_space<vmem>>, %arg28: memref<1x32xf32, #tpu.memory_space<vmem>>, %arg29: memref<1x32xf32, #tpu.memory_space<vmem>>, %arg30: memref<1x8x32xf32, #tpu.memory_space<vmem>>, %arg31: memref<8x32xf32, #tpu.memory_space<vmem>>) attributes {dimension_semantics = [#tpu.dimension_semantics<parallel>, #tpu.dimension_semantics<arbitrary>], iteration_bounds = array<i64: 2, 2>, scalar_prefetch = 0 : i64, scratch_operands = 1 : i64, tpu.core_type = #tpu.core_type<tc>, window_params = [{transform_indices = @transform_0, window_bounds = array<i64: 1, 8, 1>}, {pipeline_mode = #tpu.pipeline_mode<synchronous>, transform_indices = @transform_1, window_bounds = array<i64: 16, 32>}, {pipeline_mode = #tpu.pipeline_mode<synchronous>, transform_indices = @transform_2, window_bounds = array<i64: 8, 32>}, {transform_indices = @transform_3, window_bounds = array<i64: 1, 8, 32>}, {transform_indices = @transform_4, window_bounds = array<i64: 1, 1, 8>}, {transform_indices = @transform_5, window_bounds = array<i64: 1, 8, 8>}, {transform_indices = @transform_6, window_bounds = array<i64: 1, 1, 32>}, {transform_indices = @transform_7, window_bounds = array<i64: 1, 1, 32>}, {transform_indices = @transform_8, window_bounds = array<i64: 1, 32, 96>}, {transform_indices = @transform_9, window_bounds = array<i64: 1, 1, 96>}, {transform_indices = @transform_10, window_bounds = array<i64: 1, 32, 32>}, {transform_indices = @transform_11, window_bounds = array<i64: 1, 1, 32>}, {transform_indices = @transform_12, window_bounds = array<i64: 1, 1, 32>}, {transform_indices = @transform_13, window_bounds = array<i64: 1, 1, 32>}, {transform_indices = @transform_14, window_bounds = array<i64: 1, 32, 32>}, {transform_indices = @transform_15, window_bounds = array<i64: 1, 1, 32>}, {transform_indices = @transform_16, window_bounds = array<i64: 1, 32, 64>}, {transform_indices = @transform_17, window_bounds = array<i64: 1, 1, 64>}, {transform_indices = @transform_18, window_bounds = array<i64: 1, 32, 32>}, {transform_indices = @transform_19, window_bounds = array<i64: 1, 1, 32>}, {transform_indices = @transform_20, window_bounds = array<i64: 1, 1, 32>}, {transform_indices = @transform_21, window_bounds = array<i64: 1, 1, 32>}, {transform_indices = @transform_22, window_bounds = array<i64: 1, 32, 64>}, {transform_indices = @transform_23, window_bounds = array<i64: 1, 1, 64>}, {transform_indices = @transform_24, window_bounds = array<i64: 1, 64, 32>}, {transform_indices = @transform_25, window_bounds = array<i64: 1, 1, 32>}, {pipeline_mode = #tpu.pipeline_mode<synchronous>, transform_indices = @transform_26, window_bounds = array<i64: 1, 32>}, {pipeline_mode = #tpu.pipeline_mode<synchronous>, transform_indices = @transform_27, window_bounds = array<i64: 1, 32>}, {transform_indices = @transform_28, window_bounds = array<i64: 1, 8, 32>}]} {
    %c0_i32 = arith.constant 0 : i32
    %0 = arith.cmpi eq, %arg1, %c0_i32 : i32
    %1 = arith.extui %0 : i1 to i32
    %c0_i32_0 = arith.constant 0 : i32
    %2 = arith.cmpi ne, %1, %c0_i32_0 : i32
    scf.if %2 {
      %c0_152 = arith.constant 0 : index
      %c0_153 = arith.constant 0 : index
      %c0_154 = arith.constant 0 : index
      %330 = vector.load %arg2[%c0_152, %c0_153, %c0_154] : memref<1x8x1xi32, #tpu.memory_space<vmem>>, vector<1x8x1xi32>
      %331 = vector.shape_cast %330 : vector<1x8x1xi32> to vector<8x1xi32>
      %332 = tpu.iota {dimensions = array<i32: 1>} : vector<8x16xi32>
      %333 = vector.broadcast %331 : vector<8x1xi32> to vector<8x16xi32>
      %334 = arith.cmpi eq, %332, %333 : vector<8x16xi32>
      %cst_155 = arith.constant 1.000000e+00 : f32
      %cst_156 = arith.constant 0.000000e+00 : f32
      %335 = vector.broadcast %cst_155 : f32 to vector<8x16xf32>
      %336 = vector.broadcast %cst_156 : f32 to vector<8x16xf32>
      %337 = arith.select %334, %335, %336 : vector<8x16xi1>, vector<8x16xf32>
      %c0_157 = arith.constant 0 : index
      %c0_158 = arith.constant 0 : index
      %338 = vector.load %arg3[%c0_157, %c0_158] : memref<16x32xf32, #tpu.memory_space<vmem>>, vector<16x32xf32>
      %cst_159 = arith.constant dense<0.000000e+00> : vector<8x32xf32>
      %339 = tpu.matmul %337, %338, %cst_159 {dimension_numbers = #tpu.dot_dimension_numbers<[1], [0], [0], [1], [0, 0, 1, 1], [], []>} : vector<8x16xf32>, vector<16x32xf32>, vector<8x32xf32> -> vector<8x32xf32>
      %cst_160 = arith.constant 5.65685415 : f32
      %340 = vector.broadcast %cst_160 : f32 to vector<8x32xf32>
      %341 = arith.mulf %339, %340 : vector<8x32xf32>
      %c0_161 = arith.constant 0 : index
      %c0_162 = arith.constant 0 : index
      %342 = vector.load %arg4[%c0_161, %c0_162] : memref<8x32xf32, #tpu.memory_space<vmem>>, vector<8x32xf32>
      %343 = arith.addf %341, %342 : vector<8x32xf32>
      %c0_163 = arith.constant 0 : index
      %c0_164 = arith.constant 0 : index
      %344 = vector.load %arg31[%c0_163, %c0_164] : memref<8x32xf32, #tpu.memory_space<vmem>>, vector<8x32xf32>
      tpu.vector_store %arg31[%c0_163, %c0_164], %343 {strides = array<i32>} : memref<8x32xf32, #tpu.memory_space<vmem>>, vector<8x32xf32>,
    } else {
    }
    %c0 = arith.constant 0 : index
    %c0_1 = arith.constant 0 : index
    %3 = vector.load %arg31[%c0, %c0_1] : memref<8x32xf32, #tpu.memory_space<vmem>>, vector<8x32xf32>
    %c0_2 = arith.constant 0 : index
    %c0_3 = arith.constant 0 : index
    %c0_4 = arith.constant 0 : index
    %4 = vector.load %arg6[%c0_2, %c0_3, %c0_4] : memref<1x1x8xi32, #tpu.memory_space<vmem>>, vector<1x1x8xi32>
    %5 = vector.shape_cast %4 : vector<1x1x8xi32> to vector<1x8xi32>
    %c0_5 = arith.constant 0 : index
    %c0_6 = arith.constant 0 : index
    %c0_7 = arith.constant 0 : index
    %6 = vector.load %arg7[%c0_5, %c0_6, %c0_7] : memref<1x8x8xi32, #tpu.memory_space<vmem>>, vector<1x8x8xi32>
    %7 = vector.shape_cast %6 : vector<1x8x8xi32> to vector<8x8xi32>
    %c0_8 = arith.constant 0 : index
    %c0_9 = arith.constant 0 : index
    %c0_10 = arith.constant 0 : index
    %8 = vector.load %arg5[%c0_8, %c0_9, %c0_10] : memref<1x8x32xf32, #tpu.memory_space<vmem>>, vector<1x8x32xf32>
    %9 = vector.shape_cast %8 : vector<1x8x32xf32> to vector<8x32xf32>
    %c0_11 = arith.constant 0 : index
    %c0_12 = arith.constant 0 : index
    %c0_13 = arith.constant 0 : index
    %10 = vector.load %arg8[%c0_11, %c0_12, %c0_13] : memref<1x1x32xf32, #tpu.memory_space<vmem>>, vector<1x1x32xf32>
    %11 = vector.shape_cast %10 : vector<1x1x32xf32> to vector<1x32xf32>
    %c0_14 = arith.constant 0 : index
    %c0_15 = arith.constant 0 : index
    %c0_16 = arith.constant 0 : index
    %12 = vector.load %arg9[%c0_14, %c0_15, %c0_16] : memref<1x1x32xf32, #tpu.memory_space<vmem>>, vector<1x1x32xf32>
    %13 = vector.shape_cast %12 : vector<1x1x32xf32> to vector<1x32xf32>
    %cst = arith.constant dense<0.000000e+00> : vector<8xf32>
    %14 = vector.multi_reduction <add>, %3, %cst [1] : vector<8x32xf32> to vector<8xf32>
    %15 = vector.shape_cast %14 : vector<8xf32> to vector<8x1xf32>
    %cst_17 = arith.constant 3.200000e+01 : f32
    %16 = vector.broadcast %cst_17 : f32 to vector<8x1xf32>
    %17 = arith.divf %15, %16 : vector<8x1xf32>
    %18 = vector.broadcast %17 : vector<8x1xf32> to vector<8x32xf32>
    %19 = arith.subf %3, %18 : vector<8x32xf32>
    %20 = arith.mulf %19, %19 : vector<8x32xf32>
    %cst_18 = arith.constant dense<0.000000e+00> : vector<8xf32>
    %21 = vector.multi_reduction <add>, %20, %cst_18 [1] : vector<8x32xf32> to vector<8xf32>
    %22 = vector.shape_cast %21 : vector<8xf32> to vector<8x1xf32>
    %cst_19 = arith.constant 0.0322580636 : f32
    %23 = vector.broadcast %cst_19 : f32 to vector<8x1xf32>
    %24 = arith.mulf %22, %23 : vector<8x1xf32>
    %25 = math.sqrt %24 : vector<8x1xf32>
    %cst_20 = arith.constant 9.99999997E-7 : f32
    %26 = vector.broadcast %cst_20 : f32 to vector<8x1xf32>
    %27 = arith.addf %25, %26 : vector<8x1xf32>
    %28 = vector.broadcast %27 : vector<8x1xf32> to vector<8x32xf32>
    %29 = arith.divf %19, %28 : vector<8x32xf32>
    %30 = vector.broadcast %11 : vector<1x32xf32> to vector<8x32xf32>
    %31 = arith.mulf %30, %29 : vector<8x32xf32>
    %32 = vector.broadcast %13 : vector<1x32xf32> to vector<8x32xf32>
    %33 = arith.addf %31, %32 : vector<8x32xf32>
    %34 = arith.truncf %33 : vector<8x32xf32> to vector<8x32xbf16>
    %c0_21 = arith.constant 0 : index
    %c0_22 = arith.constant 0 : index
    %c0_23 = arith.constant 0 : index
    %35 = vector.load %arg10[%c0_21, %c0_22, %c0_23] : memref<1x32x96xbf16, #tpu.memory_space<vmem>>, vector<1x32x96xbf16>
    %36 = vector.shape_cast %35 : vector<1x32x96xbf16> to vector<32x96xbf16>
    %cst_24 = arith.constant dense<0.000000e+00> : vector<8x96xf32>
    %37 = tpu.matmul %34, %36, %cst_24 {dimension_numbers = #tpu.dot_dimension_numbers<[1], [0], [0], [1], [0, 0, 1, 1], [], []>} : vector<8x32xbf16>, vector<32x96xbf16>, vector<8x96xf32> -> vector<8x96xf32>
    %c0_25 = arith.constant 0 : index
    %c0_26 = arith.constant 0 : index
    %c0_27 = arith.constant 0 : index
    %38 = vector.load %arg11[%c0_25, %c0_26, %c0_27] : memref<1x1x96xf32, #tpu.memory_space<vmem>>, vector<1x1x96xf32>
    %39 = vector.shape_cast %38 : vector<1x1x96xf32> to vector<1x96xf32>
    %40 = vector.broadcast %39 : vector<1x96xf32> to vector<8x96xf32>
    %41 = arith.addf %37, %40 : vector<8x96xf32>
    %42 = vector.extract_strided_slice %41 {offsets = [0, 0], sizes = [8, 32], strides = [1, 1]} : vector<8x96xf32> to vector<8x32xf32>
    %43 = vector.extract_strided_slice %41 {offsets = [0, 32], sizes = [8, 32], strides = [1, 1]} : vector<8x96xf32> to vector<8x32xf32>
    %44 = vector.extract_strided_slice %41 {offsets = [0, 64], sizes = [8, 32], strides = [1, 1]} : vector<8x96xf32> to vector<8x32xf32>
    %45 = vector.extract_strided_slice %42 {offsets = [0, 0], sizes = [8, 8], strides = [1, 1]} : vector<8x32xf32> to vector<8x8xf32>
    %46 = vector.extract_strided_slice %43 {offsets = [0, 0], sizes = [8, 8], strides = [1, 1]} : vector<8x32xf32> to vector<8x8xf32>
    %47 = vector.extract_strided_slice %44 {offsets = [0, 0], sizes = [8, 8], strides = [1, 1]} : vector<8x32xf32> to vector<8x8xf32>
    "tpu.trace_start"() <{level = 10 : i32, message = "qd,kd->qk"}> : () -> ()
    %cst_28 = arith.constant dense<0.000000e+00> : vector<8x8xf32>
    %48 = tpu.matmul %45, %46, %cst_28 {dimension_numbers = #tpu.dot_dimension_numbers<[1], [1], [0], [0], [0, 0, 1, 0], [], []>} : vector<8x8xf32>, vector<8x8xf32>, vector<8x8xf32> -> vector<8x8xf32>
    "tpu.trace_stop"() : () -> ()
    %cst_29 = arith.constant 0.353553385 : f32
    %49 = vector.broadcast %cst_29 : f32 to vector<8x8xf32>
    %50 = arith.mulf %48, %49 : vector<8x8xf32>
    %c0_i32_30 = arith.constant 0 : i32
    %51 = vector.broadcast %c0_i32_30 : i32 to vector<8x8xi32>
    %52 = arith.cmpi eq, %7, %51 : vector<8x8xi32>
    %cst_31 = arith.constant -1.000000e+09 : f32
    %53 = vector.broadcast %cst_31 : f32 to vector<8x8xf32>
    %54 = arith.select %52, %53, %50 : vector<8x8xi1>, vector<8x8xf32>
    %cst_32 = arith.constant dense<0xFF800000> : vector<8xf32>
    %55 = vector.multi_reduction <maximumf>, %54, %cst_32 [1] : vector<8x8xf32> to vector<8xf32>
    %56 = vector.shape_cast %55 : vector<8xf32> to vector<8x1xf32>
    %57 = vector.broadcast %56 : vector<8x1xf32> to vector<8x8xf32>
    %58 = arith.subf %54, %57 : vector<8x8xf32>
    %59 = math.exp %58 : vector<8x8xf32>
    %cst_33 = arith.constant dense<0.000000e+00> : vector<8xf32>
    %60 = vector.multi_reduction <add>, %59, %cst_33 [1] : vector<8x8xf32> to vector<8xf32>
    %61 = vector.shape_cast %60 : vector<8xf32> to vector<8x1xf32>
    %62 = tpu.reciprocal %61 {approx = true} : vector<8x1xf32> -> vector<8x1xf32>
    %63 = vector.broadcast %62 : vector<8x1xf32> to vector<8x8xf32>
    %64 = arith.mulf %59, %63 : vector<8x8xf32>
    %cst_34 = arith.constant dense<0.000000e+00> : vector<8x8xf32>
    %65 = tpu.matmul %64, %47, %cst_34 {dimension_numbers = #tpu.dot_dimension_numbers<[1], [0], [0], [1], [0, 0, 1, 1], [], []>} : vector<8x8xf32>, vector<8x8xf32>, vector<8x8xf32> -> vector<8x8xf32>
    %66 = vector.extract_strided_slice %42 {offsets = [0, 8], sizes = [8, 8], strides = [1, 1]} : vector<8x32xf32> to vector<8x8xf32>
    %67 = vector.extract_strided_slice %43 {offsets = [0, 8], sizes = [8, 8], strides = [1, 1]} : vector<8x32xf32> to vector<8x8xf32>
    %68 = vector.extract_strided_slice %44 {offsets = [0, 8], sizes = [8, 8], strides = [1, 1]} : vector<8x32xf32> to vector<8x8xf32>
    "tpu.trace_start"() <{level = 10 : i32, message = "qd,kd->qk"}> : () -> ()
    %cst_35 = arith.constant dense<0.000000e+00> : vector<8x8xf32>
    %69 = tpu.matmul %66, %67, %cst_35 {dimension_numbers = #tpu.dot_dimension_numbers<[1], [1], [0], [0], [0, 0, 1, 0], [], []>} : vector<8x8xf32>, vector<8x8xf32>, vector<8x8xf32> -> vector<8x8xf32>
    "tpu.trace_stop"() : () -> ()
    %cst_36 = arith.constant 0.353553385 : f32
    %70 = vector.broadcast %cst_36 : f32 to vector<8x8xf32>
    %71 = arith.mulf %69, %70 : vector<8x8xf32>
    %c0_i32_37 = arith.constant 0 : i32
    %72 = vector.broadcast %c0_i32_37 : i32 to vector<8x8xi32>
    %73 = arith.cmpi eq, %7, %72 : vector<8x8xi32>
    %cst_38 = arith.constant -1.000000e+09 : f32
    %74 = vector.broadcast %cst_38 : f32 to vector<8x8xf32>
    %75 = arith.select %73, %74, %71 : vector<8x8xi1>, vector<8x8xf32>
    %cst_39 = arith.constant dense<0xFF800000> : vector<8xf32>
    %76 = vector.multi_reduction <maximumf>, %75, %cst_39 [1] : vector<8x8xf32> to vector<8xf32>
    %77 = vector.shape_cast %76 : vector<8xf32> to vector<8x1xf32>
    %78 = vector.broadcast %77 : vector<8x1xf32> to vector<8x8xf32>
    %79 = arith.subf %75, %78 : vector<8x8xf32>
    %80 = math.exp %79 : vector<8x8xf32>
    %cst_40 = arith.constant dense<0.000000e+00> : vector<8xf32>
    %81 = vector.multi_reduction <add>, %80, %cst_40 [1] : vector<8x8xf32> to vector<8xf32>
    %82 = vector.shape_cast %81 : vector<8xf32> to vector<8x1xf32>
    %83 = tpu.reciprocal %82 {approx = true} : vector<8x1xf32> -> vector<8x1xf32>
    %84 = vector.broadcast %83 : vector<8x1xf32> to vector<8x8xf32>
    %85 = arith.mulf %80, %84 : vector<8x8xf32>
    %cst_41 = arith.constant dense<0.000000e+00> : vector<8x8xf32>
    %86 = tpu.matmul %85, %68, %cst_41 {dimension_numbers = #tpu.dot_dimension_numbers<[1], [0], [0], [1], [0, 0, 1, 1], [], []>} : vector<8x8xf32>, vector<8x8xf32>, vector<8x8xf32> -> vector<8x8xf32>
    %87 = vector.extract_strided_slice %42 {offsets = [0, 16], sizes = [8, 8], strides = [1, 1]} : vector<8x32xf32> to vector<8x8xf32>
    %88 = vector.extract_strided_slice %43 {offsets = [0, 16], sizes = [8, 8], strides = [1, 1]} : vector<8x32xf32> to vector<8x8xf32>
    %89 = vector.extract_strided_slice %44 {offsets = [0, 16], sizes = [8, 8], strides = [1, 1]} : vector<8x32xf32> to vector<8x8xf32>
    "tpu.trace_start"() <{level = 10 : i32, message = "qd,kd->qk"}> : () -> ()
    %cst_42 = arith.constant dense<0.000000e+00> : vector<8x8xf32>
    %90 = tpu.matmul %87, %88, %cst_42 {dimension_numbers = #tpu.dot_dimension_numbers<[1], [1], [0], [0], [0, 0, 1, 0], [], []>} : vector<8x8xf32>, vector<8x8xf32>, vector<8x8xf32> -> vector<8x8xf32>
    "tpu.trace_stop"() : () -> ()
    %cst_43 = arith.constant 0.353553385 : f32
    %91 = vector.broadcast %cst_43 : f32 to vector<8x8xf32>
    %92 = arith.mulf %90, %91 : vector<8x8xf32>
    %c0_i32_44 = arith.constant 0 : i32
    %93 = vector.broadcast %c0_i32_44 : i32 to vector<8x8xi32>
    %94 = arith.cmpi eq, %7, %93 : vector<8x8xi32>
    %cst_45 = arith.constant -1.000000e+09 : f32
    %95 = vector.broadcast %cst_45 : f32 to vector<8x8xf32>
    %96 = arith.select %94, %95, %92 : vector<8x8xi1>, vector<8x8xf32>
    %cst_46 = arith.constant dense<0xFF800000> : vector<8xf32>
    %97 = vector.multi_reduction <maximumf>, %96, %cst_46 [1] : vector<8x8xf32> to vector<8xf32>
    %98 = vector.shape_cast %97 : vector<8xf32> to vector<8x1xf32>
    %99 = vector.broadcast %98 : vector<8x1xf32> to vector<8x8xf32>
    %100 = arith.subf %96, %99 : vector<8x8xf32>
    %101 = math.exp %100 : vector<8x8xf32>
    %cst_47 = arith.constant dense<0.000000e+00> : vector<8xf32>
    %102 = vector.multi_reduction <add>, %101, %cst_47 [1] : vector<8x8xf32> to vector<8xf32>
    %103 = vector.shape_cast %102 : vector<8xf32> to vector<8x1xf32>
    %104 = tpu.reciprocal %103 {approx = true} : vector<8x1xf32> -> vector<8x1xf32>
    %105 = vector.broadcast %104 : vector<8x1xf32> to vector<8x8xf32>
    %106 = arith.mulf %101, %105 : vector<8x8xf32>
    %cst_48 = arith.constant dense<0.000000e+00> : vector<8x8xf32>
    %107 = tpu.matmul %106, %89, %cst_48 {dimension_numbers = #tpu.dot_dimension_numbers<[1], [0], [0], [1], [0, 0, 1, 1], [], []>} : vector<8x8xf32>, vector<8x8xf32>, vector<8x8xf32> -> vector<8x8xf32>
    %108 = vector.extract_strided_slice %42 {offsets = [0, 24], sizes = [8, 8], strides = [1, 1]} : vector<8x32xf32> to vector<8x8xf32>
    %109 = vector.extract_strided_slice %43 {offsets = [0, 24], sizes = [8, 8], strides = [1, 1]} : vector<8x32xf32> to vector<8x8xf32>
    %110 = vector.extract_strided_slice %44 {offsets = [0, 24], sizes = [8, 8], strides = [1, 1]} : vector<8x32xf32> to vector<8x8xf32>
    "tpu.trace_start"() <{level = 10 : i32, message = "qd,kd->qk"}> : () -> ()
    %cst_49 = arith.constant dense<0.000000e+00> : vector<8x8xf32>
    %111 = tpu.matmul %108, %109, %cst_49 {dimension_numbers = #tpu.dot_dimension_numbers<[1], [1], [0], [0], [0, 0, 1, 0], [], []>} : vector<8x8xf32>, vector<8x8xf32>, vector<8x8xf32> -> vector<8x8xf32>
    "tpu.trace_stop"() : () -> ()
    %cst_50 = arith.constant 0.353553385 : f32
    %112 = vector.broadcast %cst_50 : f32 to vector<8x8xf32>
    %113 = arith.mulf %111, %112 : vector<8x8xf32>
    %c0_i32_51 = arith.constant 0 : i32
    %114 = vector.broadcast %c0_i32_51 : i32 to vector<8x8xi32>
    %115 = arith.cmpi eq, %7, %114 : vector<8x8xi32>
    %cst_52 = arith.constant -1.000000e+09 : f32
    %116 = vector.broadcast %cst_52 : f32 to vector<8x8xf32>
    %117 = arith.select %115, %116, %113 : vector<8x8xi1>, vector<8x8xf32>
    %cst_53 = arith.constant dense<0xFF800000> : vector<8xf32>
    %118 = vector.multi_reduction <maximumf>, %117, %cst_53 [1] : vector<8x8xf32> to vector<8xf32>
    %119 = vector.shape_cast %118 : vector<8xf32> to vector<8x1xf32>
    %120 = vector.broadcast %119 : vector<8x1xf32> to vector<8x8xf32>
    %121 = arith.subf %117, %120 : vector<8x8xf32>
    %122 = math.exp %121 : vector<8x8xf32>
    %cst_54 = arith.constant dense<0.000000e+00> : vector<8xf32>
    %123 = vector.multi_reduction <add>, %122, %cst_54 [1] : vector<8x8xf32> to vector<8xf32>
    %124 = vector.shape_cast %123 : vector<8xf32> to vector<8x1xf32>
    %125 = tpu.reciprocal %124 {approx = true} : vector<8x1xf32> -> vector<8x1xf32>
    %126 = vector.broadcast %125 : vector<8x1xf32> to vector<8x8xf32>
    %127 = arith.mulf %122, %126 : vector<8x8xf32>
    %cst_55 = arith.constant dense<0.000000e+00> : vector<8x8xf32>
    %128 = tpu.matmul %127, %110, %cst_55 {dimension_numbers = #tpu.dot_dimension_numbers<[1], [0], [0], [1], [0, 0, 1, 1], [], []>} : vector<8x8xf32>, vector<8x8xf32>, vector<8x8xf32> -> vector<8x8xf32>
    %129 = tpu.concatenate %65, %86, %107, %128 in 1 : vector<8x8xf32>, vector<8x8xf32>, vector<8x8xf32>, vector<8x8xf32> -> vector<8x32xf32>
    %130 = arith.truncf %129 : vector<8x32xf32> to vector<8x32xbf16>
    %c0_56 = arith.constant 0 : index
    %c0_57 = arith.constant 0 : index
    %c0_58 = arith.constant 0 : index
    %131 = vector.load %arg12[%c0_56, %c0_57, %c0_58] : memref<1x32x32xbf16, #tpu.memory_space<vmem>>, vector<1x32x32xbf16>
    %132 = vector.shape_cast %131 : vector<1x32x32xbf16> to vector<32x32xbf16>
    %cst_59 = arith.constant dense<0.000000e+00> : vector<8x32xf32>
    %133 = tpu.matmul %130, %132, %cst_59 {dimension_numbers = #tpu.dot_dimension_numbers<[1], [0], [0], [1], [0, 0, 1, 1], [], []>} : vector<8x32xbf16>, vector<32x32xbf16>, vector<8x32xf32> -> vector<8x32xf32>
    %c0_60 = arith.constant 0 : index
    %c0_61 = arith.constant 0 : index
    %c0_62 = arith.constant 0 : index
    %134 = vector.load %arg13[%c0_60, %c0_61, %c0_62] : memref<1x1x32xf32, #tpu.memory_space<vmem>>, vector<1x1x32xf32>
    %135 = vector.shape_cast %134 : vector<1x1x32xf32> to vector<1x32xf32>
    %136 = vector.broadcast %135 : vector<1x32xf32> to vector<8x32xf32>
    %137 = arith.addf %133, %136 : vector<8x32xf32>
    %138 = arith.addf %3, %137 : vector<8x32xf32>
    %c0_63 = arith.constant 0 : index
    %c0_64 = arith.constant 0 : index
    %c0_65 = arith.constant 0 : index
    %139 = vector.load %arg14[%c0_63, %c0_64, %c0_65] : memref<1x1x32xf32, #tpu.memory_space<vmem>>, vector<1x1x32xf32>
    %140 = vector.shape_cast %139 : vector<1x1x32xf32> to vector<1x32xf32>
    %c0_66 = arith.constant 0 : index
    %c0_67 = arith.constant 0 : index
    %c0_68 = arith.constant 0 : index
    %141 = vector.load %arg15[%c0_66, %c0_67, %c0_68] : memref<1x1x32xf32, #tpu.memory_space<vmem>>, vector<1x1x32xf32>
    %142 = vector.shape_cast %141 : vector<1x1x32xf32> to vector<1x32xf32>
    %cst_69 = arith.constant dense<0.000000e+00> : vector<8xf32>
    %143 = vector.multi_reduction <add>, %138, %cst_69 [1] : vector<8x32xf32> to vector<8xf32>
    %144 = vector.shape_cast %143 : vector<8xf32> to vector<8x1xf32>
    %cst_70 = arith.constant 3.200000e+01 : f32
    %145 = vector.broadcast %cst_70 : f32 to vector<8x1xf32>
    %146 = arith.divf %144, %145 : vector<8x1xf32>
    %147 = vector.broadcast %146 : vector<8x1xf32> to vector<8x32xf32>
    %148 = arith.subf %138, %147 : vector<8x32xf32>
    %149 = arith.mulf %148, %148 : vector<8x32xf32>
    %cst_71 = arith.constant dense<0.000000e+00> : vector<8xf32>
    %150 = vector.multi_reduction <add>, %149, %cst_71 [1] : vector<8x32xf32> to vector<8xf32>
    %151 = vector.shape_cast %150 : vector<8xf32> to vector<8x1xf32>
    %cst_72 = arith.constant 0.0322580636 : f32
    %152 = vector.broadcast %cst_72 : f32 to vector<8x1xf32>
    %153 = arith.mulf %151, %152 : vector<8x1xf32>
    %154 = math.sqrt %153 : vector<8x1xf32>
    %cst_73 = arith.constant 9.99999997E-7 : f32
    %155 = vector.broadcast %cst_73 : f32 to vector<8x1xf32>
    %156 = arith.addf %154, %155 : vector<8x1xf32>
    %157 = vector.broadcast %156 : vector<8x1xf32> to vector<8x32xf32>
    %158 = arith.divf %148, %157 : vector<8x32xf32>
    %159 = vector.broadcast %140 : vector<1x32xf32> to vector<8x32xf32>
    %160 = arith.mulf %159, %158 : vector<8x32xf32>
    %161 = vector.broadcast %142 : vector<1x32xf32> to vector<8x32xf32>
    %162 = arith.addf %160, %161 : vector<8x32xf32>
    %163 = arith.truncf %162 : vector<8x32xf32> to vector<8x32xbf16>
    %c0_74 = arith.constant 0 : index
    %c0_75 = arith.constant 0 : index
    %c0_76 = arith.constant 0 : index
    %164 = vector.load %arg16[%c0_74, %c0_75, %c0_76] : memref<1x32x32xbf16, #tpu.memory_space<vmem>>, vector<1x32x32xbf16>
    %165 = vector.shape_cast %164 : vector<1x32x32xbf16> to vector<32x32xbf16>
    %cst_77 = arith.constant dense<0.000000e+00> : vector<8x32xf32>
    %166 = tpu.matmul %163, %165, %cst_77 {dimension_numbers = #tpu.dot_dimension_numbers<[1], [0], [0], [1], [0, 0, 1, 1], [], []>} : vector<8x32xbf16>, vector<32x32xbf16>, vector<8x32xf32> -> vector<8x32xf32>
    %c0_78 = arith.constant 0 : index
    %c0_79 = arith.constant 0 : index
    %c0_80 = arith.constant 0 : index
    %167 = vector.load %arg17[%c0_78, %c0_79, %c0_80] : memref<1x1x32xf32, #tpu.memory_space<vmem>>, vector<1x1x32xf32>
    %168 = vector.shape_cast %167 : vector<1x1x32xf32> to vector<1x32xf32>
    %169 = vector.broadcast %168 : vector<1x32xf32> to vector<8x32xf32>
    %170 = arith.addf %166, %169 : vector<8x32xf32>
    %171 = arith.truncf %9 : vector<8x32xf32> to vector<8x32xbf16>
    %c0_81 = arith.constant 0 : index
    %c0_82 = arith.constant 0 : index
    %c0_83 = arith.constant 0 : index
    %172 = vector.load %arg18[%c0_81, %c0_82, %c0_83] : memref<1x32x64xbf16, #tpu.memory_space<vmem>>, vector<1x32x64xbf16>
    %173 = vector.shape_cast %172 : vector<1x32x64xbf16> to vector<32x64xbf16>
    %cst_84 = arith.constant dense<0.000000e+00> : vector<8x64xf32>
    %174 = tpu.matmul %171, %173, %cst_84 {dimension_numbers = #tpu.dot_dimension_numbers<[1], [0], [0], [1], [0, 0, 1, 1], [], []>} : vector<8x32xbf16>, vector<32x64xbf16>, vector<8x64xf32> -> vector<8x64xf32>
    %c0_85 = arith.constant 0 : index
    %c0_86 = arith.constant 0 : index
    %c0_87 = arith.constant 0 : index
    %175 = vector.load %arg19[%c0_85, %c0_86, %c0_87] : memref<1x1x64xf32, #tpu.memory_space<vmem>>, vector<1x1x64xf32>
    %176 = vector.shape_cast %175 : vector<1x1x64xf32> to vector<1x64xf32>
    %177 = vector.broadcast %176 : vector<1x64xf32> to vector<8x64xf32>
    %178 = arith.addf %174, %177 : vector<8x64xf32>
    %179 = vector.extract_strided_slice %178 {offsets = [0, 0], sizes = [8, 32], strides = [1, 1]} : vector<8x64xf32> to vector<8x32xf32>
    %180 = vector.extract_strided_slice %178 {offsets = [0, 32], sizes = [8, 32], strides = [1, 1]} : vector<8x64xf32> to vector<8x32xf32>
    %181 = vector.extract_strided_slice %170 {offsets = [0, 0], sizes = [8, 8], strides = [1, 1]} : vector<8x32xf32> to vector<8x8xf32>
    %182 = vector.extract_strided_slice %179 {offsets = [0, 0], sizes = [8, 8], strides = [1, 1]} : vector<8x32xf32> to vector<8x8xf32>
    %183 = vector.extract_strided_slice %180 {offsets = [0, 0], sizes = [8, 8], strides = [1, 1]} : vector<8x32xf32> to vector<8x8xf32>
    "tpu.trace_start"() <{level = 10 : i32, message = "qd,kd->qk"}> : () -> ()
    %cst_88 = arith.constant dense<0.000000e+00> : vector<8x8xf32>
    %184 = tpu.matmul %181, %182, %cst_88 {dimension_numbers = #tpu.dot_dimension_numbers<[1], [1], [0], [0], [0, 0, 1, 0], [], []>} : vector<8x8xf32>, vector<8x8xf32>, vector<8x8xf32> -> vector<8x8xf32>
    "tpu.trace_stop"() : () -> ()
    %cst_89 = arith.constant 0.353553385 : f32
    %185 = vector.broadcast %cst_89 : f32 to vector<8x8xf32>
    %186 = arith.mulf %184, %185 : vector<8x8xf32>
    %c0_i32_90 = arith.constant 0 : i32
    %187 = vector.broadcast %c0_i32_90 : i32 to vector<1x8xi32>
    %188 = arith.cmpi eq, %5, %187 : vector<1x8xi32>
    %cst_91 = arith.constant -1.000000e+09 : f32
    %189 = vector.shape_cast %188 : vector<1x8xi1> to vector<1x8xi1>
    %190 = vector.broadcast %189 : vector<1x8xi1> to vector<8x8xi1>
    %191 = vector.broadcast %cst_91 : f32 to vector<8x8xf32>
    %192 = arith.select %190, %191, %186 : vector<8x8xi1>, vector<8x8xf32>
    %cst_92 = arith.constant dense<0xFF800000> : vector<8xf32>
    %193 = vector.multi_reduction <maximumf>, %192, %cst_92 [1] : vector<8x8xf32> to vector<8xf32>
    %194 = vector.shape_cast %193 : vector<8xf32> to vector<8x1xf32>
    %195 = vector.broadcast %194 : vector<8x1xf32> to vector<8x8xf32>
    %196 = arith.subf %192, %195 : vector<8x8xf32>
    %197 = math.exp %196 : vector<8x8xf32>
    %cst_93 = arith.constant dense<0.000000e+00> : vector<8xf32>
    %198 = vector.multi_reduction <add>, %197, %cst_93 [1] : vector<8x8xf32> to vector<8xf32>
    %199 = vector.shape_cast %198 : vector<8xf32> to vector<8x1xf32>
    %200 = tpu.reciprocal %199 {approx = true} : vector<8x1xf32> -> vector<8x1xf32>
    %201 = vector.broadcast %200 : vector<8x1xf32> to vector<8x8xf32>
    %202 = arith.mulf %197, %201 : vector<8x8xf32>
    %cst_94 = arith.constant dense<0.000000e+00> : vector<8x8xf32>
    %203 = tpu.matmul %202, %183, %cst_94 {dimension_numbers = #tpu.dot_dimension_numbers<[1], [0], [0], [1], [0, 0, 1, 1], [], []>} : vector<8x8xf32>, vector<8x8xf32>, vector<8x8xf32> -> vector<8x8xf32>
    %204 = vector.extract_strided_slice %170 {offsets = [0, 8], sizes = [8, 8], strides = [1, 1]} : vector<8x32xf32> to vector<8x8xf32>
    %205 = vector.extract_strided_slice %179 {offsets = [0, 8], sizes = [8, 8], strides = [1, 1]} : vector<8x32xf32> to vector<8x8xf32>
    %206 = vector.extract_strided_slice %180 {offsets = [0, 8], sizes = [8, 8], strides = [1, 1]} : vector<8x32xf32> to vector<8x8xf32>
    "tpu.trace_start"() <{level = 10 : i32, message = "qd,kd->qk"}> : () -> ()
    %cst_95 = arith.constant dense<0.000000e+00> : vector<8x8xf32>
    %207 = tpu.matmul %204, %205, %cst_95 {dimension_numbers = #tpu.dot_dimension_numbers<[1], [1], [0], [0], [0, 0, 1, 0], [], []>} : vector<8x8xf32>, vector<8x8xf32>, vector<8x8xf32> -> vector<8x8xf32>
    "tpu.trace_stop"() : () -> ()
    %cst_96 = arith.constant 0.353553385 : f32
    %208 = vector.broadcast %cst_96 : f32 to vector<8x8xf32>
    %209 = arith.mulf %207, %208 : vector<8x8xf32>
    %c0_i32_97 = arith.constant 0 : i32
    %210 = vector.broadcast %c0_i32_97 : i32 to vector<1x8xi32>
    %211 = arith.cmpi eq, %5, %210 : vector<1x8xi32>
    %cst_98 = arith.constant -1.000000e+09 : f32
    %212 = vector.shape_cast %211 : vector<1x8xi1> to vector<1x8xi1>
    %213 = vector.broadcast %212 : vector<1x8xi1> to vector<8x8xi1>
    %214 = vector.broadcast %cst_98 : f32 to vector<8x8xf32>
    %215 = arith.select %213, %214, %209 : vector<8x8xi1>, vector<8x8xf32>
    %cst_99 = arith.constant dense<0xFF800000> : vector<8xf32>
    %216 = vector.multi_reduction <maximumf>, %215, %cst_99 [1] : vector<8x8xf32> to vector<8xf32>
    %217 = vector.shape_cast %216 : vector<8xf32> to vector<8x1xf32>
    %218 = vector.broadcast %217 : vector<8x1xf32> to vector<8x8xf32>
    %219 = arith.subf %215, %218 : vector<8x8xf32>
    %220 = math.exp %219 : vector<8x8xf32>
    %cst_100 = arith.constant dense<0.000000e+00> : vector<8xf32>
    %221 = vector.multi_reduction <add>, %220, %cst_100 [1] : vector<8x8xf32> to vector<8xf32>
    %222 = vector.shape_cast %221 : vector<8xf32> to vector<8x1xf32>
    %223 = tpu.reciprocal %222 {approx = true} : vector<8x1xf32> -> vector<8x1xf32>
    %224 = vector.broadcast %223 : vector<8x1xf32> to vector<8x8xf32>
    %225 = arith.mulf %220, %224 : vector<8x8xf32>
    %cst_101 = arith.constant dense<0.000000e+00> : vector<8x8xf32>
    %226 = tpu.matmul %225, %206, %cst_101 {dimension_numbers = #tpu.dot_dimension_numbers<[1], [0], [0], [1], [0, 0, 1, 1], [], []>} : vector<8x8xf32>, vector<8x8xf32>, vector<8x8xf32> -> vector<8x8xf32>
    %227 = vector.extract_strided_slice %170 {offsets = [0, 16], sizes = [8, 8], strides = [1, 1]} : vector<8x32xf32> to vector<8x8xf32>
    %228 = vector.extract_strided_slice %179 {offsets = [0, 16], sizes = [8, 8], strides = [1, 1]} : vector<8x32xf32> to vector<8x8xf32>
    %229 = vector.extract_strided_slice %180 {offsets = [0, 16], sizes = [8, 8], strides = [1, 1]} : vector<8x32xf32> to vector<8x8xf32>
    "tpu.trace_start"() <{level = 10 : i32, message = "qd,kd->qk"}> : () -> ()
    %cst_102 = arith.constant dense<0.000000e+00> : vector<8x8xf32>
    %230 = tpu.matmul %227, %228, %cst_102 {dimension_numbers = #tpu.dot_dimension_numbers<[1], [1], [0], [0], [0, 0, 1, 0], [], []>} : vector<8x8xf32>, vector<8x8xf32>, vector<8x8xf32> -> vector<8x8xf32>
    "tpu.trace_stop"() : () -> ()
    %cst_103 = arith.constant 0.353553385 : f32
    %231 = vector.broadcast %cst_103 : f32 to vector<8x8xf32>
    %232 = arith.mulf %230, %231 : vector<8x8xf32>
    %c0_i32_104 = arith.constant 0 : i32
    %233 = vector.broadcast %c0_i32_104 : i32 to vector<1x8xi32>
    %234 = arith.cmpi eq, %5, %233 : vector<1x8xi32>
    %cst_105 = arith.constant -1.000000e+09 : f32
    %235 = vector.shape_cast %234 : vector<1x8xi1> to vector<1x8xi1>
    %236 = vector.broadcast %235 : vector<1x8xi1> to vector<8x8xi1>
    %237 = vector.broadcast %cst_105 : f32 to vector<8x8xf32>
    %238 = arith.select %236, %237, %232 : vector<8x8xi1>, vector<8x8xf32>
    %cst_106 = arith.constant dense<0xFF800000> : vector<8xf32>
    %239 = vector.multi_reduction <maximumf>, %238, %cst_106 [1] : vector<8x8xf32> to vector<8xf32>
    %240 = vector.shape_cast %239 : vector<8xf32> to vector<8x1xf32>
    %241 = vector.broadcast %240 : vector<8x1xf32> to vector<8x8xf32>
    %242 = arith.subf %238, %241 : vector<8x8xf32>
    %243 = math.exp %242 : vector<8x8xf32>
    %cst_107 = arith.constant dense<0.000000e+00> : vector<8xf32>
    %244 = vector.multi_reduction <add>, %243, %cst_107 [1] : vector<8x8xf32> to vector<8xf32>
    %245 = vector.shape_cast %244 : vector<8xf32> to vector<8x1xf32>
    %246 = tpu.reciprocal %245 {approx = true} : vector<8x1xf32> -> vector<8x1xf32>
    %247 = vector.broadcast %246 : vector<8x1xf32> to vector<8x8xf32>
    %248 = arith.mulf %243, %247 : vector<8x8xf32>
    %cst_108 = arith.constant dense<0.000000e+00> : vector<8x8xf32>
    %249 = tpu.matmul %248, %229, %cst_108 {dimension_numbers = #tpu.dot_dimension_numbers<[1], [0], [0], [1], [0, 0, 1, 1], [], []>} : vector<8x8xf32>, vector<8x8xf32>, vector<8x8xf32> -> vector<8x8xf32>
    %250 = vector.extract_strided_slice %170 {offsets = [0, 24], sizes = [8, 8], strides = [1, 1]} : vector<8x32xf32> to vector<8x8xf32>
    %251 = vector.extract_strided_slice %179 {offsets = [0, 24], sizes = [8, 8], strides = [1, 1]} : vector<8x32xf32> to vector<8x8xf32>
    %252 = vector.extract_strided_slice %180 {offsets = [0, 24], sizes = [8, 8], strides = [1, 1]} : vector<8x32xf32> to vector<8x8xf32>
    "tpu.trace_start"() <{level = 10 : i32, message = "qd,kd->qk"}> : () -> ()
    %cst_109 = arith.constant dense<0.000000e+00> : vector<8x8xf32>
    %253 = tpu.matmul %250, %251, %cst_109 {dimension_numbers = #tpu.dot_dimension_numbers<[1], [1], [0], [0], [0, 0, 1, 0], [], []>} : vector<8x8xf32>, vector<8x8xf32>, vector<8x8xf32> -> vector<8x8xf32>
    "tpu.trace_stop"() : () -> ()
    %cst_110 = arith.constant 0.353553385 : f32
    %254 = vector.broadcast %cst_110 : f32 to vector<8x8xf32>
    %255 = arith.mulf %253, %254 : vector<8x8xf32>
    %c0_i32_111 = arith.constant 0 : i32
    %256 = vector.broadcast %c0_i32_111 : i32 to vector<1x8xi32>
    %257 = arith.cmpi eq, %5, %256 : vector<1x8xi32>
    %cst_112 = arith.constant -1.000000e+09 : f32
    %258 = vector.shape_cast %257 : vector<1x8xi1> to vector<1x8xi1>
    %259 = vector.broadcast %258 : vector<1x8xi1> to vector<8x8xi1>
    %260 = vector.broadcast %cst_112 : f32 to vector<8x8xf32>
    %261 = arith.select %259, %260, %255 : vector<8x8xi1>, vector<8x8xf32>
    %cst_113 = arith.constant dense<0xFF800000> : vector<8xf32>
    %262 = vector.multi_reduction <maximumf>, %261, %cst_113 [1] : vector<8x8xf32> to vector<8xf32>
    %263 = vector.shape_cast %262 : vector<8xf32> to vector<8x1xf32>
    %264 = vector.broadcast %263 : vector<8x1xf32> to vector<8x8xf32>
    %265 = arith.subf %261, %264 : vector<8x8xf32>
    %266 = math.exp %265 : vector<8x8xf32>
    %cst_114 = arith.constant dense<0.000000e+00> : vector<8xf32>
    %267 = vector.multi_reduction <add>, %266, %cst_114 [1] : vector<8x8xf32> to vector<8xf32>
    %268 = vector.shape_cast %267 : vector<8xf32> to vector<8x1xf32>
    %269 = tpu.reciprocal %268 {approx = true} : vector<8x1xf32> -> vector<8x1xf32>
    %270 = vector.broadcast %269 : vector<8x1xf32> to vector<8x8xf32>
    %271 = arith.mulf %266, %270 : vector<8x8xf32>
    %cst_115 = arith.constant dense<0.000000e+00> : vector<8x8xf32>
    %272 = tpu.matmul %271, %252, %cst_115 {dimension_numbers = #tpu.dot_dimension_numbers<[1], [0], [0], [1], [0, 0, 1, 1], [], []>} : vector<8x8xf32>, vector<8x8xf32>, vector<8x8xf32> -> vector<8x8xf32>
    %273 = tpu.concatenate %203, %226, %249, %272 in 1 : vector<8x8xf32>, vector<8x8xf32>, vector<8x8xf32>, vector<8x8xf32> -> vector<8x32xf32>
    %274 = arith.truncf %273 : vector<8x32xf32> to vector<8x32xbf16>
    %c0_116 = arith.constant 0 : index
    %c0_117 = arith.constant 0 : index
    %c0_118 = arith.constant 0 : index
    %275 = vector.load %arg20[%c0_116, %c0_117, %c0_118] : memref<1x32x32xbf16, #tpu.memory_space<vmem>>, vector<1x32x32xbf16>
    %276 = vector.shape_cast %275 : vector<1x32x32xbf16> to vector<32x32xbf16>
    %cst_119 = arith.constant dense<0.000000e+00> : vector<8x32xf32>
    %277 = tpu.matmul %274, %276, %cst_119 {dimension_numbers = #tpu.dot_dimension_numbers<[1], [0], [0], [1], [0, 0, 1, 1], [], []>} : vector<8x32xbf16>, vector<32x32xbf16>, vector<8x32xf32> -> vector<8x32xf32>
    %c0_120 = arith.constant 0 : index
    %c0_121 = arith.constant 0 : index
    %c0_122 = arith.constant 0 : index
    %278 = vector.load %arg21[%c0_120, %c0_121, %c0_122] : memref<1x1x32xf32, #tpu.memory_space<vmem>>, vector<1x1x32xf32>
    %279 = vector.shape_cast %278 : vector<1x1x32xf32> to vector<1x32xf32>
    %280 = vector.broadcast %279 : vector<1x32xf32> to vector<8x32xf32>
    %281 = arith.addf %277, %280 : vector<8x32xf32>
    %282 = arith.addf %138, %281 : vector<8x32xf32>
    %c0_123 = arith.constant 0 : index
    %c0_124 = arith.constant 0 : index
    %c0_125 = arith.constant 0 : index
    %283 = vector.load %arg22[%c0_123, %c0_124, %c0_125] : memref<1x1x32xf32, #tpu.memory_space<vmem>>, vector<1x1x32xf32>
    %284 = vector.shape_cast %283 : vector<1x1x32xf32> to vector<1x32xf32>
    %c0_126 = arith.constant 0 : index
    %c0_127 = arith.constant 0 : index
    %c0_128 = arith.constant 0 : index
    %285 = vector.load %arg23[%c0_126, %c0_127, %c0_128] : memref<1x1x32xf32, #tpu.memory_space<vmem>>, vector<1x1x32xf32>
    %286 = vector.shape_cast %285 : vector<1x1x32xf32> to vector<1x32xf32>
    %cst_129 = arith.constant dense<0.000000e+00> : vector<8xf32>
    %287 = vector.multi_reduction <add>, %282, %cst_129 [1] : vector<8x32xf32> to vector<8xf32>
    %288 = vector.shape_cast %287 : vector<8xf32> to vector<8x1xf32>
    %cst_130 = arith.constant 3.200000e+01 : f32
    %289 = vector.broadcast %cst_130 : f32 to vector<8x1xf32>
    %290 = arith.divf %288, %289 : vector<8x1xf32>
    %291 = vector.broadcast %290 : vector<8x1xf32> to vector<8x32xf32>
    %292 = arith.subf %282, %291 : vector<8x32xf32>
    %293 = arith.mulf %292, %292 : vector<8x32xf32>
    %cst_131 = arith.constant dense<0.000000e+00> : vector<8xf32>
    %294 = vector.multi_reduction <add>, %293, %cst_131 [1] : vector<8x32xf32> to vector<8xf32>
    %295 = vector.shape_cast %294 : vector<8xf32> to vector<8x1xf32>
    %cst_132 = arith.constant 0.0322580636 : f32
    %296 = vector.broadcast %cst_132 : f32 to vector<8x1xf32>
    %297 = arith.mulf %295, %296 : vector<8x1xf32>
    %298 = math.sqrt %297 : vector<8x1xf32>
    %cst_133 = arith.constant 9.99999997E-7 : f32
    %299 = vector.broadcast %cst_133 : f32 to vector<8x1xf32>
    %300 = arith.addf %298, %299 : vector<8x1xf32>
    %301 = vector.broadcast %300 : vector<8x1xf32> to vector<8x32xf32>
    %302 = arith.divf %292, %301 : vector<8x32xf32>
    %303 = vector.broadcast %284 : vector<1x32xf32> to vector<8x32xf32>
    %304 = arith.mulf %303, %302 : vector<8x32xf32>
    %305 = vector.broadcast %286 : vector<1x32xf32> to vector<8x32xf32>
    %306 = arith.addf %304, %305 : vector<8x32xf32>
    %307 = arith.truncf %306 : vector<8x32xf32> to vector<8x32xbf16>
    %c0_134 = arith.constant 0 : index
    %c0_135 = arith.constant 0 : index
    %c0_136 = arith.constant 0 : index
    %308 = vector.load %arg24[%c0_134, %c0_135, %c0_136] : memref<1x32x64xbf16, #tpu.memory_space<vmem>>, vector<1x32x64xbf16>
    %309 = vector.shape_cast %308 : vector<1x32x64xbf16> to vector<32x64xbf16>
    %cst_137 = arith.constant dense<0.000000e+00> : vector<8x64xf32>
    %310 = tpu.matmul %307, %309, %cst_137 {dimension_numbers = #tpu.dot_dimension_numbers<[1], [0], [0], [1], [0, 0, 1, 1], [], []>} : vector<8x32xbf16>, vector<32x64xbf16>, vector<8x64xf32> -> vector<8x64xf32>
    %c0_138 = arith.constant 0 : index
    %c0_139 = arith.constant 0 : index
    %c0_140 = arith.constant 0 : index
    %311 = vector.load %arg25[%c0_138, %c0_139, %c0_140] : memref<1x1x64xf32, #tpu.memory_space<vmem>>, vector<1x1x64xf32>
    %312 = vector.shape_cast %311 : vector<1x1x64xf32> to vector<1x64xf32>
    %313 = vector.broadcast %312 : vector<1x64xf32> to vector<8x64xf32>
    %314 = arith.addf %310, %313 : vector<8x64xf32>
    %cst_141 = arith.constant 0.000000e+00 : f32
    %315 = vector.broadcast %cst_141 : f32 to vector<8x64xf32>
    %316 = arith.maximumf %314, %315 : vector<8x64xf32>
    %317 = arith.truncf %316 : vector<8x64xf32> to vector<8x64xbf16>
    %c0_142 = arith.constant 0 : index
    %c0_143 = arith.constant 0 : index
    %c0_144 = arith.constant 0 : index
    %318 = vector.load %arg26[%c0_142, %c0_143, %c0_144] : memref<1x64x32xbf16, #tpu.memory_space<vmem>>, vector<1x64x32xbf16>
    %319 = vector.shape_cast %318 : vector<1x64x32xbf16> to vector<64x32xbf16>
    %cst_145 = arith.constant dense<0.000000e+00> : vector<8x32xf32>
    %320 = tpu.matmul %317, %319, %cst_145 {dimension_numbers = #tpu.dot_dimension_numbers<[1], [0], [0], [1], [0, 0, 1, 1], [], []>} : vector<8x64xbf16>, vector<64x32xbf16>, vector<8x32xf32> -> vector<8x32xf32>
    %c0_146 = arith.constant 0 : index
    %c0_147 = arith.constant 0 : index
    %c0_148 = arith.constant 0 : index
    %321 = vector.load %arg27[%c0_146, %c0_147, %c0_148] : memref<1x1x32xf32, #tpu.memory_space<vmem>>, vector<1x1x32xf32>
    %322 = vector.shape_cast %321 : vector<1x1x32xf32> to vector<1x32xf32>
    %323 = vector.broadcast %322 : vector<1x32xf32> to vector<8x32xf32>
    %324 = arith.addf %320, %323 : vector<8x32xf32>
    %325 = arith.addf %282, %324 : vector<8x32xf32>
    %c0_149 = arith.constant 0 : index
    %c0_150 = arith.constant 0 : index
    %326 = vector.load %arg31[%c0_149, %c0_150] : memref<8x32xf32, #tpu.memory_space<vmem>>, vector<8x32xf32>
    tpu.vector_store %arg31[%c0_149, %c0_150], %325 {strides = array<i32>} : memref<8x32xf32, #tpu.memory_space<vmem>>, vector<8x32xf32>,
    %c1_i32 = arith.constant 1 : i32
    %327 = arith.cmpi eq, %arg1, %c1_i32 : i32
    %328 = arith.extui %327 : i1 to i32
    %c0_i32_151 = arith.constant 0 : i32
    %329 = arith.cmpi ne, %328, %c0_i32_151 : i32
    scf.if %329 {
      %c0_152 = arith.constant 0 : index
      %c0_153 = arith.constant 0 : index
      %330 = vector.load %arg28[%c0_152, %c0_153] : memref<1x32xf32, #tpu.memory_space<vmem>>, vector<1x32xf32>
      %c0_154 = arith.constant 0 : index
      %c0_155 = arith.constant 0 : index
      %331 = vector.load %arg29[%c0_154, %c0_155] : memref<1x32xf32, #tpu.memory_space<vmem>>, vector<1x32xf32>
      %cst_156 = arith.constant dense<0.000000e+00> : vector<8xf32>
      %332 = vector.multi_reduction <add>, %325, %cst_156 [1] : vector<8x32xf32> to vector<8xf32>
      %333 = vector.shape_cast %332 : vector<8xf32> to vector<8x1xf32>
      %cst_157 = arith.constant 3.200000e+01 : f32
      %334 = vector.broadcast %cst_157 : f32 to vector<8x1xf32>
      %335 = arith.divf %333, %334 : vector<8x1xf32>
      %336 = vector.broadcast %335 : vector<8x1xf32> to vector<8x32xf32>
      %337 = arith.subf %325, %336 : vector<8x32xf32>
      %338 = arith.mulf %337, %337 : vector<8x32xf32>
      %cst_158 = arith.constant dense<0.000000e+00> : vector<8xf32>
      %339 = vector.multi_reduction <add>, %338, %cst_158 [1] : vector<8x32xf32> to vector<8xf32>
      %340 = vector.shape_cast %339 : vector<8xf32> to vector<8x1xf32>
      %cst_159 = arith.constant 0.0322580636 : f32
      %341 = vector.broadcast %cst_159 : f32 to vector<8x1xf32>
      %342 = arith.mulf %340, %341 : vector<8x1xf32>
      %343 = math.sqrt %342 : vector<8x1xf32>
      %cst_160 = arith.constant 9.99999997E-7 : f32
      %344 = vector.broadcast %cst_160 : f32 to vector<8x1xf32>
      %345 = arith.addf %343, %344 : vector<8x1xf32>
      %346 = vector.broadcast %345 : vector<8x1xf32> to vector<8x32xf32>
      %347 = arith.divf %337, %346 : vector<8x32xf32>
      %348 = vector.broadcast %330 : vector<1x32xf32> to vector<8x32xf32>
      %349 = arith.mulf %348, %347 : vector<8x32xf32>
      %350 = vector.broadcast %331 : vector<1x32xf32> to vector<8x32xf32>
      %351 = arith.addf %349, %350 : vector<8x32xf32>
      %c0_161 = arith.constant 0 : index
      %c0_162 = arith.constant 0 : index
      %c0_163 = arith.constant 0 : index
      %352 = vector.load %arg30[%c0_161, %c0_162, %c0_163] : memref<1x8x32xf32, #tpu.memory_space<vmem>>, vector<1x8x32xf32>
      %353 = vector.shape_cast %352 : vector<1x8x32xf32> to vector<8x32xf32>
      %354 = vector.shape_cast %351 : vector<8x32xf32> to vector<1x8x32xf32>
      tpu.vector_store %arg30[%c0_161, %c0_162, %c0_163], %354 {strides = array<i32>} : memref<1x8x32xf32, #tpu.memory_space<vmem>>, vector<1x8x32xf32>,
    } else {
    }
    return
  }
  func.func @transform_0(%arg0: i32, %arg1: i32) -> (i32, i32, i32) {
    %c0_i32 = arith.constant 0 : i32
    %c0_i32_0 = arith.constant 0 : i32
    %c0_i32_1 = arith.constant 0 : i32
    return %arg0, %c0_i32, %c0_i32_0 : i32, i32, i32
  }
  func.func @transform_1(%arg0: i32, %arg1: i32) -> (i32, i32) {
    %c0_i32 = arith.constant 0 : i32
    %c0_i32_0 = arith.constant 0 : i32
    %c0_i32_1 = arith.constant 0 : i32
    return %c0_i32, %c0_i32_0 : i32, i32
  }
  func.func @transform_2(%arg0: i32, %arg1: i32) -> (i32, i32) {
    %c0_i32 = arith.constant 0 : i32
    %c0_i32_0 = arith.constant 0 : i32
    %c0_i32_1 = arith.constant 0 : i32
    return %c0_i32, %c0_i32_0 : i32, i32
  }
  func.func @transform_3(%arg0: i32, %arg1: i32) -> (i32, i32, i32) {
    %c0_i32 = arith.constant 0 : i32
    %c0_i32_0 = arith.constant 0 : i32
    %c0_i32_1 = arith.constant 0 : i32
    return %arg0, %c0_i32, %c0_i32_0 : i32, i32, i32
  }
  func.func @transform_4(%arg0: i32, %arg1: i32) -> (i32, i32, i32) {
    %c0_i32 = arith.constant 0 : i32
    %c0_i32_0 = arith.constant 0 : i32
    %c0_i32_1 = arith.constant 0 : i32
    return %arg0, %c0_i32, %c0_i32_0 : i32, i32, i32
  }
  func.func @transform_5(%arg0: i32, %arg1: i32) -> (i32, i32, i32) {
    %c0_i32 = arith.constant 0 : i32
    %c0_i32_0 = arith.constant 0 : i32
    %c0_i32_1 = arith.constant 0 : i32
    return %arg0, %c0_i32, %c0_i32_0 : i32, i32, i32
  }
  func.func @transform_6(%arg0: i32, %arg1: i32) -> (i32, i32, i32) {
    %c0_i32 = arith.constant 0 : i32
    %c0_i32_0 = arith.constant 0 : i32
    %c0_i32_1 = arith.constant 0 : i32
    return %arg1, %c0_i32, %c0_i32_0 : i32, i32, i32
  }
  func.func @transform_7(%arg0: i32, %arg1: i32) -> (i32, i32, i32) {
    %c0_i32 = arith.constant 0 : i32
    %c0_i32_0 = arith.constant 0 : i32
    %c0_i32_1 = arith.constant 0 : i32
    return %arg1, %c0_i32, %c0_i32_0 : i32, i32, i32
  }
  func.func @transform_8(%arg0: i32, %arg1: i32) -> (i32, i32, i32) {
    %c0_i32 = arith.constant 0 : i32
    %c0_i32_0 = arith.constant 0 : i32
    %c0_i32_1 = arith.constant 0 : i32
    return %arg1, %c0_i32, %c0_i32_0 : i32, i32, i32
  }
  func.func @transform_9(%arg0: i32, %arg1: i32) -> (i32, i32, i32) {
    %c0_i32 = arith.constant 0 : i32
    %c0_i32_0 = arith.constant 0 : i32
    %c0_i32_1 = arith.constant 0 : i32
    return %arg1, %c0_i32, %c0_i32_0 : i32, i32, i32
  }
  func.func @transform_10(%arg0: i32, %arg1: i32) -> (i32, i32, i32) {
    %c0_i32 = arith.constant 0 : i32
    %c0_i32_0 = arith.constant 0 : i32
    %c0_i32_1 = arith.constant 0 : i32
    return %arg1, %c0_i32, %c0_i32_0 : i32, i32, i32
  }
  func.func @transform_11(%arg0: i32, %arg1: i32) -> (i32, i32, i32) {
    %c0_i32 = arith.constant 0 : i32
    %c0_i32_0 = arith.constant 0 : i32
    %c0_i32_1 = arith.constant 0 : i32
    return %arg1, %c0_i32, %c0_i32_0 : i32, i32, i32
  }
  func.func @transform_12(%arg0: i32, %arg1: i32) -> (i32, i32, i32) {
    %c0_i32 = arith.constant 0 : i32
    %c0_i32_0 = arith.constant 0 : i32
    %c0_i32_1 = arith.constant 0 : i32
    return %arg1, %c0_i32, %c0_i32_0 : i32, i32, i32
  }
  func.func @transform_13(%arg0: i32, %arg1: i32) -> (i32, i32, i32) {
    %c0_i32 = arith.constant 0 : i32
    %c0_i32_0 = arith.constant 0 : i32
    %c0_i32_1 = arith.constant 0 : i32
    return %arg1, %c0_i32, %c0_i32_0 : i32, i32, i32
  }
  func.func @transform_14(%arg0: i32, %arg1: i32) -> (i32, i32, i32) {
    %c0_i32 = arith.constant 0 : i32
    %c0_i32_0 = arith.constant 0 : i32
    %c0_i32_1 = arith.constant 0 : i32
    return %arg1, %c0_i32, %c0_i32_0 : i32, i32, i32
  }
  func.func @transform_15(%arg0: i32, %arg1: i32) -> (i32, i32, i32) {
    %c0_i32 = arith.constant 0 : i32
    %c0_i32_0 = arith.constant 0 : i32
    %c0_i32_1 = arith.constant 0 : i32
    return %arg1, %c0_i32, %c0_i32_0 : i32, i32, i32
  }
  func.func @transform_16(%arg0: i32, %arg1: i32) -> (i32, i32, i32) {
    %c0_i32 = arith.constant 0 : i32
    %c0_i32_0 = arith.constant 0 : i32
    %c0_i32_1 = arith.constant 0 : i32
    return %arg1, %c0_i32, %c0_i32_0 : i32, i32, i32
  }
  func.func @transform_17(%arg0: i32, %arg1: i32) -> (i32, i32, i32) {
    %c0_i32 = arith.constant 0 : i32
    %c0_i32_0 = arith.constant 0 : i32
    %c0_i32_1 = arith.constant 0 : i32
    return %arg1, %c0_i32, %c0_i32_0 : i32, i32, i32
  }
  func.func @transform_18(%arg0: i32, %arg1: i32) -> (i32, i32, i32) {
    %c0_i32 = arith.constant 0 : i32
    %c0_i32_0 = arith.constant 0 : i32
    %c0_i32_1 = arith.constant 0 : i32
    return %arg1, %c0_i32, %c0_i32_0 : i32, i32, i32
  }
  func.func @transform_19(%arg0: i32, %arg1: i32) -> (i32, i32, i32) {
    %c0_i32 = arith.constant 0 : i32
    %c0_i32_0 = arith.constant 0 : i32
    %c0_i32_1 = arith.constant 0 : i32
    return %arg1, %c0_i32, %c0_i32_0 : i32, i32, i32
  }
  func.func @transform_20(%arg0: i32, %arg1: i32) -> (i32, i32, i32) {
    %c0_i32 = arith.constant 0 : i32
    %c0_i32_0 = arith.constant 0 : i32
    %c0_i32_1 = arith.constant 0 : i32
    return %arg1, %c0_i32, %c0_i32_0 : i32, i32, i32
  }
  func.func @transform_21(%arg0: i32, %arg1: i32) -> (i32, i32, i32) {
    %c0_i32 = arith.constant 0 : i32
    %c0_i32_0 = arith.constant 0 : i32
    %c0_i32_1 = arith.constant 0 : i32
    return %arg1, %c0_i32, %c0_i32_0 : i32, i32, i32
  }
  func.func @transform_22(%arg0: i32, %arg1: i32) -> (i32, i32, i32) {
    %c0_i32 = arith.constant 0 : i32
    %c0_i32_0 = arith.constant 0 : i32
    %c0_i32_1 = arith.constant 0 : i32
    return %arg1, %c0_i32, %c0_i32_0 : i32, i32, i32
  }
  func.func @transform_23(%arg0: i32, %arg1: i32) -> (i32, i32, i32) {
    %c0_i32 = arith.constant 0 : i32
    %c0_i32_0 = arith.constant 0 : i32
    %c0_i32_1 = arith.constant 0 : i32
    return %arg1, %c0_i32, %c0_i32_0 : i32, i32, i32
  }
  func.func @transform_24(%arg0: i32, %arg1: i32) -> (i32, i32, i32) {
    %c0_i32 = arith.constant 0 : i32
    %c0_i32_0 = arith.constant 0 : i32
    %c0_i32_1 = arith.constant 0 : i32
    return %arg1, %c0_i32, %c0_i32_0 : i32, i32, i32
  }
  func.func @transform_25(%arg0: i32, %arg1: i32) -> (i32, i32, i32) {
    %c0_i32 = arith.constant 0 : i32
    %c0_i32_0 = arith.constant 0 : i32
    %c0_i32_1 = arith.constant 0 : i32
    return %arg1, %c0_i32, %c0_i32_0 : i32, i32, i32
  }
  func.func @transform_26(%arg0: i32, %arg1: i32) -> (i32, i32) {
    %c0_i32 = arith.constant 0 : i32
    %c0_i32_0 = arith.constant 0 : i32
    %c0_i32_1 = arith.constant 0 : i32
    return %c0_i32, %c0_i32_0 : i32, i32
  }
  func.func @transform_27(%arg0: i32, %arg1: i32) -> (i32, i32) {
    %c0_i32 = arith.constant 0 : i32
    %c0_i32_0 = arith.constant 0 : i32
    %c0_i32_1 = arith.constant 0 : i32
    return %c0_i32, %c0_i32_0 : i32, i32
  }
  func.func @transform_28(%arg0: i32, %arg1: i32) -> (i32, i32, i32) {
    %c0_i32 = arith.constant 0 : i32
    %c0_i32_0 = arith.constant 0 : i32
    %c0_i32_1 = arith.constant 0 : i32
    return %arg0, %c0_i32, %c0_i32_0 : i32, i32, i32
  }
}

</mosaic_0001>

<bundles_post_ra>
// kernel: encoder_decoder_forward.2
= control target key start
LH: loop header
LB: loop body
LE: loop exit
PB: predicated region body
PF: predicated region fallthrough
CT: control target
= control target key end

     0   :  { %s2609_s27 = smov 0   ;;  %s2611_s28 = smov 0   ;;  %s2909_s0 = inlined_call_operand.vmem [shape: s32[2,8,1], index: 0, kind: input, shape index: {}]   ;;  %s2910_s1 = inlined_call_operand.vmem [shape: f32[16,32], index: 1, kind: input, shape index: {}]   ;;  %s2911_s2 = inlined_call_operand.vmem [shape: f32[8,32], index: 2, kind: input, shape index: {}]   ;;  %s2912_s3 = inlined_call_operand.vmem [shape: s32[2,1,8], index: 3, kind: input, shape index: {}]   ;;  %s2913_s4 = inlined_call_operand.vmem [shape: f32[2,1,32], index: 4, kind: input, shape index: {}]   ;;  %s2914_s5 = inlined_call_operand.vmem [shape: f32[2,1,32], index: 5, kind: input, shape index: {}]   ;;  %s2915_s6 = inlined_call_operand.vmem [shape: bf16[2,32,96], index: 6, kind: input, shape index: {}]   ;;  %s2916_s7 = inlined_call_operand.vmem [shape: f32[2,1,96], index: 7, kind: input, shape index: {}]   ;;  %s2917_s8 = inlined_call_operand.vmem [shape: bf16[2,32,32], index: 8, kind: input, shape index: {}]   ;;  %s2918_s9 = inlined_call_operand.vmem [shape: f32[2,1,32], index: 9, kind: input, shape index: {}]   ;;  %s2919_s10 = inlined_call_operand.vmem [shape: f32[2,1,32], index: 10, kind: input, shape index: {}]   ;;  %s2920_s11 = inlined_call_operand.vmem [shape: f32[2,1,32], index: 11, kind: input, shape index: {}]   ;;  %s2921_s12 = inlined_call_operand.vmem [shape: bf16[2,32,64], index: 12, kind: input, shape index: {}]   ;;  %s2922_s13 = inlined_call_operand.vmem [shape: f32[2,1,64], index: 13, kind: input, shape index: {}]   ;;  %s2923_s14 = inlined_call_operand.vmem [shape: bf16[2,64,32], index: 14, kind: input, shape index: {}]   ;;  %s2924_s15 = inlined_call_operand.vmem [shape: f32[2,1,32], index: 15, kind: input, shape index: {}]   ;;  %s2925_s16 = inlined_call_operand.vmem [shape: f32[1,32], index: 16, kind: input, shape index: {}]   ;;  %s2926_s17 = inlined_call_operand.vmem [shape: f32[1,32], index: 17, kind: input, shape index: {}]   ;;  %s2927_s18 = inlined_call_operand.vmem [shape: f32[2,8,32], index: 18, kind: output, shape index: {}]  }
   0x1   :  { %2933 = sst [smem:[#allocation9_spill]] %s2909_s0  ;;  %s2613_s29 = smov 0  }
   0x2   :  { %2934 = sst [smem:[#allocation10_spill]] %s2910_s1  ;;  %s2615_s30 = smov 0  }
   0x3   :  { %2935 = sst [smem:[#allocation11_spill]] %s2911_s2  ;;  %s2617_s0 = smov 0  }
   0x4   :  { %2936 = sst [smem:[#allocation12_spill]] %s2912_s3 }
   0x5   :  { %2937 = sst [smem:[#allocation13_spill]] %s2915_s6 }
   0x6   :  { %2938 = sst [smem:[#allocation14_spill]] %s2917_s8 }
   0x7   :  { %2939 = sst [smem:[#allocation15_spill]] %s2918_s9 }
   0x8   :  { %2940 = sst [smem:[#allocation16_spill]] %s2919_s10 }
   0x9   :  { %2941 = sst [smem:[#allocation17_spill]] %s2923_s14 }
   0xa   :  { %2942 = sst [smem:[#allocation18_spill]] %s2924_s15 }
   0xb   :  { %2943 = sst [smem:[#allocation19_spill]] %s2925_s16 }
   0xc   :  { %2944 = sst [smem:[#allocation20_spill]] %s2926_s17 }
   0xd   :  { %2945 = sst [smem:[#allocation21_spill]] %s2927_s18 }
   0xe LB: > { %2946 = sst [smem:[#allocation3_spill]] %s2475_s27  ;;  %s37_s19 = sadd.s32 1, %s2483_s29  ;;  %s2491_s0 = sphi %s2617_s0, %s28_s0   ;;  %s2487_s30 = sphi %s2615_s30, %s2982_s30   ;;  %s2483_s29 = sphi %s2613_s29, %s2981_s29   ;;  %s2479_s28 = sphi %s2611_s28, %s2980_s28   ;;  %s2475_s27 = sphi %s2609_s27, %s2979_s27  }
   0xf   : > { %2947 = sst [smem:[#allocation4_spill]] %s2483_s29  ;;  %s40_s1 = sadd.s32 1, %s2487_s30 }
  0x10   : > { %2948 = sst [smem:[#allocation5_spill]] %s2487_s30  ;;  %p38_p0 = scmp.ge.s32.totalorder %s37_s19, 2 }
  0x11   : > { %2949 = sst [smem:[#allocation6_spill]] %s2491_s0  ;;  %p2178_p1 = scmp.ge.s32.totalorder %s2491_s0, 1 }
  0x12   : > { %p635_p2 = scmp.lt.s32.totalorder %s2491_s0, 5  ;;  %s2984_s19 = smov (%p38_p0, %s37_s19), 0 }
  0x13   : > { %2950 = sst [smem:[#allocation7_spill]] %s2984_s19  ;;  %s2986_s1 = smov (!%p38_p0, %s40_s1), %s2487_s30 }
  0x14   : > { %p636_p3 = pnand %p2178_p1, %p635_p2  ;;  %p42_p4 = scmp.ge.s32.totalorder %s2986_s1, 2 }
  0x15   : > { %p734_p5 = scmp.lt.s32.totalorder (!%p636_p3), %s2479_s28, 1  ;;  %p741_p6 = scmp.lt.s32.totalorder (!%p636_p3), %s2475_s27, 1 }
  0x16   : > { %s2988_s1 = smov (%p42_p4, %s2986_s1), 0  ;;  %639 = sbr.rel (%p636_p3) target bundleno = 3771 (0xebb), region = 92 }
  0x17   : > { %2951 = sst [smem:[#allocation8_spill]] %s2988_s1  ;;  %s2953_s26 = sld [smem:[#allocation9_spill]] (!%p636_p3) }
  0x18   : > { %s2954_s6 = sld [smem:[#allocation13_spill]] (!%p636_p3)  ;;  %s2955_s8 = sld [smem:[#allocation14_spill]] (!%p636_p3) }
  0x19   : > { %s2958_s17 = sld [smem:[#allocation18_spill]] (!%p636_p3)  ;;  %s2959_s29 = sld [smem:[#allocation17_spill]] (!%p636_p3) }
  0x1d   : > { %s2990_s28 = smov (!%p734_p5, %s2479_s28), 1 }
  0x1e   : > { %s2645_s20 = scalar_select %p741_p6, %s2475_s27, 1 }
  0x1f   : > { %s2179_s21 = sshll.u32 %s2990_s28, 3 }
  0x20   : > { %s737_s1 = scalar_lea.vmem %s2953_s26, %s2179_s21  ;;  %s2230_s27 = sshll.u32 %s2645_s20, 4 }
  0x21   : > { %s2667_s15 = scalar_lea.vmem %s2954_s6, %s2230_s27  ;;  %s2676_s26 = scalar_lea.vmem %s2955_s8, %s2230_s27 }
  0x22   : > { %s2693_s2 = scalar_lea.vmem %s2921_s12, %s2230_s27  ;;  %s776_s23 = scalar_lea.vmem %s2922_s13, %s2645_s20 }
  0x23   : > { %s2233_s8 = sshll.u32 %s2645_s20, 5  ;;  %s784_s9 = scalar_lea.vmem %s2958_s17, %s2645_s20 }
  0x24   : > { %s2707_s10 = scalar_lea.vmem %s2959_s29, %s2233_s8  ;;  %s2960_s6 = sld [smem:[#allocation21_spill]] }
  0x25   : > { %s2961_s27 = sld [smem:[#allocation3_spill]] }
  0x2a   : > { %s2712_s3 = scalar_lea.vmem %s2960_s6, %s2179_s21 }
  0x2b   : > { %p2189_p7 = scmp.ne.s32.totalorder %s2961_s27, 0 }
  0x2c   : > { %v794_v0 = vld [vmem:[%s737_s1] sm:$0xff] (!%p2189_p7)  ;;  %s2962_s25 = sld [smem:[#allocation10_spill]] (!%p2189_p7)  ;;  %v2493_v3 = vmov (!%p2189_p7), 0   ;;  %v2494_v4 = vmov (!%p2189_p7), 0.0|0.0   ;;  %vm2495_vm0 = vmmov (!%p2189_p7), 0   ;;  %v2496_v6 = vmov (!%p2189_p7), 0.0  }
  0x2d   : > { %793 = sbr.rel (%p2189_p7) target bundleno = 393 (0x189), region = 96  ;;  %2414 = vset.pattern.permute.xlu0 (!%p2189_p7), %v2493_v3  ;;  %2350 = vmatprep.subr.bf16.mxu0 (!%p2189_p7), %v2494_v4  ;;  %v795_v7 = vlaneseq (!%p2189_p7)  ;;  %vm804_vm1 = vcmask (!%p2189_p7), 130048   ;;  %s2963_s29 = sld [smem:[#allocation11_spill]] (!%p2189_p7)  ;;  %vm881_vm3 = vcmask (!%p2189_p7), 261120  }
  0x2e   : > { %798 = vperm.xlu0 (!%p2189_p7), %2414, %v794_v0   ;;  %2271 = vmatprep.mubr.msk.f32.mxu0 (!%p2189_p7), %vm2495_vm0, %v2496_v6 }
  0x2f   : > { %v796_v8 = vand.u32 (!%p2189_p7), 127, %v795_v7 }
  0x32   : > { %v802_v1 = vld [vmem:[%s2962_s25] sm:$0xff] (!%p2189_p7)  ;;  %v803_v2 = vld [vmem:[%s2962_s25 + $0x8] sm:$0xff] (!%p2189_p7) }
  0x33   : > { %v2351_v5 = vpack.c.bf16 (!%p2189_p7), %v803_v2, %v802_v1  ;;  %v879_v12 = vld [vmem:[%s2963_s29] sm:$0xff] (!%p2189_p7) }
  0x35   : > { %2352 = vmatpush3.bf16.msra.mxu0 %v2351_v5 }
  0xad   : > { %v799_v9 = vpop.permute.xlu0 %798 }
  0xae   : > { %vm800_vm2 = vcmp.eq.s32.totalorder %v796_v8, %v799_v9 }
  0xaf   : > { %v801_v10 = vsel %vm800_vm2, 1.0, %v2496_v6 }
  0xb0   : > { %2272 = vmatmul.mubr.msk.f32.vlgmr.msra.gmra.mrb[0].mxu0 %vm804_vm1, %v801_v10 }
 0x183   : > { %v874_v11 = vpop.f32.mrb[0].mxu0 }
 0x184   : > { %v878_v13 = vmul.f32 5.656854, %v874_v11  ;;  %v2273_v14 = vpop.f32.mrb[1].mxu0 }
 0x186   : > { %v880_v15 = vadd.f32 %v879_v12, %v878_v13 }
 0x188   : > { %882 = vst.msk [vmem:[#allocation2] sm:$0xff] %vm881_vm3, %v880_v15 }
 0x189 PF: > { %vm887_vm4 = vcmask 261120   ;;  %v2415_v23 = vld [vmem:[%s2667_s15] sm:$0xff]   ;;  %v2497_v24 = vmov 0.0   ;;  %vm2498_vm5 = vmmov 0   ;;  %v2416_v25 = vld [vmem:[%s2667_s15 + $0x8] sm:$0xff]   ;;  %s2964_s21 = scalar_lea.vmem %s2913_s4, %s2645_s20  ;;  %s2965_s0 = scalar_lea.vmem %s2914_s5, %s2645_s20  ;;  %vm993_vm8 = vcmask 64512  }
 0x18a   : > { %2274 = vmatprep.subr.bf16.mxu0 %v2497_v24  ;;  %2278 = vmatprep.mubr.msk.bf16.mxu0 %vm2498_vm5, %v2497_v24  ;;  %v2191_v35 = vld [vmem:[%s2964_s21] ss:$0 sm:$0xff]  ;;  %s2966_s27 = scalar_lea.vmem %s2916_s7, %s2645_s20  ;;  %s2499_s22 = smov 64   ;;  %v1071_v49 = vlaneseq  ;;  %v2503_v53 = vmov 0   ;;  %vm1678_vm11 = vcmask 130048   ;;  %vm1680_vm12 = vcmask 195584  }
 0x18b   : > { %2275 = vmatpush3.bf16.msra.mxu0 %v2415_v23  ;;  %2287 = vmatprep.subr.mxu1 %v2497_v24  ;;  %v2192_v37 = vld [vmem:[%s2965_s0] ss:$0 sm:$0xff]  ;;  %s2500_s24 = smov 96   ;;  %s2501_s30 = smov 88   ;;  %vm1894_vm15 = vcmask 523264  }
 0x18c   : > { %2276 = vmatprep.subr.bf16.mxu0 %v2497_v24  ;;  %2289 = vmatprep.mubr.msk.f32.mxu1 %vm2498_vm5, %v2497_v24  ;;  %v2193_v41 = vld [vmem:[%s2966_s27] ss:$0 sm:$0xff]  ;;  %s2502_s17 = smov 120   ;;  %s2967_s29 = sld [smem:[#allocation12_spill]]  ;;  %v1072_v51 = vshrl.u32 %v1071_v49, 7 }
 0x18d   : > { %s2505_s1 = smov 112   ;;  %s2506_s21 = smov 72  }
 0x18e   : > { %v1073_v52 = vsub.s32 0, %v1072_v51  ;;  %s2507_s19 = smov 104   ;;  %s2508_s16 = smov 48  }
 0x18f   : > { %v2724_v16 = vld [vmem:[#allocation2] sm:$0xff]  ;;  %2277 = vmatpush3.bf16.msra.mxu0 %v2416_v25  ;;  %s2509_s0 = smov 40   ;;  %s2510_s14 = smov 56  }
 0x190   : > { %v888_v17 = vsel %vm887_vm4, %v2724_v16, 0.0  ;;  %2282 = vmatprep.subr.mxu0 %v2497_v24  ;;  %s2511_s18 = smov 8   ;;  %s2512_s27 = smov 16  }
 0x191   : > { %889 = vadd.xlane.f32.xlu0 %v888_v17  ;;  %s2971_s8 = sld [smem:[#allocation16_spill]] }
 0x192   : > { %s2968_s15 = scalar_lea.vmem %s2967_s29, %s2990_s28  ;;  %s2504_s28 = smov 80  }
 0x193   : > { %v884_v50 = vld [vmem:[%s2968_s15] sm:$0x1] }
 0x194   : > { %vm1069_vm9 = vcmp.eq.s32.totalorder %v884_v50, 0 }
 0x195   : > { %v1070_v54 = vsel %vm1069_vm9, 1, %v2503_v53 }
 0x196   : > { %v2776_v55 = vrot.slane %v1070_v54, %v1073_v52 }
 0x197   : > { %s2972_s29 = scalar_lea.vmem %s2971_s8, %s2645_s20 }
 0x198   : > { %vm1075_vm10 = vcmp.eq.s32.totalorder %v2776_v55, 1 }
 0x21e   : > { %v890_v18 = vpop.xlane.xlu0 %889 }
 0x21f   : > { %v892_v19 = vmul.f32 0.03125, %v890_v18 }
 0x221   : > { %v893_v20 = vsub.f32 %v2724_v16, %v892_v19 }
 0x223   : > { %v894_v21 = vmul.f32 %v893_v20, %v893_v20 }
 0x225   : > { %v895_v22 = vsel %vm887_vm4, %v894_v21, 0.0 }
 0x226   : > { %896 = vadd.xlane.f32.xlu0 %v895_v22 }
 0x2b3   : > { %v897_v26 = vpop.xlane.xlu0 %896 }
 0x2b4   : > { %v898_v27 = vmul.f32 0.032258064, %v897_v26 }
 0x2b6   : > { %2425 = vrsqrt.f32 %v898_v27  ;;  %vm901_vm6 = vcmp.eq.f32.partialorder %v898_v27, inf  ;;  %v904_v30 = vand.u32 2147483648, %v898_v27  ;;  %vm903_vm7 = vcmp.eq.f32.partialorder %v898_v27, 0.0 }
 0x2c0   : > { %v2426_v28 = vpop.eup %2425 }
 0x2c1   : > { %v900_v29 = vmul.f32 %v2426_v28, %v898_v27 }
 0x2c3   : > { %v902_v31 = vsel %vm901_vm6, %v898_v27, %v900_v29 }
 0x2c4   : > { %v905_v32 = vsel %vm903_vm7, %v904_v30, %v902_v31 }
 0x2c5   : > { %v906_v33 = vadd.f32 1e-06, %v905_v32 }
 0x2c7   : > { %2427 = vrcp.f32 %v906_v33 }
 0x2d1   : > { %v2428_v34 = vpop.eup %2427 }
 0x2d2   : > { %v908_v36 = vmul.f32 %v2428_v34, %v893_v20 }
 0x2d4   : > { %v915_v38 = vmul.f32 %v2191_v35, %v908_v36 }
 0x2d6   : > { %v922_v39 = vadd.f32 %v2192_v37, %v915_v38 }
 0x2d8   : > { %v923_v40 = vpack.c.bf16 %v922_v39, %v922_v39 }
 0x2da   : > { %2279 = vmatmul.mubr.msk.bf16.vlgmr.msra.gmra.mrb[0].mxu0 %vm887_vm4, %v923_v40 }
 0x2db   : > { %2284 = vmatprep.mubr.msk.f32.mxu0 %vm2498_vm5, %v2497_v24 }
 0x3ad   : > { %v984_v42 = vpop.f32.mrb[0].mxu0 }
 0x3ae   : > { %v2758_v43 = vadd.f32 %v2193_v41, %v984_v42  ;;  %v2280_v44 = vpop.f32.mrb[1].mxu0 }
 0x3af   : > { %v987_v45 = vpop.f32.mrb[2].mxu0 }
 0x3b0   : > { %1088 = vrot.lane.b32.xlu0 %v2758_v43, %s2499_s22  ;;  %991 = vrot.lane.b32.xlu1 %v2758_v43, %s2500_s24  ;;  %v2281_v46 = vpop.f32.mrb[3].mxu0  ;;  %s2513_s22 = smov 24  }
 0x3b4   : > { %1166 = vrot.lane.b32.xlu0 %v2758_v43, %s2501_s30  ;;  %s2969_s30 = sld [smem:[#allocation15_spill]] }
 0x3b8   : > { %1164 = vrot.lane.b32.xlu0 %v2758_v43, %s2502_s17 }
 0x3ba   : > { %s2970_s17 = scalar_lea.vmem %s2969_s30, %s2645_s20 }
 0x422   : > { %v1089_v47 = vpop.permute.xlu0 %1088  ;;  %v992_v48 = vpop.permute.xlu1 %991 }
 0x423   : > { %2283 = vmatpush3.xpose.msk.msra.mxu0 %vm993_vm8, %v992_v48  ;;  %2288 = vmatpush3.msra.mxu1 %v1089_v47 }
 0x424   : > { %2292 = vmatprep.subr.mxu1 %v2497_v24  ;;  %2297 = vmatprep.subr.mxu0 %v2497_v24 }
 0x426   : > { %2285 = vmatmul.mubr.msk.f32.vlgmr.msra.gmra.mrb[4].mxu0 %vm993_vm8, %v2758_v43  ;;  %v1167_v2 = vpop.permute.xlu0 %1166 }
 0x427   : > { %2299 = vmatprep.mubr.msk.f32.mxu0 %vm2498_vm5, %v2497_v24 }
 0x42a   : > { %v1165_v3 = vpop.permute.xlu0 %1164 }
 0x4f9   : > { %v1064_v56 = vpop.f32.mrb[4].mxu0 }
 0x4fa   : > { %v1068_v57 = vmul.f32 0.35355338, %v1064_v56  ;;  %v2286_v58 = vpop.f32.mrb[5].mxu0 }
 0x4fb   : > { %v2418_v58 = vld [vmem:[%s2676_s26 + $0x8] sm:$0xff]  }
 0x4fc   : > { %v1076_v59 = vsel %vm1075_vm10, -1e+09, %v1068_v57  ;;  %v2417_v57 = vld [vmem:[%s2676_s26] sm:$0xff]  }
 0x4fd   : > { %v1077_v60 = vsel %vm993_vm8, %v1076_v59, -inf }
 0x4fe   : > { %1078 = vmax.xlane.f32.xlu1 %v1077_v60 }
 0x50f   : > { %1333 = vrot.lane.b32.xlu1 %v2758_v43, %s2504_s28 }
 0x58b   : > { %v1079_v61 = vpop.xlane.xlu1 %1078 }
 0x58c   : > { %v1080_v62 = vsub.f32 %v1076_v59, %v1079_v61 }
 0x58e   : > { %v1081_v63 = vmul.f32 1.442695, %v1080_v62 }
 0x58f   : > { %v1334_v8 = vpop.permute.xlu1 %1333 }
 0x590   : > { %2429 = vpow2.f32 %v1081_v63 }
 0x59a   : > { %v2430_v0 = vpop.eup %2429 }
 0x59b   : > { %v1083_v1 = vsel %vm993_vm8, %v2430_v0, 0.0 }
 0x59c   : > { %1084 = vadd.xlane.f32.xlu0 %v1083_v1 }
 0x5b2   : > { %1331 = vrot.lane.b32.xlu0 %v2758_v43, %s2505_s1  ;;  %s2973_s1 = scalar_lea.vmem %s2920_s11, %s2645_s20 }
 0x5b6   : > { %1500 = vrot.lane.b32.xlu0 %v2758_v43, %s2506_s21 }
 0x5ba   : > { %1498 = vrot.lane.b32.xlu0 %v2758_v43, %s2507_s19 }
 0x629   : > { %v1085_v4 = vpop.xlane.xlu0 %1084 }
 0x62a   : > { %2431 = vrcp.f32 %v1085_v4 }
 0x62d   : > { %v1332_v7 = vpop.permute.xlu0 %1331 }
 0x631   : > { %v1501_v9 = vpop.permute.xlu0 %1500 }
 0x634   : > { %v2432_v5 = vpop.eup %2431 }
 0x635   : > { %v1087_v6 = vmul.f32 %v2432_v5, %v2430_v0  ;;  %v1499_v10 = vpop.permute.xlu0 %1498 }
 0x637   : > { %2290 = vmatmul.mubr.msk.f32.vlgmr.msra.gmra.mrb[0].mxu1 %vm993_vm8, %v1087_v6 }
 0x638   : > { %2293 = vmatpush3.xpose.msk.msra.mxu1 %vm993_vm8, %v1167_v2  ;;  %2294 = vmatprep.mubr.msk.f32.mxu1 %vm2498_vm5, %v2497_v24 }
 0x639   : > { %2302 = vmatprep.subr.mxu1 %v2497_v24 }
 0x63b   : > { %2295 = vmatmul.mubr.msk.f32.vlgmr.msra.gmra.mrb[2].mxu1 %vm993_vm8, %v1165_v3 }
 0x63c   : > { %2303 = vmatpush3.xpose.msk.msra.mxu1 %vm993_vm8, %v1334_v8  ;;  %2304 = vmatprep.mubr.msk.f32.mxu1 %vm2498_vm5, %v2497_v24  ;;  %v2209_v8 = vld [vmem:[%s2970_s17] ss:$0 sm:$0xff] }
 0x63d   : > { %2312 = vmatprep.subr.mxu1 %v2497_v24 }
 0x63f   : > { %2305 = vmatmul.mubr.msk.f32.vlgmr.msra.gmra.mrb[4].mxu1 %vm993_vm8, %v1332_v7 }
 0x640   : > { %2313 = vmatpush3.xpose.msk.msra.mxu1 %vm993_vm8, %v1501_v9  ;;  %2314 = vmatprep.mubr.msk.f32.mxu1 %vm2498_vm5, %v2497_v24 }
 0x641   : > { %2322 = vmatprep.subr.bf16.mxu1 %v2497_v24 }
 0x643   : > { %2315 = vmatmul.mubr.msk.f32.vlgmr.msra.gmra.mrb[6].mxu1 %vm993_vm8, %v1499_v10 }
 0x644   : > { %2326 = vmatprep.mubr.msk.bf16.mxu1 %vm2498_vm5, %v2497_v24  ;;  %2323 = vmatpush3.bf16.msra.mxu1 %v2417_v57 }
 0x645   : > { %2324 = vmatprep.subr.bf16.mxu1 %v2497_v24 }
 0x648   : > { %2325 = vmatpush3.bf16.msra.mxu1 %v2418_v58 }
 0x649   : > { %2338 = vmatprep.subr.bf16.mxu1 %v2497_v24 }
 0x70a   : > { %v2805_v11 = vpop.f32.mrb[0].mxu1 }
 0x70b   : > { %v2291_v12 = vpop.f32.mrb[1].mxu1 }
 0x70e   : > { %v1238_v13 = vpop.f32.mrb[2].mxu1 }
 0x70f   : > { %v1242_v14 = vmul.f32 0.35355338, %v1238_v13  ;;  %v2296_v15 = vpop.f32.mrb[3].mxu1 }
 0x711   : > { %v1243_v17 = vsel %vm1075_vm10, -1e+09, %v1242_v14 }
 0x712   : > { %v1405_v18 = vpop.f32.mrb[4].mxu1  ;;  %v1244_v19 = vsel %vm993_vm8, %v1243_v17, -inf }
 0x713   : > { %v1409_v20 = vmul.f32 0.35355338, %v1405_v18  ;;  %1245 = vmax.xlane.f32.xlu0 %v1244_v19  ;;  %v2306_v21 = vpop.f32.mrb[5].mxu1 }
 0x715   : > { %v1410_v22 = vsel %vm1075_vm10, -1e+09, %v1409_v20 }
 0x716   : > { %v1572_v23 = vpop.f32.mrb[6].mxu1  ;;  %v1411_v25 = vsel %vm993_vm8, %v1410_v22, -inf }
 0x717   : > { %v1576_v26 = vmul.f32 0.35355338, %v1572_v23  ;;  %1412 = vmax.xlane.f32.xlu1 %v1411_v25  ;;  %v2316_v27 = vpop.f32.mrb[7].mxu1  ;;  %v2420_v23 = vld [vmem:[%s2693_s2 + $0x8] sm:$0xff]   ;;  %v2421_v25 = vld [vmem:[%s2707_s10] sm:$0xff]  }
 0x719   : > { %v1577_v28 = vsel %vm1075_vm10, -1e+09, %v1576_v26 }
 0x71a   : > { %v1578_v29 = vsel %vm993_vm8, %v1577_v28, -inf }
 0x71b   : > { %1579 = vmax.xlane.f32.xlu0 %v1578_v29 }
 0x728   : > { %1422 = vrot.lane.b32.xlu1 %v2758_v43, %s2508_s16 }
 0x7a0   : > { %v1246_v30 = vpop.xlane.xlu0 %1245 }
 0x7a1   : > { %v1247_v31 = vsub.f32 %v1243_v17, %v1246_v30 }
 0x7a3   : > { %v1248_v32 = vmul.f32 1.442695, %v1247_v31 }
 0x7a4   : > { %v1413_v33 = vpop.xlane.xlu1 %1412 }
 0x7a5   : > { %2433 = vpow2.f32 %v1248_v32  ;;  %v1414_v34 = vsub.f32 %v1410_v22, %v1413_v33  ;;  %v2419_v22 = vld [vmem:[%s2693_s2] sm:$0xff]  }
 0x7a7   : > { %v1415_v35 = vmul.f32 1.442695, %v1414_v34 }
 0x7a8   : > { %v1580_v36 = vpop.xlane.xlu0 %1579  ;;  %v1423_v47 = vpop.permute.xlu1 %1422 }
 0x7a9   : > { %2435 = vpow2.f32 %v1415_v35  ;;  %v1581_v37 = vsub.f32 %v1577_v28, %v1580_v36  ;;  %v2213_v35 = vld [vmem:[%s2972_s29] ss:$0 sm:$0xff] }
 0x7ab   : > { %v1582_v38 = vmul.f32 1.442695, %v1581_v37  ;;  %v2214_v37 = vld [vmem:[%s2973_s1] ss:$0 sm:$0xff] }
 0x7ad   : > { %2437 = vpow2.f32 %v1582_v38 }
 0x7af   : > { %v2434_v39 = vpop.eup %2433 }
 0x7b0   : > { %v1250_v40 = vsel %vm993_vm8, %v2434_v39, 0.0 }
 0x7b1   : > { %1251 = vadd.xlane.f32.xlu0 %v1250_v40 }
 0x7b3   : > { %v2436_v41 = vpop.eup %2435 }
 0x7b4   : > { %v1417_v42 = vsel %vm993_vm8, %v2436_v41, 0.0 }
 0x7b5   : > { %1418 = vadd.xlane.f32.xlu0 %v1417_v42  ;;  %v2424_v42 = vld [vmem:[%s2707_s10 + $0x18] sm:$0xff]  }
 0x7b7   : > { %v2438_v44 = vpop.eup %2437 }
 0x7b8   : > { %v1584_v45 = vsel %vm993_vm8, %v2438_v44, 0.0 }
 0x7b9   : > { %1585 = vadd.xlane.f32.xlu1 %v1584_v45 }
 0x7ca   : > { %1589 = vrot.lane.b32.xlu1 %v2758_v43, %s2509_s0 }
 0x7cb   : > { %1255 = vrot.lane.b32.xlu0 %v2758_v43, %s2510_s14 }
 0x83e   : > { %v1252_v46 = vpop.xlane.xlu0 %1251 }
 0x83f   : > { %2439 = vrcp.f32 %v1252_v46 }
 0x842   : > { %v1419_v48 = vpop.xlane.xlu0 %1418 }
 0x843   : > { %2441 = vrcp.f32 %v1419_v48 }
 0x846   : > { %v1586_v49 = vpop.xlane.xlu1 %1585  ;;  %v1256_v50 = vpop.permute.xlu0 %1255 }
 0x847   : > { %2443 = vrcp.f32 %v1586_v49  ;;  %2298 = vmatpush3.msra.mxu0 %v1256_v50 }
 0x848   : > { %2307 = vmatprep.subr.mxu0 %v2497_v24 }
 0x849   : > { %v2440_v51 = vpop.eup %2439 }
 0x84a   : > { %v1254_v52 = vmul.f32 %v2440_v51, %v2434_v39  ;;  %v1590_v54 = vpop.permute.xlu1 %1589 }
 0x84c   : > { %2300 = vmatmul.mubr.msk.f32.vlgmr.msra.gmra.mrb[6].mxu0 %vm993_vm8, %v1254_v52 }
 0x84d   : > { %v2442_v53 = vpop.eup %2441  ;;  %2308 = vmatpush3.msra.mxu0 %v1423_v47  ;;  %2309 = vmatprep.mubr.msk.f32.mxu0 %vm2498_vm5, %v2497_v24 }
 0x84e   : > { %v1421_v43 = vmul.f32 %v2442_v53, %v2436_v41  ;;  %2317 = vmatprep.subr.mxu0 %v2497_v24  ;;  %v2423_v41 = vld [vmem:[%s2707_s10 + $0x10] sm:$0xff]  }
 0x850   : > { %2310 = vmatmul.mubr.msk.f32.vlgmr.msra.gmra.mrb[8].mxu0 %vm993_vm8, %v1421_v43 }
 0x851   : > { %v2444_v55 = vpop.eup %2443  ;;  %2318 = vmatpush3.msra.mxu0 %v1590_v54  ;;  %2319 = vmatprep.mubr.msk.f32.mxu0 %vm2498_vm5, %v2497_v24 }
 0x852   : > { %v1588_v56 = vmul.f32 %v2444_v55, %v2438_v44  ;;  %2330 = vmatprep.subr.bf16.mxu0 %v2497_v24  ;;  %v2215_v44 = vld [vmem:[%s776_s23] ss:$0 sm:$0xff] }
 0x854   : > { %2320 = vmatmul.mubr.msk.f32.vlgmr.msra.gmra.mrb[10].mxu0 %vm993_vm8, %v1588_v56 }
 0x855   : > { %2334 = vmatprep.mubr.msk.bf16.mxu0 %vm2498_vm5, %v2497_v24  ;;  %2331 = vmatpush3.bf16.msra.mxu0 %v2419_v22 }
 0x856   : > { %2332 = vmatprep.subr.bf16.mxu0 %v2497_v24 }
 0x859   : > { %2333 = vmatpush3.bf16.msra.mxu0 %v2420_v23 }
 0x91f   : > { %v1327_v59 = vpop.f32.mrb[6].mxu0 }
 0x920   : > { %1666 = vrot.lane.b32.xlu1 %v1327_v59, %s2511_s18  ;;  %v2301_v60 = vpop.f32.mrb[7].mxu0 }
 0x923   : > { %v1494_v61 = vpop.f32.mrb[8].mxu0 }
 0x924   : > { %1670 = vrot.lane.b32.xlu0 %v1494_v61, %s2512_s27  ;;  %v2311_v62 = vpop.f32.mrb[9].mxu0 }
 0x927   : > { %v1661_v63 = vpop.f32.mrb[10].mxu0 }
 0x928   : > { %1674 = vrot.lane.b32.xlu1 %v1661_v63, %s2513_s22  ;;  %v2321_v0 = vpop.f32.mrb[11].mxu0 }
 0x992   : > { %v1667_v1 = vpop.permute.xlu1 %1666 }
 0x993   : > { %v1677_v3 = vsel %vm993_vm8, %v2805_v11, %v1667_v1 }
 0x996   : > { %v1671_v2 = vpop.permute.xlu0 %1670 }
 0x997   : > { %v1679_v4 = vsel %vm1678_vm11, %v1677_v3, %v1671_v2 }
 0x99a   : > { %v1675_v5 = vpop.permute.xlu1 %1674 }
 0x99b   : > { %v1681_v6 = vsel %vm1680_vm12, %v1679_v4, %v1675_v5 }
 0x99c   : > { %v1682_v7 = vpack.c.bf16 %v1681_v6, %v1681_v6 }
 0x99e   : > { %2327 = vmatmul.mubr.msk.bf16.vlgmr.msra.gmra.mrb[8].mxu1 %vm887_vm4, %v1682_v7 }
 0x99f   : > { %2346 = vmatprep.mubr.msk.bf16.mxu1 %vm2498_vm5, %v2497_v24  ;;  %2339 = vmatpush3.bf16.msra.mxu1 %v2421_v25 }
 0x9a0   : > { %2340 = vmatprep.subr.bf16.mxu1 %v2497_v24 }
 0xa71   : > { %v1743_v9 = vpop.f32.mrb[8].mxu1 }
 0xa72   : > { %v1744_v10 = vadd.f32 %v2209_v8, %v1743_v9  ;;  %v2328_v12 = vpop.f32.mrb[9].mxu1 }
 0xa73   : > { %v1746_v11 = vpop.f32.mrb[10].mxu1 }
 0xa74   : > { %v1749_v13 = vadd.f32 %v1744_v10, %v2724_v16  ;;  %v2329_v14 = vpop.f32.mrb[11].mxu1  ;;  %v2422_v16 = vld [vmem:[%s2707_s10 + $0x8] sm:$0xff]   ;;  %s2975_s10 = sld [smem:[#allocation3_spill]] }
 0xa75   : > { %2341 = vmatpush3.bf16.msra.mxu1 %v2422_v16 }
 0xa76   : > { %v1752_v15 = vsel %vm887_vm4, %v1749_v13, 0.0  ;;  %2342 = vmatprep.subr.bf16.mxu1 %v2497_v24 }
 0xa77   : > { %1753 = vadd.xlane.f32.xlu0 %v1752_v15 }
 0xa79   : > { %2343 = vmatpush3.bf16.msra.mxu1 %v2423_v41 }
 0xa7a   : > { %2344 = vmatprep.subr.bf16.mxu1 %v2497_v24  ;;  %v2219_v24 = vld [vmem:[%s784_s9] ss:$0 sm:$0xff]  ;;  %p2225_p8 = scmp.ne.s32.totalorder %s2975_s10, 1 }
 0xa7b   : > { %s2976_s23 = sld [smem:[#allocation19_spill]] (!%p2225_p8)  ;;  %s2977_s22 = sld [smem:[#allocation20_spill]] (!%p2225_p8) }
 0xa7d   : > { %2345 = vmatpush3.bf16.msra.mxu1 %v2424_v42 }
 0xa81   : > { %v2226_v8 = vld [vmem:[%s2976_s23] ss:$0 sm:$0xff] (!%p2225_p8) }
 0xa82   : > { %v2227_v10 = vld [vmem:[%s2977_s22] ss:$0 sm:$0xff] (!%p2225_p8) }
 0xb04   : > { %v1754_v17 = vpop.xlane.xlu0 %1753 }
 0xb05   : > { %v1755_v18 = vmul.f32 0.03125, %v1754_v17 }
 0xb07   : > { %v1756_v19 = vsub.f32 %v1749_v13, %v1755_v18 }
 0xb09   : > { %v1757_v20 = vmul.f32 %v1756_v19, %v1756_v19 }
 0xb0b   : > { %v1758_v21 = vsel %vm887_vm4, %v1757_v20, 0.0 }
 0xb0c   : > { %1759 = vadd.xlane.f32.xlu1 %v1758_v21 }
 0xb99   : > { %v1760_v26 = vpop.xlane.xlu1 %1759 }
 0xb9a   : > { %v1761_v27 = vmul.f32 0.032258064, %v1760_v26 }
 0xb9c   : > { %2445 = vrsqrt.f32 %v1761_v27  ;;  %vm1764_vm13 = vcmp.eq.f32.partialorder %v1761_v27, inf  ;;  %v1767_v30 = vand.u32 2147483648, %v1761_v27  ;;  %vm1766_vm14 = vcmp.eq.f32.partialorder %v1761_v27, 0.0 }
 0xba6   : > { %v2446_v28 = vpop.eup %2445 }
 0xba7   : > { %v1763_v29 = vmul.f32 %v2446_v28, %v1761_v27 }
 0xba9   : > { %v1765_v31 = vsel %vm1764_vm13, %v1761_v27, %v1763_v29 }
 0xbaa   : > { %v1768_v32 = vsel %vm1766_vm14, %v1767_v30, %v1765_v31 }
 0xbab   : > { %v1769_v33 = vadd.f32 1e-06, %v1768_v32 }
 0xbad   : > { %2447 = vrcp.f32 %v1769_v33 }
 0xbb7   : > { %v2448_v34 = vpop.eup %2447 }
 0xbb8   : > { %v1771_v36 = vmul.f32 %v2448_v34, %v1756_v19 }
 0xbba   : > { %v1778_v38 = vmul.f32 %v2213_v35, %v1771_v36 }
 0xbbc   : > { %v1785_v39 = vadd.f32 %v2214_v37, %v1778_v38 }
 0xbbe   : > { %v1786_v40 = vpack.c.bf16 %v1785_v39, %v1785_v39 }
 0xbc0   : > { %2335 = vmatmul.mubr.msk.bf16.vlgmr.msra.gmra.mrb[12].mxu0 %vm887_vm4, %v1786_v40 }
 0xc93   : > { %v1847_v45 = vpop.f32.mrb[12].mxu0 }
 0xc94   : > { %v1848_v46 = vadd.f32 %v2215_v44, %v1847_v45  ;;  %v2336_v47 = vpop.f32.mrb[13].mxu0 }
 0xc95   : > { %v1850_v48 = vpop.f32.mrb[14].mxu0 }
 0xc96   : > { %v1853_v49 = vmax.f32 %v1848_v46, 0.0  ;;  %v2337_v50 = vpop.f32.mrb[15].mxu0 }
 0xc98   : > { %v1854_v51 = vpack.c.bf16 %v1853_v49, %v1853_v49 }
 0xc9a   : > { %2347 = vmatmul.mubr.msk.bf16.vlgmr.msra.gmra.mrb[12].mxu1 %vm1894_vm15, %v1854_v51 }
 0xd6c   : > { %1943 = sbr.rel (%p2225_p8) target bundleno = 3771 (0xebb), region = 100 }
 0xd6d   : > { %v1932_v52 = vpop.f32.mrb[12].mxu1 }
 0xd6e   : > { %v1933_v53 = vadd.f32 %v2219_v24, %v1932_v52  ;;  %v2348_v43 = vpop.f32.mrb[13].mxu1 }
 0xd6f   : > { %v1935_v54 = vpop.f32.mrb[14].mxu1 }
 0xd70   : > { %v1938_v55 = vadd.f32 %v1933_v53, %v1749_v13  ;;  %v2349_v56 = vpop.f32.mrb[15].mxu1 }
 0xd72   : > { %1939 = vst.msk [vmem:[#allocation2] sm:$0xff] %vm887_vm4, %v1938_v55  ;;  %v1946_v57 = vsel (!%p2225_p8), %vm887_vm4, %v1938_v55, 0.0 }
 0xd73   : > { %1947 = vadd.xlane.f32.xlu0 %v1946_v57 }
 0xe00   : > { %v1948_v58 = vpop.xlane.xlu0 %1947 }
 0xe01   : > { %v1949_v59 = vmul.f32 0.03125, %v1948_v58 }
 0xe03   : > { %v1950_v60 = vsub.f32 %v1938_v55, %v1949_v59 }
 0xe05   : > { %v1951_v61 = vmul.f32 %v1950_v60, %v1950_v60 }
 0xe07   : > { %v1952_v62 = vsel %vm887_vm4, %v1951_v61, 0.0 }
 0xe08   : > { %1953 = vadd.xlane.f32.xlu0 %v1952_v62 }
 0xe95   : > { %v1954_v63 = vpop.xlane.xlu0 %1953 }
 0xe96   : > { %v1955_v0 = vmul.f32 0.032258064, %v1954_v63 }
 0xe98   : > { %2449 = vrsqrt.f32 %v1955_v0  ;;  %vm1958_vm0 = vcmp.eq.f32.partialorder %v1955_v0, inf  ;;  %v1961_v3 = vand.u32 2147483648, %v1955_v0  ;;  %vm1960_vm1 = vcmp.eq.f32.partialorder %v1955_v0, 0.0 }
 0xea2   : > { %v2450_v1 = vpop.eup %2449 }
 0xea3   : > { %v1957_v2 = vmul.f32 %v2450_v1, %v1955_v0 }
 0xea5   : > { %v1959_v4 = vsel %vm1958_vm0, %v1955_v0, %v1957_v2 }
 0xea6   : > { %v1962_v5 = vsel %vm1960_vm1, %v1961_v3, %v1959_v4 }
 0xea7   : > { %v1963_v6 = vadd.f32 1e-06, %v1962_v5 }
 0xea9   : > { %2451 = vrcp.f32 %v1963_v6 }
 0xeb3   : > { %v2452_v7 = vpop.eup %2451 }
 0xeb4   : > { %v1965_v9 = vmul.f32 %v2452_v7, %v1950_v60 }
 0xeb6   : > { %v1972_v12 = vmul.f32 %v2226_v8, %v1965_v9 }
 0xeb8   : > { %v1979_v11 = vadd.f32 %v2227_v10, %v1972_v12 }
 0xeba   : > { %1980 = vst.msk [vmem:[%s2712_s3] sm:$0xff] %vm887_vm4, %v1979_v11 }
 0xebb PF: > { %s2978_s26 = sld [smem:[#allocation6_spill]]  ;;  %s2979_s27 = sld [smem:[#allocation4_spill]] }
 0xebc   : > { %s2980_s28 = sld [smem:[#allocation5_spill]]  ;;  %s2981_s29 = sld [smem:[#allocation7_spill]] }
 0xebd   : > { %s2982_s30 = sld [smem:[#allocation8_spill]] }
 0xec1   : > { %s28_s0 = sadd.s32 1, %s2978_s26  }
 0xec2   : > { %p25_p9 = scmp.ge.s32.totalorder %s28_s0, 6  }
 0xec4   :  { %27 = sbr.rel (!%p25_p9) target bundleno = 14 (0xe), region = 169 }

// kernel: encoder_decoder_forward.3
= control target key start
LH: loop header
LB: loop body
LE: loop exit
PB: predicated region body
PF: predicated region fallthrough
CT: control target
= control target key end

     0   :  { %s5064_s0 = inlined_call_operand.vmem [shape: s32[2,8,1], index: 0, kind: input, shape index: {}]   ;;  %s5065_s1 = inlined_call_operand.vmem [shape: f32[16,32], index: 1, kind: input, shape index: {}]   ;;  %s5066_s2 = inlined_call_operand.vmem [shape: f32[8,32], index: 2, kind: input, shape index: {}]   ;;  %s5067_s3 = inlined_call_operand.vmem [shape: f32[2,8,32], index: 3, kind: input, shape index: {}]   ;;  %s5068_s4 = inlined_call_operand.vmem [shape: s32[2,1,8], index: 4, kind: input, shape index: {}]   ;;  %s5069_s5 = inlined_call_operand.vmem [shape: s32[2,8,8], index: 5, kind: input, shape index: {}]   ;;  %s5070_s6 = inlined_call_operand.vmem [shape: f32[2,1,32], index: 6, kind: input, shape index: {}]   ;;  %s5071_s7 = inlined_call_operand.vmem [shape: f32[2,1,32], index: 7, kind: input, shape index: {}]   ;;  %s5072_s8 = inlined_call_operand.vmem [shape: bf16[2,32,96], index: 8, kind: input, shape index: {}]   ;;  %s5073_s9 = inlined_call_operand.vmem [shape: f32[2,1,96], index: 9, kind: input, shape index: {}]   ;;  %s5074_s10 = inlined_call_operand.vmem [shape: bf16[2,32,32], index: 10, kind: input, shape index: {}]   ;;  %s5075_s11 = inlined_call_operand.vmem [shape: f32[2,1,32], index: 11, kind: input, shape index: {}]   ;;  %s5076_s12 = inlined_call_operand.vmem [shape: f32[2,1,32], index: 12, kind: input, shape index: {}]   ;;  %s5077_s13 = inlined_call_operand.vmem [shape: f32[2,1,32], index: 13, kind: input, shape index: {}]   ;;  %s5078_s14 = inlined_call_operand.vmem [shape: bf16[2,32,32], index: 14, kind: input, shape index: {}]   ;;  %s5079_s15 = inlined_call_operand.vmem [shape: f32[2,1,32], index: 15, kind: input, shape index: {}]   ;;  %s5080_s16 = inlined_call_operand.vmem [shape: bf16[2,32,64], index: 16, kind: input, shape index: {}]   ;;  %s5081_s17 = inlined_call_operand.vmem [shape: f32[2,1,64], index: 17, kind: input, shape index: {}]   ;;  %s5082_s18 = inlined_call_operand.vmem [shape: bf16[2,32,32], index: 18, kind: input, shape index: {}]   ;;  %s5083_s19 = inlined_call_operand.vmem [shape: f32[2,1,32], index: 19, kind: input, shape index: {}]   ;;  %s5084_s20 = inlined_call_operand.vmem [shape: f32[2,1,32], index: 20, kind: input, shape index: {}]   ;;  %s5085_s21 = inlined_call_operand.vmem [shape: f32[2,1,32], index: 21, kind: input, shape index: {}]   ;;  %s5086_s22 = inlined_call_operand.vmem [shape: bf16[2,32,64], index: 22, kind: input, shape index: {}]   ;;  %s5087_s23 = inlined_call_operand.vmem [shape: f32[2,1,64], index: 23, kind: input, shape index: {}]   ;;  %s5088_s24 = inlined_call_operand.vmem [shape: bf16[2,64,32], index: 24, kind: input, shape index: {}]   ;;  %s5089_s25 = inlined_call_operand.vmem [shape: f32[2,1,32], index: 25, kind: input, shape index: {}]   ;;  %s5090_s26 = inlined_call_operand.vmem [shape: f32[1,32], index: 26, kind: input, shape index: {}]   ;;  %s5091_s27 = inlined_call_operand.hbm [shape: f32[1,32], index: 27, kind: input, shape index: {}]   ;;  %s5092_s28 = inlined_call_operand.hbm [shape: f32[2,8,32], index: 28, kind: output, shape index: {}]  }
   0x1   :  { %5117 = sst [smem:[#allocation25_spill]] %s5064_s0 }
   0x2   :  { %5118 = sst [smem:[#allocation26_spill]] %s5065_s1 }
   0x3   :  { %5119 = sst [smem:[#allocation27_spill]] %s5066_s2 }
   0x4   :  { %5120 = sst [smem:[#allocation28_spill]] %s5067_s3 }
   0x5   :  { %5121 = sst [smem:[#allocation29_spill]] %s5068_s4 }
   0x6   :  { %5122 = sst [smem:[#allocation30_spill]] %s5069_s5 }
   0x7   :  { %5123 = sst [smem:[#allocation31_spill]] %s5070_s6 }
   0x8   :  { %5124 = sst [smem:[#allocation32_spill]] %s5071_s7 }
   0x9   :  { %5125 = sst [smem:[#allocation33_spill]] %s5072_s8 }
   0xa   :  { %5126 = sst [smem:[#allocation34_spill]] %s5073_s9 }
   0xb   :  { %5127 = sst [smem:[#allocation35_spill]] %s5074_s10 }
   0xc   :  { %5128 = sst [smem:[#allocation36_spill]] %s5075_s11 }
   0xd   :  { %5129 = sst [smem:[#allocation37_spill]] %s5076_s12 }
   0xe   :  { %5130 = sst [smem:[#allocation38_spill]] %s5078_s14 }
   0xf   :  { %5131 = sst [smem:[#allocation39_spill]] %s5079_s15 }
  0x10   :  { %5132 = sst [smem:[#allocation40_spill]] %s5080_s16 }
  0x11   :  { %5133 = sst [smem:[#allocation41_spill]] %s5082_s18 }
  0x12   :  { %5134 = sst [smem:[#allocation42_spill]] %s5083_s19 }
  0x13   :  { %5135 = sst [smem:[#allocation43_spill]] %s5084_s20 }
  0x14   :  { %5136 = sst [smem:[#allocation44_spill]] %s5085_s21 }
  0x15   :  { %5137 = sst [smem:[#allocation45_spill]] %s5086_s22 }
  0x16   :  { %5138 = sst [smem:[#allocation46_spill]] %s5087_s23 }
  0x17   :  { %5139 = sst [smem:[#allocation47_spill]] %s5088_s24 }
  0x18   :  { %5140 = sst [smem:[#allocation48_spill]] %s5089_s25 }
  0x19   :  { %5141 = sst [smem:[#allocation49_spill]] %s5090_s26 }
  0x1a   :  { %5142 = sst [smem:[#allocation50_spill]] %s5091_s27 }
  0x1b   :  { %5143 = sst [smem:[#allocation51_spill]] %s5092_s28 }
  0x1c   :  { %33 = vsyncpa [#allocation4], 0 }
  0x1d   :  { %34 = vsyncpa [#allocation5], 0 }
  0x1e   :  { %36 = vsyncpa [#allocation5 + $0x1], 0  ;;  %s4453_s8 = smov 0   ;;  %s4455_s5 = smov 0  }
  0x1f   :  { %s4457_s9 = smov 0   ;;  %s4459_s30 = smov 0  }
  0x20   :  { %s4461_s3 = smov 0   ;;  %s4463_s6 = smov 0  }
  0x21   :  { %s4465_s10 = smov 0   ;;  %s4467_s0 = smov 0  }
  0x22 LB: > { %5144 = sst [smem:[#allocation9_spill]] %s4255_s8  ;;  %s3680_s11 = sadd.s32 4294967295, %s4283_s0   ;;  %s4283_s0 = sphi %s4467_s0, %s42_s0   ;;  %s4279_s10 = sphi %s4465_s10, %s5241_s10   ;;  %s4275_s6 = sphi %s4463_s6, %s5240_s6   ;;  %s4271_s3 = sphi %s4461_s3, %s5239_s3   ;;  %s4267_s30 = sphi %s4459_s30, %s5238_s30   ;;  %s4263_s9 = sphi %s4457_s9, %s5237_s9   ;;  %s4259_s5 = sphi %s4455_s5, %s5236_s5   ;;  %s4255_s8 = sphi %s4453_s8, %s5235_s8  }
  0x23   : > { %5145 = sst [smem:[#allocation10_spill]] %s4259_s5  ;;  %s3681_s29 = sadd.s32 4294967294, %s4283_s0  }
  0x24   : > { %5146 = sst [smem:[#allocation11_spill]] %s4263_s9  ;;  %s51_s2 = sadd.s32 1, %s4275_s6 }
  0x25   : > { %5147 = sst [smem:[#allocation12_spill]] %s4267_s30  ;;  %s54_s7 = sadd.s32 1, %s4279_s10 }
  0x26   : > { %5148 = sst [smem:[#allocation13_spill]] %s4271_s3  ;;  %p52_p0 = scmp.ge.s32.totalorder %s51_s2, 2 }
  0x27   : > { %5149 = sst [smem:[#allocation14_spill]] %s4275_s6  ;;  %s769_s12 = sadd.s32 1, %s4263_s9 }
  0x28   : > { %5150 = sst [smem:[#allocation15_spill]] %s4279_s10  ;;  %p779_p1 = scmp.ne.s32.totalorder %s4263_s9, %s4259_s5 }
  0x29   : > { %5151 = sst [smem:[#allocation16_spill]] %s4283_s0  ;;  %p780_p2 = scmp.eq.s32.totalorder %s3680_s11, 3 }
  0x2a   : > { %s5243_s2 = smov (%p52_p0, %s51_s2), 0  ;;  %s5245_s7 = smov (!%p52_p0, %s54_s7), %s4279_s10 }
  0x2b   : > { %5152 = sst [smem:[#allocation17_spill]] %s5243_s2  ;;  %p4503_p3 = por %p780_p2, %p779_p1 }
  0x2c   : > { %p785_p4 = scmp.ne.s32.totalorder %s4259_s5, %s4255_s8  ;;  %p56_p5 = scmp.ge.s32.totalorder %s5245_s7, 2 }
  0x2d   : > { %s5153_s1 = scalar_select %p4503_p3, 1, 0 }
  0x2e   : > { %p786_p6 = scmp.eq.s32.totalorder %s3681_s29, 3  ;;  %p3682_p7 = scmp.ge.s32.totalorder %s4283_s0, 1 }
  0x2f   : > { %5154 = sst [smem:[#allocation18_spill]] %s5153_s1  ;;  %p793_p8 = scmp.lt.s32.totalorder %s4283_s0, 5 }
  0x30   : > { %s5247_s7 = smov (%p56_p5, %s5245_s7), 0  ;;  %p4513_p9 = por %p786_p6, %p785_p4 }
  0x31   : > { %5155 = sst [smem:[#allocation19_spill]] %s5247_s7  ;;  %p4517_p10 = pnand %p3682_p7, %p793_p8 }
  0x32   : > { %s5156_s4 = scalar_select %p4513_p9, 1, 0 }
  0x33   : > { %s5158_s6 = scalar_select %p4517_p10, 1, 0 }
  0x34   : > { %5157 = sst [smem:[#allocation20_spill]] %s5156_s4  ;;  %s766_s2 = ssub.s32 %s4279_s10, %s5247_s7 }
  0x35   : > { %p767_p11 = scmp.eq.s32.totalorder %s766_s2, 0  ;;  %p3995_p12 = pneg %p4517_p10 }
  0x36   : > { %p4525_p13 = scmp.eq.s32.totalorder %s3680_s11, 0  ;;  %s4285_s0 = smov [#allocation3]  }
  0x37   : > { %s4530_s8 = scalar_select %p767_p11, %s4263_s9, %s769_s12  }
  0x38   : > { %s5159_s29 = scalar_select %p4525_p13, 1, 0 }
  0x39   : > { %5160 = sst [smem:[#allocation21_spill]] %s4530_s8  ;;  %s815_s28 = sshll.u32 %s4285_s0, 4  ;;  %s816_s28 = int_to_ptr.vmem [resolvable:$true] %s815_s28 }
  0x3a   : > { %p4534_p0 = pnand %p4525_p13, %p3995_p12  ;;  %s5162_s27 = sld [smem:[#allocation50_spill]] }
  0x3c   : > { %p4159_p2 = pneg %p4534_p0 }
  0x40   : > { %s4157_s10 = scalar_lea.hbm %s5162_s27, 16 }
  0x41   : > { %p4158_p1 = scmp.ne.s32.totalorder %s5162_s27, %s4157_s10  ;;  %p4164_p6 = scmp.lt.u32.totalorder %s4157_s10, %s5162_s27 }
  0x43   : > { %p4160_p4 = pnand %p4159_p2, %p4158_p1 }
  0x45   : > { %p4161_p5 = pneg %p4160_p4 }
  0x47   : > { %p4166_p7 = pnand %p4164_p6, %p4161_p5 }
  0x49   : > { %4169 = shalt.err (!%p4166_p7)
}
  0x4a   : > { %s4170_s8 = scalar_lea.vmem %s816_s28, 16  ;;  %s4177_s7 = scalar_lea.vmem %s816_s28, 32 }
  0x4b   : > { %p4171_p8 = scmp.ne.s32.totalorder %s816_s28, %s4170_s8  ;;  %p4178_p9 = scmp.lt.s32.totalorder %s816_s28, %s816_s28 }
  0x4c   : > { %p4179_p3 = scmp.lt.s32.totalorder %s4177_s7, %s4170_s8 }
  0x4d   : > { %p4173_p11 = pnand %p4171_p8, %p4159_p2 }
  0x4e   : > { %p4180_p13 = por %p4179_p3, %p4178_p9 }
  0x4f   : > { %p4174_p12 = pneg %p4173_p11 }
  0x51   : > { %p4181_p10 = pnand %p4180_p13, %p4174_p12 }
  0x53   : > { %4184 = shalt.err (!%p4181_p10)
}
  0x54   : > { %3998 = dma.hbm_to_vmem [thread:$0]  (!%p4534_p0), %s5162_s27, 16, %s816_s28, [#allocation4]  }
  0x55   : > { %p5163_p1 = scmp.ne.s32.totalorder %s5158_s6, 0 }
  0x57   : > { %989 = sbr.rel (%p5163_p1) target bundleno = 5663 (0x161f), region = 132 }
  0x5e   : > { %p5164_p4 = scmp.ne.s32.totalorder %s5159_s29, 0 }
  0x60   : > { %4246 = dma.done.wait (%p5164_p4), [#allocation4], 16  }
  0x61   : > { %4248 = vsyncadd (%p5164_p4), [#allocation4], 4294967280  ;;  %s5108_s8 = sand.u32 1, %s4259_s5   ;;  %p1147_p3 = scmp.lt.s32.totalorder %s4271_s3, 1 }
  0x62   : > { %s4564_s10 = sshll.u32 %s5108_s8, 3  ;;  %p1162_p9 = scmp.lt.s32.totalorder %s4267_s30, 1 }
  0x63   : > { %s4568_s28 = scalar_select %p1147_p3, %s4271_s3, 1 }
  0x64   : > { %s4571_s6 = scalar_select %p1162_p9, %s4267_s30, 1 }
  0x65   : > { %5165 = sst [smem:[#allocation22_spill]] %s4568_s28  ;;  %s4574_s4 = sshll.u32 %s4568_s28, 3 }
  0x66   : > { %5166 = sst [smem:[#allocation23_spill]] %s4574_s4  ;;  %s5168_s2 = sld [smem:[#allocation25_spill]] }
  0x67   : > { %s3774_s1 = sshll.u32 %s4571_s6, 4  ;;  %s5173_s27 = sld [smem:[#allocation33_spill]] }
  0x68   : > { %s5175_s11 = sld [smem:[#allocation35_spill]]  ;;  %s5178_s14 = sld [smem:[#allocation38_spill]] }
  0x69   : > { %s5180_s16 = sld [smem:[#allocation40_spill]]  ;;  %s5181_s18 = sld [smem:[#allocation41_spill]] }
  0x6a   : > { %s5185_s25 = sld [smem:[#allocation44_spill]]  ;;  %s5186_s21 = sld [smem:[#allocation45_spill]] }
  0x6b   : > { %s3780_s15 = sshll.u32 %s4571_s6, 5  ;;  %s5189_s30 = sld [smem:[#allocation47_spill]] }
  0x6c   : > { %s1150_s8 = scalar_lea.vmem %s5168_s2, %s4574_s4  ;;  %s5190_s12 = sld [smem:[#allocation12_spill]] }
  0x6d   : > { %s4604_s5 = scalar_lea.vmem %s5173_s27, %s3774_s1  ;;  %s5188_s27 = sld [smem:[#allocation48_spill]] }
  0x6e   : > { %s4613_s3 = scalar_lea.vmem %s5175_s11, %s3774_s1  ;;  %s4630_s23 = scalar_lea.vmem %s5178_s14, %s3774_s1 }
  0x6f   : > { %s4639_s0 = scalar_lea.vmem %s5180_s16, %s3774_s1  ;;  %s4648_s26 = scalar_lea.vmem %s5181_s18, %s3774_s1 }
  0x70   : > { %5182 = sst [smem:[#allocation24_spill]] %s4648_s26  ;;  %s1219_s14 = scalar_lea.vmem %s5185_s25, %s4571_s6 }
  0x71   : > { %s4665_s2 = scalar_lea.vmem %s5186_s21, %s3774_s1  ;;  %s5187_s18 = sld [smem:[#allocation46_spill]] }
  0x72   : > { %s4679_s20 = scalar_lea.vmem %s5189_s30, %s3780_s15  ;;  %s1146_s25 = scalar_lea.vmem [#allocation6], %s4564_s10 }
  0x73   : > { %s1235_s19 = scalar_lea.vmem %s5188_s27, %s4571_s6  ;;  %p3705_p10 = scmp.ne.s32.totalorder %s5190_s12, 0 }
  0x74   : > { %v1241_v0 = vld [vmem:[%s1150_s8] sm:$0xff] (!%p3705_p10)  ;;  %s5191_s28 = sld [smem:[#allocation26_spill]] (!%p3705_p10)  ;;  %v4286_v3 = vmov (!%p3705_p10), 0   ;;  %v4287_v4 = vmov (!%p3705_p10), 0.0|0.0   ;;  %vm4288_vm0 = vmmov (!%p3705_p10), 0   ;;  %v4289_v6 = vmov (!%p3705_p10), 0.0  }
  0x75   : > { %1240 = sbr.rel (%p3705_p10) target bundleno = 465 (0x1d1), region = 140  ;;  %4092 = vset.pattern.permute.xlu0 (!%p3705_p10), %v4286_v3  ;;  %3986 = vmatprep.subr.bf16.mxu0 (!%p3705_p10), %v4287_v4  ;;  %v1242_v7 = vlaneseq (!%p3705_p10)  ;;  %vm1251_vm1 = vcmask (!%p3705_p10), 130048   ;;  %s5192_s30 = sld [smem:[#allocation27_spill]] (!%p3705_p10)  ;;  %vm1328_vm3 = vcmask (!%p3705_p10), 261120  }
  0x76   : > { %1245 = vperm.xlu0 (!%p3705_p10), %4092, %v1241_v0   ;;  %3843 = vmatprep.mubr.msk.f32.mxu0 (!%p3705_p10), %vm4288_vm0, %v4289_v6 }
  0x77   : > { %s1227_s26 = scalar_lea.vmem %s5187_s18, %s4571_s6  ;;  %v1243_v8 = vand.u32 (!%p3705_p10), 127, %v1242_v7 }
  0x7a   : > { %v1249_v1 = vld [vmem:[%s5191_s28] sm:$0xff] (!%p3705_p10)  ;;  %v1250_v2 = vld [vmem:[%s5191_s28 + $0x8] sm:$0xff] (!%p3705_p10) }
  0x7b   : > { %v3987_v5 = vpack.c.bf16 (!%p3705_p10), %v1250_v2, %v1249_v1  ;;  %v1326_v12 = vld [vmem:[%s5192_s30] sm:$0xff] (!%p3705_p10) }
  0x7d   : > { %3988 = vmatpush3.bf16.msra.mxu0 %v3987_v5 }
  0xf5   : > { %v1246_v9 = vpop.permute.xlu0 %1245 }
  0xf6   : > { %vm1247_vm2 = vcmp.eq.s32.totalorder %v1243_v8, %v1246_v9 }
  0xf7   : > { %v1248_v10 = vsel %vm1247_vm2, 1.0, %v4289_v6 }
  0xf8   : > { %3844 = vmatmul.mubr.msk.f32.vlgmr.msra.gmra.mrb[0].mxu0 %vm1251_vm1, %v1248_v10 }
 0x1cb   : > { %v1321_v11 = vpop.f32.mrb[0].mxu0 }
 0x1cc   : > { %v1325_v13 = vmul.f32 5.656854, %v1321_v11  ;;  %v3845_v14 = vpop.f32.mrb[1].mxu0 }
 0x1ce   : > { %v1327_v15 = vadd.f32 %v1326_v12, %v1325_v13 }
 0x1d0   : > { %1329 = vst.msk [vmem:[#allocation2] sm:$0xff] %vm1328_vm3, %v1327_v15 }
 0x1d1 PF: > { %vm1336_vm4 = vcmask 261120   ;;  %v4093_v23 = vld [vmem:[%s4604_s5] sm:$0xff]   ;;  %v4290_v24 = vmov 0.0   ;;  %vm4291_vm5 = vmmov 0   ;;  %v4094_v25 = vld [vmem:[%s4604_s5 + $0x8] sm:$0xff]   ;;  %s5193_s21 = sld [smem:[#allocation31_spill]] }
 0x1d2   : > { %3846 = vmatprep.subr.bf16.mxu0 %v4290_v24  ;;  %3850 = vmatprep.mubr.msk.bf16.mxu0 %vm4291_vm5, %v4290_v24  ;;  %s5195_s24 = sld [smem:[#allocation32_spill]]  ;;  %s5197_s16 = sld [smem:[#allocation34_spill]]  ;;  %vm1442_vm8 = vcmask 64512   ;;  %vm2121_vm10 = vcmask 130048   ;;  %vm2123_vm11 = vcmask 195584   ;;  %vm3263_vm2 = vcmask 523264  }
 0x1d3   : > { %3847 = vmatpush3.bf16.msra.mxu0 %v4093_v23  ;;  %3859 = vmatprep.subr.mxu1 %v4290_v24  ;;  %s4292_s18 = smov 64   ;;  %s4293_s7 = smov 96  }
 0x1d4   : > { %3848 = vmatprep.subr.bf16.mxu0 %v4290_v24  ;;  %3861 = vmatprep.mubr.msk.f32.mxu1 %vm4291_vm5, %v4290_v24  ;;  %s5199_s15 = sld [smem:[#allocation23_spill]]  ;;  %s4294_s8 = smov 88  }
 0x1d5   : > { %s4295_s30 = smov 120   ;;  %s4296_s4 = smov 80  }
 0x1d6   : > { %s4297_s9 = smov 112   ;;  %s4300_s11 = smov 48  }
 0x1d7   : > { %v4692_v16 = vld [vmem:[#allocation2] sm:$0xff]  ;;  %3849 = vmatpush3.bf16.msra.mxu0 %v4094_v25  ;;  %s5194_s22 = scalar_lea.vmem %s5193_s21, %s4571_s6  ;;  %s5200_s21 = sld [smem:[#allocation30_spill]] }
 0x1d8   : > { %v1337_v17 = vsel %vm1336_vm4, %v4692_v16, 0.0  ;;  %3854 = vmatprep.subr.mxu0 %v4290_v24  ;;  %v3707_v35 = vld [vmem:[%s5194_s22] ss:$0 sm:$0xff]  ;;  %s5196_s29 = scalar_lea.vmem %s5195_s24, %s4571_s6  ;;  %s5198_s1 = scalar_lea.vmem %s5197_s16, %s4571_s6 }
 0x1d9   : > { %1338 = vadd.xlane.f32.xlu0 %v1337_v17  ;;  %v3708_v37 = vld [vmem:[%s5196_s29] ss:$0 sm:$0xff]  ;;  %s4298_s24 = smov 72   ;;  %s4299_s29 = smov 104  }
 0x1da   : > { %v3709_v41 = vld [vmem:[%s5198_s1] ss:$0 sm:$0xff]  ;;  %s4301_s12 = smov 40   ;;  %s4302_s16 = smov 56  }
 0x1db   : > { %s4303_s1 = smov 8   ;;  %s4305_s5 = smov 24  }
 0x1dd   : > { %s5201_s22 = scalar_lea.vmem %s5200_s21, %s5199_s15  ;;  %s5202_s21 = sld [smem:[#allocation36_spill]] }
 0x1de   : > { %v4747_v49 = vld [vmem:[%s5201_s22] sm:$0xff] }
 0x1df   : > { %vm1518_vm9 = vcmp.eq.s32.totalorder %v4747_v49, 0 }
 0x1e3   : > { %s5203_s22 = scalar_lea.vmem %s5202_s21, %s4571_s6  ;;  %s5212_s21 = sld [smem:[#allocation22_spill]] }
 0x266   : > { %v1339_v18 = vpop.xlane.xlu0 %1338 }
 0x267   : > { %v1341_v19 = vmul.f32 0.03125, %v1339_v18 }
 0x269   : > { %v1342_v20 = vsub.f32 %v4692_v16, %v1341_v19 }
 0x26b   : > { %v1343_v21 = vmul.f32 %v1342_v20, %v1342_v20 }
 0x26d   : > { %v1344_v22 = vsel %vm1336_vm4, %v1343_v21, 0.0 }
 0x26e   : > { %1345 = vadd.xlane.f32.xlu0 %v1344_v22 }
 0x2fb   : > { %v1346_v26 = vpop.xlane.xlu0 %1345 }
 0x2fc   : > { %v1347_v27 = vmul.f32 0.032258064, %v1346_v26 }
 0x2fe   : > { %4109 = vrsqrt.f32 %v1347_v27  ;;  %vm1350_vm6 = vcmp.eq.f32.partialorder %v1347_v27, inf  ;;  %v1353_v30 = vand.u32 2147483648, %v1347_v27  ;;  %vm1352_vm7 = vcmp.eq.f32.partialorder %v1347_v27, 0.0 }
 0x308   : > { %v4110_v28 = vpop.eup %4109 }
 0x309   : > { %v1349_v29 = vmul.f32 %v4110_v28, %v1347_v27 }
 0x30b   : > { %v1351_v31 = vsel %vm1350_vm6, %v1347_v27, %v1349_v29 }
 0x30c   : > { %v1354_v32 = vsel %vm1352_vm7, %v1353_v30, %v1351_v31 }
 0x30d   : > { %v1355_v33 = vadd.f32 1e-06, %v1354_v32 }
 0x30f   : > { %4111 = vrcp.f32 %v1355_v33 }
 0x319   : > { %v4112_v34 = vpop.eup %4111 }
 0x31a   : > { %v1357_v36 = vmul.f32 %v4112_v34, %v1342_v20 }
 0x31c   : > { %v1364_v38 = vmul.f32 %v3707_v35, %v1357_v36 }
 0x31e   : > { %v1371_v39 = vadd.f32 %v3708_v37, %v1364_v38 }
 0x320   : > { %v1372_v40 = vpack.c.bf16 %v1371_v39, %v1371_v39 }
 0x322   : > { %3851 = vmatmul.mubr.msk.bf16.vlgmr.msra.gmra.mrb[0].mxu0 %vm1336_vm4, %v1372_v40 }
 0x323   : > { %3856 = vmatprep.mubr.msk.f32.mxu0 %vm4291_vm5, %v4290_v24 }
 0x3f5   : > { %v1433_v42 = vpop.f32.mrb[0].mxu0 }
 0x3f6   : > { %v4726_v43 = vadd.f32 %v3709_v41, %v1433_v42  ;;  %v3852_v44 = vpop.f32.mrb[1].mxu0 }
 0x3f7   : > { %v1436_v45 = vpop.f32.mrb[2].mxu0 }
 0x3f8   : > { %1531 = vrot.lane.b32.xlu0 %v4726_v43, %s4292_s18  ;;  %1440 = vrot.lane.b32.xlu1 %v4726_v43, %s4293_s7  ;;  %v3853_v46 = vpop.f32.mrb[3].mxu0  ;;  %s4304_s18 = smov 16  }
 0x3fc   : > { %1609 = vrot.lane.b32.xlu0 %v4726_v43, %s4294_s8 }
 0x400   : > { %1607 = vrot.lane.b32.xlu0 %v4726_v43, %s4295_s30 }
 0x46a   : > { %v1532_v47 = vpop.permute.xlu0 %1531  ;;  %v1441_v48 = vpop.permute.xlu1 %1440 }
 0x46b   : > { %3855 = vmatpush3.xpose.msk.msra.mxu0 %vm1442_vm8, %v1441_v48  ;;  %3860 = vmatpush3.msra.mxu1 %v1532_v47 }
 0x46c   : > { %3864 = vmatprep.subr.mxu1 %v4290_v24  ;;  %3869 = vmatprep.subr.mxu0 %v4290_v24 }
 0x46e   : > { %3857 = vmatmul.mubr.msk.f32.vlgmr.msra.gmra.mrb[4].mxu0 %vm1442_vm8, %v4726_v43  ;;  %v1610_v60 = vpop.permute.xlu0 %1609 }
 0x46f   : > { %3871 = vmatprep.mubr.msk.f32.mxu0 %vm4291_vm5, %v4290_v24 }
 0x472   : > { %v1608_v61 = vpop.permute.xlu0 %1607 }
 0x541   : > { %v1513_v50 = vpop.f32.mrb[4].mxu0 }
 0x542   : > { %v1517_v51 = vmul.f32 0.35355338, %v1513_v50  ;;  %v3858_v52 = vpop.f32.mrb[5].mxu0 }
 0x543   : > { %v4096_v52 = vld [vmem:[%s4613_s3 + $0x8] sm:$0xff]  }
 0x544   : > { %v1519_v53 = vsel %vm1518_vm9, -1e+09, %v1517_v51  ;;  %v4095_v51 = vld [vmem:[%s4613_s3] sm:$0xff]  }
 0x545   : > { %v1520_v54 = vsel %vm1442_vm8, %v1519_v53, -inf }
 0x546   : > { %1521 = vmax.xlane.f32.xlu1 %v1520_v54 }
 0x557   : > { %1776 = vrot.lane.b32.xlu1 %v4726_v43, %s4296_s4 }
 0x5d3   : > { %v1522_v55 = vpop.xlane.xlu1 %1521 }
 0x5d4   : > { %v1523_v56 = vsub.f32 %v1519_v53, %v1522_v55 }
 0x5d6   : > { %v1524_v57 = vmul.f32 1.442695, %v1523_v56 }
 0x5d7   : > { %v1777_v2 = vpop.permute.xlu1 %1776 }
 0x5d8   : > { %4113 = vpow2.f32 %v1524_v57 }
 0x5e2   : > { %v4114_v58 = vpop.eup %4113 }
 0x5e3   : > { %v1526_v59 = vsel %vm1442_vm8, %v4114_v58, 0.0 }
 0x5e4   : > { %1527 = vadd.xlane.f32.xlu0 %v1526_v59 }
 0x5fa   : > { %1774 = vrot.lane.b32.xlu0 %v4726_v43, %s4297_s9 }
 0x5fe   : > { %1943 = vrot.lane.b32.xlu0 %v4726_v43, %s4298_s24 }
 0x602   : > { %1941 = vrot.lane.b32.xlu0 %v4726_v43, %s4299_s29 }
 0x671   : > { %v1528_v62 = vpop.xlane.xlu0 %1527 }
 0x672   : > { %4115 = vrcp.f32 %v1528_v62 }
 0x675   : > { %v1775_v1 = vpop.permute.xlu0 %1774 }
 0x679   : > { %v1944_v3 = vpop.permute.xlu0 %1943 }
 0x67c   : > { %v4116_v63 = vpop.eup %4115 }
 0x67d   : > { %v1530_v0 = vmul.f32 %v4116_v63, %v4114_v58  ;;  %v1942_v4 = vpop.permute.xlu0 %1941 }
 0x67f   : > { %3862 = vmatmul.mubr.msk.f32.vlgmr.msra.gmra.mrb[0].mxu1 %vm1442_vm8, %v1530_v0 }
 0x680   : > { %3865 = vmatpush3.xpose.msk.msra.mxu1 %vm1442_vm8, %v1610_v60  ;;  %3866 = vmatprep.mubr.msk.f32.mxu1 %vm4291_vm5, %v4290_v24 }
 0x681   : > { %3874 = vmatprep.subr.mxu1 %v4290_v24 }
 0x683   : > { %3867 = vmatmul.mubr.msk.f32.vlgmr.msra.gmra.mrb[2].mxu1 %vm1442_vm8, %v1608_v61 }
 0x684   : > { %3875 = vmatpush3.xpose.msk.msra.mxu1 %vm1442_vm8, %v1777_v2  ;;  %3876 = vmatprep.mubr.msk.f32.mxu1 %vm4291_vm5, %v4290_v24  ;;  %v3725_v2 = vld [vmem:[%s5203_s22] ss:$0 sm:$0xff] }
 0x685   : > { %3884 = vmatprep.subr.mxu1 %v4290_v24 }
 0x687   : > { %3877 = vmatmul.mubr.msk.f32.vlgmr.msra.gmra.mrb[4].mxu1 %vm1442_vm8, %v1775_v1 }
 0x688   : > { %3885 = vmatpush3.xpose.msk.msra.mxu1 %vm1442_vm8, %v1944_v3  ;;  %3886 = vmatprep.mubr.msk.f32.mxu1 %vm4291_vm5, %v4290_v24 }
 0x689   : > { %3894 = vmatprep.subr.bf16.mxu1 %v4290_v24 }
 0x68b   : > { %3887 = vmatmul.mubr.msk.f32.vlgmr.msra.gmra.mrb[6].mxu1 %vm1442_vm8, %v1942_v4 }
 0x68c   : > { %3898 = vmatprep.mubr.msk.bf16.mxu1 %vm4291_vm5, %v4290_v24  ;;  %3895 = vmatpush3.bf16.msra.mxu1 %v4095_v51 }
 0x68d   : > { %3896 = vmatprep.subr.bf16.mxu1 %v4290_v24 }
 0x690   : > { %3897 = vmatpush3.bf16.msra.mxu1 %v4096_v52 }
 0x691   : > { %3910 = vmatprep.subr.bf16.mxu1 %v4290_v24 }
 0x752   : > { %v4780_v5 = vpop.f32.mrb[0].mxu1 }
 0x753   : > { %v3863_v6 = vpop.f32.mrb[1].mxu1 }
 0x756   : > { %v1681_v7 = vpop.f32.mrb[2].mxu1 }
 0x757   : > { %v1685_v8 = vmul.f32 0.35355338, %v1681_v7  ;;  %v3868_v9 = vpop.f32.mrb[3].mxu1 }
 0x759   : > { %v1686_v10 = vsel %vm1518_vm9, -1e+09, %v1685_v8 }
 0x75a   : > { %v1848_v11 = vpop.f32.mrb[4].mxu1  ;;  %v1687_v12 = vsel %vm1442_vm8, %v1686_v10, -inf }
 0x75b   : > { %v1852_v13 = vmul.f32 0.35355338, %v1848_v11  ;;  %1688 = vmax.xlane.f32.xlu0 %v1687_v12  ;;  %v3878_v14 = vpop.f32.mrb[5].mxu1 }
 0x75d   : > { %v1853_v15 = vsel %vm1518_vm9, -1e+09, %v1852_v13 }
 0x75e   : > { %v2015_v17 = vpop.f32.mrb[6].mxu1  ;;  %v1854_v18 = vsel %vm1442_vm8, %v1853_v15, -inf }
 0x75f   : > { %v2019_v19 = vmul.f32 0.35355338, %v2015_v17  ;;  %1855 = vmax.xlane.f32.xlu1 %v1854_v18  ;;  %v3888_v20 = vpop.f32.mrb[7].mxu1  ;;  %v4099_v17 = vld [vmem:[%s4630_s23] sm:$0xff]   ;;  %v4098_v18 = vld [vmem:[%s4639_s0 + $0x8] sm:$0xff]  }
 0x761   : > { %v2020_v21 = vsel %vm1518_vm9, -1e+09, %v2019_v19  ;;  %v4100_v19 = vld [vmem:[%s4630_s23 + $0x8] sm:$0xff]  }
 0x762   : > { %v2021_v22 = vsel %vm1442_vm8, %v2020_v21, -inf }
 0x763   : > { %2022 = vmax.xlane.f32.xlu0 %v2021_v22 }
 0x770   : > { %1865 = vrot.lane.b32.xlu1 %v4726_v43, %s4300_s11  ;;  %s5208_s11 = scalar_lea.vmem %s5077_s13, %s4571_s6 }
 0x7e8   : > { %v1689_v23 = vpop.xlane.xlu0 %1688 }
 0x7e9   : > { %v1690_v25 = vsub.f32 %v1686_v10, %v1689_v23 }
 0x7eb   : > { %v1691_v26 = vmul.f32 1.442695, %v1690_v25 }
 0x7ec   : > { %v1856_v27 = vpop.xlane.xlu1 %1855 }
 0x7ed   : > { %4117 = vpow2.f32 %v1691_v26  ;;  %v1857_v28 = vsub.f32 %v1853_v15, %v1856_v27  ;;  %v4097_v15 = vld [vmem:[%s4639_s0] sm:$0xff]  }
 0x7ef   : > { %v1858_v29 = vmul.f32 1.442695, %v1857_v28 }
 0x7f0   : > { %v2023_v30 = vpop.xlane.xlu0 %2022  ;;  %v1866_v40 = vpop.permute.xlu1 %1865 }
 0x7f1   : > { %4119 = vpow2.f32 %v1858_v29  ;;  %v2024_v31 = vsub.f32 %v2020_v21, %v2023_v30 }
 0x7f3   : > { %v2025_v32 = vmul.f32 1.442695, %v2024_v31 }
 0x7f5   : > { %4121 = vpow2.f32 %v2025_v32 }
 0x7f7   : > { %v4118_v33 = vpop.eup %4117 }
 0x7f8   : > { %v1693_v34 = vsel %vm1442_vm8, %v4118_v33, 0.0 }
 0x7f9   : > { %1694 = vadd.xlane.f32.xlu0 %v1693_v34 }
 0x7fb   : > { %v4120_v35 = vpop.eup %4119 }
 0x7fc   : > { %v1860_v36 = vsel %vm1442_vm8, %v4120_v35, 0.0 }
 0x7fd   : > { %1861 = vadd.xlane.f32.xlu0 %v1860_v36 }
 0x7ff   : > { %v4122_v37 = vpop.eup %4121 }
 0x800   : > { %v2027_v38 = vsel %vm1442_vm8, %v4122_v37, 0.0 }
 0x801   : > { %2028 = vadd.xlane.f32.xlu1 %v2027_v38 }
 0x812   : > { %2032 = vrot.lane.b32.xlu1 %v4726_v43, %s4301_s12 }
 0x813   : > { %1698 = vrot.lane.b32.xlu0 %v4726_v43, %s4302_s16  ;;  %s5204_s16 = sld [smem:[#allocation28_spill]] }
 0x819   : > { %s5205_s3 = scalar_lea.vmem %s5204_s16, %s5199_s15  ;;  %s5206_s15 = sld [smem:[#allocation37_spill]] }
 0x81f   : > { %s5207_s27 = scalar_lea.vmem %s5206_s15, %s4571_s6  ;;  %s5210_s15 = sld [smem:[#allocation39_spill]] }
 0x820   : > { %v3729_v31 = vld [vmem:[%s5207_s27] ss:$0 sm:$0xff] }
 0x825   : > { %s5211_s27 = scalar_lea.vmem %s5210_s15, %s4571_s6 }
 0x886   : > { %v1695_v39 = vpop.xlane.xlu0 %1694 }
 0x887   : > { %4123 = vrcp.f32 %v1695_v39 }
 0x88a   : > { %v1862_v41 = vpop.xlane.xlu0 %1861 }
 0x88b   : > { %4125 = vrcp.f32 %v1862_v41 }
 0x88e   : > { %v2029_v42 = vpop.xlane.xlu1 %2028  ;;  %v1699_v44 = vpop.permute.xlu0 %1698 }
 0x88f   : > { %4127 = vrcp.f32 %v2029_v42  ;;  %3870 = vmatpush3.msra.mxu0 %v1699_v44 }
 0x890   : > { %3879 = vmatprep.subr.mxu0 %v4290_v24 }
 0x891   : > { %v4124_v45 = vpop.eup %4123 }
 0x892   : > { %v1697_v46 = vmul.f32 %v4124_v45, %v4118_v33  ;;  %v2033_v48 = vpop.permute.xlu1 %2032  ;;  %v3730_v33 = vld [vmem:[%s5208_s11] ss:$0 sm:$0xff] }
 0x893   : > { %v3731_v45 = vld [vmem:[%s5211_s27] ss:$0 sm:$0xff] }
 0x894   : > { %3872 = vmatmul.mubr.msk.f32.vlgmr.msra.gmra.mrb[6].mxu0 %vm1442_vm8, %v1697_v46 }
 0x895   : > { %v4126_v47 = vpop.eup %4125  ;;  %3880 = vmatpush3.msra.mxu0 %v1866_v40  ;;  %3881 = vmatprep.mubr.msk.f32.mxu0 %vm4291_vm5, %v4290_v24 }
 0x896   : > { %v1864_v43 = vmul.f32 %v4126_v47, %v4120_v35  ;;  %3889 = vmatprep.subr.mxu0 %v4290_v24 }
 0x898   : > { %3882 = vmatmul.mubr.msk.f32.vlgmr.msra.gmra.mrb[8].mxu0 %vm1442_vm8, %v1864_v43 }
 0x899   : > { %v4128_v49 = vpop.eup %4127  ;;  %3890 = vmatpush3.msra.mxu0 %v2033_v48  ;;  %3891 = vmatprep.mubr.msk.f32.mxu0 %vm4291_vm5, %v4290_v24 }
 0x89a   : > { %v2031_v50 = vmul.f32 %v4128_v49, %v4122_v37  ;;  %3902 = vmatprep.subr.bf16.mxu0 %v4290_v24 }
 0x89c   : > { %3892 = vmatmul.mubr.msk.f32.vlgmr.msra.gmra.mrb[10].mxu0 %vm1442_vm8, %v2031_v50 }
 0x89d   : > { %3906 = vmatprep.mubr.msk.bf16.mxu0 %vm4291_vm5, %v4290_v24  ;;  %3903 = vmatpush3.bf16.msra.mxu0 %v4099_v17 }
 0x89e   : > { %3904 = vmatprep.subr.bf16.mxu0 %v4290_v24 }
 0x8a1   : > { %3905 = vmatpush3.bf16.msra.mxu0 %v4100_v19 }
 0x8a2   : > { %3918 = vmatprep.subr.mxu0 %v4290_v24 }
 0x967   : > { %v1770_v53 = vpop.f32.mrb[6].mxu0 }
 0x968   : > { %2109 = vrot.lane.b32.xlu1 %v1770_v53, %s4303_s1  ;;  %v3873_v54 = vpop.f32.mrb[7].mxu0 }
 0x96b   : > { %v1937_v55 = vpop.f32.mrb[8].mxu0 }
 0x96c   : > { %2113 = vrot.lane.b32.xlu0 %v1937_v55, %s4304_s18  ;;  %v3883_v56 = vpop.f32.mrb[9].mxu0  ;;  %v2442_v55 = vlaneseq }
 0x96f   : > { %v2104_v57 = vpop.f32.mrb[10].mxu0 }
 0x970   : > { %2117 = vrot.lane.b32.xlu1 %v2104_v57, %s4305_s5  ;;  %v3893_v58 = vpop.f32.mrb[11].mxu0  ;;  %v2443_v57 = vshrl.u32 %v2442_v55, 7 }
 0x972   : > { %v2444_v58 = vsub.s32 0, %v2443_v57 }
 0x9da   : > { %v2110_v59 = vpop.permute.xlu1 %2109 }
 0x9db   : > { %v2120_v61 = vsel %vm1442_vm8, %v4780_v5, %v2110_v59  ;;  %v4306_v59 = vmov 0  }
 0x9de   : > { %v2114_v60 = vpop.permute.xlu0 %2113 }
 0x9df   : > { %v2122_v62 = vsel %vm2121_vm10, %v2120_v61, %v2114_v60 }
 0x9e2   : > { %v2118_v63 = vpop.permute.xlu1 %2117 }
 0x9e3   : > { %v2124_v0 = vsel %vm2123_vm11, %v2122_v62, %v2118_v63 }
 0x9e4   : > { %v2125_v1 = vpack.c.bf16 %v2124_v0, %v2124_v0 }
 0x9e6   : > { %3899 = vmatmul.mubr.msk.bf16.vlgmr.msra.gmra.mrb[8].mxu1 %vm1336_vm4, %v2125_v1 }
 0x9e7   : > { %3914 = vmatprep.mubr.msk.bf16.mxu1 %vm4291_vm5, %v4290_v24  ;;  %3911 = vmatpush3.bf16.msra.mxu1 %v4097_v15 }
 0x9e8   : > { %3912 = vmatprep.subr.bf16.mxu1 %v4290_v24 }
 0x9eb   : > { %3913 = vmatpush3.bf16.msra.mxu1 %v4098_v18 }
 0x9ec   : > { %3928 = vmatprep.subr.mxu1 %v4290_v24 }
 0xab9   : > { %v2186_v3 = vpop.f32.mrb[8].mxu1 }
 0xaba   : > { %v2187_v4 = vadd.f32 %v3725_v2, %v2186_v3  ;;  %v3900_v5 = vpop.f32.mrb[9].mxu1 }
 0xabb   : > { %v2189_v6 = vpop.f32.mrb[10].mxu1 }
 0xabc   : > { %v4829_v7 = vadd.f32 %v2187_v4, %v4692_v16  ;;  %v3901_v8 = vpop.f32.mrb[11].mxu1  ;;  %v1333_v16 = vld [vmem:[%s5205_s3] sm:$0xff]  ;;  %s5209_s3 = scalar_lea.vmem %s5081_s17, %s4571_s6 }
 0xabd   : > { %v2296_v20 = vpack.c.bf16 %v1333_v16, %v1333_v16  ;;  %v3735_v37 = vld [vmem:[%s5209_s3] ss:$0 sm:$0xff] }
 0xabe   : > { %v2195_v9 = vsel %vm1336_vm4, %v4829_v7, 0.0 }
 0xabf   : > { %2196 = vadd.xlane.f32.xlu0 %v2195_v9  ;;  %3915 = vmatmul.mubr.msk.bf16.vlgmr.msra.gmra.mrb[12].mxu1 %vm1336_vm4, %v2296_v20 }
 0xac0   : > { %3930 = vmatprep.mubr.msk.f32.mxu1 %vm4291_vm5, %v4290_v24 }
 0xb4c   : > { %v2197_v10 = vpop.xlane.xlu0 %2196 }
 0xb4d   : > { %v2198_v11 = vmul.f32 0.03125, %v2197_v10 }
 0xb4f   : > { %v2199_v12 = vsub.f32 %v4829_v7, %v2198_v11 }
 0xb51   : > { %v2200_v13 = vmul.f32 %v2199_v12, %v2199_v12 }
 0xb53   : > { %v2201_v14 = vsel %vm1336_vm4, %v2200_v13, 0.0 }
 0xb54   : > { %2202 = vadd.xlane.f32.xlu1 %v2201_v14 }
 0xb92   : > { %v2357_v38 = vpop.f32.mrb[12].mxu1 }
 0xb93   : > { %v4869_v39 = vadd.f32 %v3735_v37, %v2357_v38  ;;  %v3916_v40 = vpop.f32.mrb[13].mxu1 }
 0xb94   : > { %v2360_v41 = vpop.f32.mrb[14].mxu1 }
 0xb95   : > { %2537 = vrot.lane.b32.xlu0 %v4869_v39, %s4295_s30  ;;  %v3917_v42 = vpop.f32.mrb[15].mxu1 }
 0xb99   : > { %2704 = vrot.lane.b32.xlu0 %v4869_v39, %s4297_s9 }
 0xb9d   : > { %2871 = vrot.lane.b32.xlu0 %v4869_v39, %s4299_s29 }
 0xbe1   : > { %v2203_v21 = vpop.xlane.xlu1 %2202 }
 0xbe2   : > { %v2204_v22 = vmul.f32 0.032258064, %v2203_v21 }
 0xbe4   : > { %4129 = vrsqrt.f32 %v2204_v22  ;;  %vm2207_vm12 = vcmp.eq.f32.partialorder %v2204_v22, inf  ;;  %v2210_v26 = vand.u32 2147483648, %v2204_v22  ;;  %vm2209_vm13 = vcmp.eq.f32.partialorder %v2204_v22, 0.0 }
 0xbee   : > { %v4130_v23 = vpop.eup %4129 }
 0xbef   : > { %v2206_v25 = vmul.f32 %v4130_v23, %v2204_v22 }
 0xbf1   : > { %v2208_v27 = vsel %vm2207_vm12, %v2204_v22, %v2206_v25 }
 0xbf2   : > { %v2211_v28 = vsel %vm2209_vm13, %v2210_v26, %v2208_v27 }
 0xbf3   : > { %v2212_v29 = vadd.f32 1e-06, %v2211_v28 }
 0xbf5   : > { %4131 = vrcp.f32 %v2212_v29 }
 0xbff   : > { %v4132_v30 = vpop.eup %4131 }
 0xc00   : > { %v2214_v32 = vmul.f32 %v4132_v30, %v2199_v12 }
 0xc02   : > { %v2221_v34 = vmul.f32 %v3729_v31, %v2214_v32 }
 0xc04   : > { %v2228_v35 = vadd.f32 %v3730_v33, %v2221_v34 }
 0xc06   : > { %v2229_v36 = vpack.c.bf16 %v2228_v35, %v2228_v35 }
 0xc07   : > { %v2538_v44 = vpop.permute.xlu0 %2537 }
 0xc08   : > { %3907 = vmatmul.mubr.msk.bf16.vlgmr.msra.gmra.mrb[12].mxu0 %vm1336_vm4, %v2229_v36  ;;  %3929 = vmatpush3.xpose.msk.msra.mxu1 %vm1442_vm8, %v2538_v44 }
 0xc09   : > { %3920 = vmatprep.mubr.msk.f32.mxu0 %vm4291_vm5, %v4290_v24  ;;  %3919 = vmatpush3.xpose.msk.msra.mxu0 %vm1442_vm8, %v4869_v39 }
 0xc0a   : > { %3923 = vmatprep.subr.mxu0 %v4290_v24  ;;  %3938 = vmatprep.subr.mxu1 %v4290_v24 }
 0xc0b   : > { %v2705_v50 = vpop.permute.xlu0 %2704 }
 0xc0f   : > { %v2872_v53 = vpop.permute.xlu0 %2871 }
 0xcdb   : > { %v2290_v46 = vpop.f32.mrb[12].mxu0 }
 0xcdc   : > { %v2291_v47 = vadd.f32 %v3731_v45, %v2290_v46  ;;  %v3908_v43 = vpop.f32.mrb[13].mxu0 }
 0xcdd   : > { %v2293_v48 = vpop.f32.mrb[14].mxu0 }
 0xcde   : > { %2535 = vrot.lane.b32.xlu1 %v2291_v47, %s4295_s30  ;;  %v3909_v49 = vpop.f32.mrb[15].mxu0  ;;  %3921 = vmatmul.mubr.msk.f32.vlgmr.msra.gmra.mrb[16].mxu0 %vm1442_vm8, %v2291_v47 }
 0xcdf   : > { %3925 = vmatprep.mubr.msk.f32.mxu0 %vm4291_vm5, %v4290_v24 }
 0xce2   : > { %2702 = vrot.lane.b32.xlu1 %v2291_v47, %s4297_s9 }
 0xce6   : > { %2869 = vrot.lane.b32.xlu1 %v2291_v47, %s4299_s29  ;;  %s5213_s29 = sld [smem:[#allocation29_spill]] }
 0xcec   : > { %s5214_s22 = scalar_lea.vmem %s5213_s29, %s5212_s21 }
 0xced   : > { %v1331_v56 = vld [vmem:[%s5214_s22] sm:$0x1] }
 0xcee   : > { %vm2440_vm14 = vcmp.eq.s32.totalorder %v1331_v56, 0 }
 0xcef   : > { %v2441_v60 = vsel %vm2440_vm14, 1, %v4306_v59 }
 0xcf0   : > { %v2445_v61 = vrot.slane %v2441_v60, %v2444_v58 }
 0xcf2   : > { %vm2446_vm15 = vcmp.eq.s32.totalorder %v2445_v61, 1 }
 0xd50   : > { %v2536_v51 = vpop.permute.xlu1 %2535 }
 0xd51   : > { %3931 = vmatmul.mubr.msk.f32.vlgmr.msra.gmra.mrb[16].mxu1 %vm1442_vm8, %v2536_v51 }
 0xd52   : > { %3939 = vmatpush3.xpose.msk.msra.mxu1 %vm1442_vm8, %v2705_v50  ;;  %3940 = vmatprep.mubr.msk.f32.mxu1 %vm4291_vm5, %v4290_v24 }
 0xd53   : > { %3948 = vmatprep.subr.mxu1 %v4290_v24 }
 0xd54   : > { %v2703_v52 = vpop.permute.xlu1 %2702 }
 0xd55   : > { %3941 = vmatmul.mubr.msk.f32.vlgmr.msra.gmra.mrb[18].mxu1 %vm1442_vm8, %v2703_v52 }
 0xd56   : > { %3949 = vmatpush3.xpose.msk.msra.mxu1 %vm1442_vm8, %v2872_v53  ;;  %3950 = vmatprep.mubr.msk.f32.mxu1 %vm4291_vm5, %v4290_v24 }
 0xd57   : > { %3958 = vmatprep.subr.bf16.mxu1 %v4290_v24 }
 0xd58   : > { %v2870_v54 = vpop.permute.xlu1 %2869 }
 0xd59   : > { %3951 = vmatmul.mubr.msk.f32.vlgmr.msra.gmra.mrb[20].mxu1 %vm1442_vm8, %v2870_v54 }
 0xd5a   : > { %3962 = vmatprep.mubr.msk.bf16.mxu1 %vm4291_vm5, %v4290_v24 }
 0xdb1   : > { %v2435_v62 = vpop.f32.mrb[16].mxu0 }
 0xdb2   : > { %v2439_v63 = vmul.f32 0.35355338, %v2435_v62  ;;  %v3922_v0 = vpop.f32.mrb[17].mxu0 }
 0xdb4   : > { %v2447_v1 = vsel %vm2446_vm15, -1e+09, %v2439_v63 }
 0xdb5   : > { %v2448_v2 = vsel %vm1442_vm8, %v2447_v1, -inf }
 0xdb6   : > { %2449 = vmax.xlane.f32.xlu0 %v2448_v2 }
 0xe24   : > { %v2609_v3 = vpop.f32.mrb[16].mxu1 }
 0xe25   : > { %v2613_v4 = vmul.f32 0.35355338, %v2609_v3  ;;  %v3932_v5 = vpop.f32.mrb[17].mxu1 }
 0xe27   : > { %v2614_v6 = vsel %vm2446_vm15, -1e+09, %v2613_v4 }
 0xe28   : > { %v2776_v8 = vpop.f32.mrb[18].mxu1  ;;  %v2615_v9 = vsel %vm1442_vm8, %v2614_v6, -inf }
 0xe29   : > { %v2780_v10 = vmul.f32 0.35355338, %v2776_v8  ;;  %2616 = vmax.xlane.f32.xlu1 %v2615_v9  ;;  %v3942_v11 = vpop.f32.mrb[19].mxu1 }
 0xe2b   : > { %v2781_v12 = vsel %vm2446_vm15, -1e+09, %v2780_v10 }
 0xe2c   : > { %v2943_v13 = vpop.f32.mrb[20].mxu1  ;;  %v2782_v14 = vsel %vm1442_vm8, %v2781_v12, -inf }
 0xe2d   : > { %v2947_v15 = vmul.f32 0.35355338, %v2943_v13  ;;  %v3952_v17 = vpop.f32.mrb[21].mxu1  ;;  %2783 = vmax.xlane.f32.xlu0 %v2782_v14 }
 0xe2f   : > { %v2948_v18 = vsel %vm2446_vm15, -1e+09, %v2947_v15 }
 0xe30   : > { %v2949_v16 = vsel %vm1442_vm8, %v2948_v18, -inf }
 0xe31   : > { %2950 = vmax.xlane.f32.xlu0 %v2949_v16 }
 0xe43   : > { %v2450_v19 = vpop.xlane.xlu0 %2449 }
 0xe44   : > { %v2451_v20 = vsub.f32 %v2447_v1, %v2450_v19 }
 0xe46   : > { %v2452_v21 = vmul.f32 1.442695, %v2451_v20 }
 0xe48   : > { %4133 = vpow2.f32 %v2452_v21 }
 0xe52   : > { %v4134_v22 = vpop.eup %4133 }
 0xe53   : > { %v2454_v23 = vsel %vm1442_vm8, %v4134_v22, 0.0 }
 0xe54   : > { %2455 = vadd.xlane.f32.xlu0 %v2454_v23  ;;  %v4103_v23 = vld [vmem:[%s4665_s2] sm:$0xff]  }
 0xeb6   : > { %v2617_v25 = vpop.xlane.xlu1 %2616 }
 0xeb7   : > { %v2618_v26 = vsub.f32 %v2614_v6, %v2617_v25  ;;  %v4104_v25 = vld [vmem:[%s4665_s2 + $0x8] sm:$0xff]  }
 0xeb9   : > { %v2619_v27 = vmul.f32 1.442695, %v2618_v26  ;;  %v4105_v26 = vld [vmem:[%s4679_s20] sm:$0xff]  }
 0xeba   : > { %v2784_v28 = vpop.xlane.xlu0 %2783 }
 0xebb   : > { %4135 = vpow2.f32 %v2619_v27  ;;  %v2785_v29 = vsub.f32 %v2781_v12, %v2784_v28 }
 0xebd   : > { %v2786_v30 = vmul.f32 1.442695, %v2785_v29 }
 0xebe   : > { %v2951_v35 = vpop.xlane.xlu0 %2950 }
 0xebf   : > { %4137 = vpow2.f32 %v2786_v30  ;;  %v2952_v36 = vsub.f32 %v2948_v18, %v2951_v35 }
 0xec1   : > { %v2953_v37 = vmul.f32 1.442695, %v2952_v36 }
 0xec3   : > { %4139 = vpow2.f32 %v2953_v37 }
 0xec5   : > { %v4136_v31 = vpop.eup %4135 }
 0xec6   : > { %v2621_v32 = vsel %vm1442_vm8, %v4136_v31, 0.0 }
 0xec7   : > { %2622 = vadd.xlane.f32.xlu1 %v2621_v32 }
 0xec9   : > { %v4138_v33 = vpop.eup %4137 }
 0xeca   : > { %v2788_v34 = vsel %vm1442_vm8, %v4138_v33, 0.0 }
 0xecb   : > { %2789 = vadd.xlane.f32.xlu0 %v2788_v34 }
 0xecd   : > { %v4140_v38 = vpop.eup %4139 }
 0xece   : > { %v2955_v40 = vsel %vm1442_vm8, %v4140_v38, 0.0 }
 0xed8   : > { %2626 = vrot.lane.b32.xlu1 %v4869_v39, %s4294_s8 }
 0xedc   : > { %2793 = vrot.lane.b32.xlu1 %v4869_v39, %s4296_s4 }
 0xee1   : > { %2459 = vrot.lane.b32.xlu0 %v4869_v39, %s4293_s7  ;;  %v2456_v41 = vpop.xlane.xlu0 %2455  ;;  %s5215_s7 = sld [smem:[#allocation24_spill]] }
 0xee2   : > { %4141 = vrcp.f32 %v2456_v41 }
 0xee7   : > { %v4101_v56 = vld [vmem:[%s5215_s7] sm:$0xff]   ;;  %v4102_v63 = vld [vmem:[%s5215_s7 + $0x8] sm:$0xff]  }
 0xee8   : > { %3959 = vmatpush3.bf16.msra.mxu1 %v4101_v56 }
 0xee9   : > { %3960 = vmatprep.subr.bf16.mxu1 %v4290_v24 }
 0xeec   : > { %v4142_v45 = vpop.eup %4141  ;;  %3961 = vmatpush3.bf16.msra.mxu1 %v4102_v63 }
 0xeed   : > { %v2458_v46 = vmul.f32 %v4142_v45, %v4134_v22  ;;  %3974 = vmatprep.subr.bf16.mxu1 %v4290_v24  ;;  %v4108_v45 = vld [vmem:[%s4679_s20 + $0x18] sm:$0xff]  }
 0xf00   : > { %2956 = vadd.xlane.f32.xlu1 %v2955_v40 }
 0xf11   : > { %2960 = vrot.lane.b32.xlu1 %v4869_v39, %s4298_s24  ;;  %s5216_s24 = sld [smem:[#allocation42_spill]] }
 0xf54   : > { %v2623_v42 = vpop.xlane.xlu1 %2622 }
 0xf55   : > { %4143 = vrcp.f32 %v2623_v42 }
 0xf58   : > { %v2790_v44 = vpop.xlane.xlu0 %2789  ;;  %v2627_v47 = vpop.permute.xlu1 %2626 }
 0xf59   : > { %4145 = vrcp.f32 %v2790_v44  ;;  %v4107_v44 = vld [vmem:[%s4679_s20 + $0x10] sm:$0xff]  }
 0xf5c   : > { %v2460_v43 = vpop.permute.xlu0 %2459  ;;  %v2794_v49 = vpop.permute.xlu1 %2793 }
 0xf5d   : > { %3924 = vmatpush3.msra.mxu0 %v2460_v43 }
 0xf5e   : > { %3926 = vmatmul.mubr.msk.f32.vlgmr.msra.gmra.mrb[18].mxu0 %vm1442_vm8, %v2458_v46  ;;  %3933 = vmatprep.subr.mxu0 %v4290_v24  ;;  %v3757_v46 = vld [vmem:[%s1227_s26] ss:$0 sm:$0xff] }
 0xf5f   : > { %v4144_v48 = vpop.eup %4143  ;;  %3934 = vmatpush3.msra.mxu0 %v2627_v47  ;;  %3935 = vmatprep.mubr.msk.f32.mxu0 %vm4291_vm5, %v4290_v24 }
 0xf60   : > { %v2625_v39 = vmul.f32 %v4144_v48, %v4136_v31  ;;  %3943 = vmatprep.subr.mxu0 %v4290_v24 }
 0xf62   : > { %3936 = vmatmul.mubr.msk.f32.vlgmr.msra.gmra.mrb[20].mxu0 %vm1442_vm8, %v2625_v39 }
 0xf63   : > { %v4146_v50 = vpop.eup %4145  ;;  %3944 = vmatpush3.msra.mxu0 %v2794_v49  ;;  %3945 = vmatprep.mubr.msk.f32.mxu0 %vm4291_vm5, %v4290_v24 }
 0xf64   : > { %v2792_v51 = vmul.f32 %v4146_v50, %v4138_v33  ;;  %3953 = vmatprep.subr.mxu0 %v4290_v24 }
 0xf66   : > { %3946 = vmatmul.mubr.msk.f32.vlgmr.msra.gmra.mrb[22].mxu0 %vm1442_vm8, %v2792_v51 }
 0xf67   : > { %3955 = vmatprep.mubr.msk.f32.mxu0 %vm4291_vm5, %v4290_v24 }
 0xf8d   : > { %v2957_v52 = vpop.xlane.xlu1 %2956 }
 0xf8e   : > { %4147 = vrcp.f32 %v2957_v52 }
 0xf91   : > { %v2961_v53 = vpop.permute.xlu1 %2960 }
 0xf92   : > { %3954 = vmatpush3.msra.mxu0 %v2961_v53 }
 0xf93   : > { %3966 = vmatprep.subr.bf16.mxu0 %v4290_v24 }
 0xf98   : > { %v4148_v54 = vpop.eup %4147 }
 0xf99   : > { %v2959_v55 = vmul.f32 %v4148_v54, %v4140_v38  ;;  %v3756_v38 = vld [vmem:[%s1219_s14] ss:$0 sm:$0xff] }
 0xf9b   : > { %3956 = vmatmul.mubr.msk.f32.vlgmr.msra.gmra.mrb[24].mxu0 %vm1442_vm8, %v2959_v55 }
 0xf9c   : > { %3970 = vmatprep.mubr.msk.bf16.mxu0 %vm4291_vm5, %v4290_v24  ;;  %3967 = vmatpush3.bf16.msra.mxu0 %v4103_v23 }
 0xf9d   : > { %3968 = vmatprep.subr.bf16.mxu0 %v4290_v24 }
 0xfa0   : > { %3969 = vmatpush3.bf16.msra.mxu0 %v4104_v25 }
0x1031   : > { %v2531_v57 = vpop.f32.mrb[18].mxu0 }
0x1032   : > { %v3927_v58 = vpop.f32.mrb[19].mxu0 }
0x1035   : > { %v2698_v59 = vpop.f32.mrb[20].mxu0 }
0x1036   : > { %3037 = vrot.lane.b32.xlu0 %v2698_v59, %s4303_s1  ;;  %v3937_v60 = vpop.f32.mrb[21].mxu0  ;;  %s5217_s1 = scalar_lea.vmem %s5216_s24, %s4571_s6 }
0x1037   : > { %v3751_v10 = vld [vmem:[%s5217_s1] ss:$0 sm:$0xff] }
0x1039   : > { %v2865_v61 = vpop.f32.mrb[22].mxu0 }
0x103a   : > { %3041 = vrot.lane.b32.xlu1 %v2865_v61, %s4304_s18  ;;  %v3947_v62 = vpop.f32.mrb[23].mxu0 }
0x106e   : > { %v3032_v0 = vpop.f32.mrb[24].mxu0 }
0x106f   : > { %3045 = vrot.lane.b32.xlu0 %v3032_v0, %s4305_s5  ;;  %v3957_v1 = vpop.f32.mrb[25].mxu0  ;;  %s5218_s5 = sld [smem:[#allocation43_spill]] }
0x1075   : > { %s5219_s11 = scalar_lea.vmem %s5218_s5, %s4571_s6 }
0x1076   : > { %v3755_v36 = vld [vmem:[%s5219_s11] ss:$0 sm:$0xff] }
0x10a8   : > { %v3038_v2 = vpop.permute.xlu0 %3037 }
0x10a9   : > { %v3048_v4 = vsel %vm1442_vm8, %v2531_v57, %v3038_v2 }
0x10ac   : > { %v3042_v3 = vpop.permute.xlu1 %3041 }
0x10ad   : > { %v3049_v5 = vsel %vm2121_vm10, %v3048_v4, %v3042_v3 }
0x10e1   : > { %v3046_v6 = vpop.permute.xlu0 %3045 }
0x10e2   : > { %v3050_v8 = vsel %vm2123_vm11, %v3049_v5, %v3046_v6 }
0x10e3   : > { %v3051_v9 = vpack.c.bf16 %v3050_v8, %v3050_v8 }
0x10e5   : > { %3963 = vmatmul.mubr.msk.bf16.vlgmr.msra.gmra.mrb[24].mxu1 %vm1336_vm4, %v3051_v9 }
0x10e6   : > { %3982 = vmatprep.mubr.msk.bf16.mxu1 %vm4291_vm5, %v4290_v24  ;;  %3975 = vmatpush3.bf16.msra.mxu1 %v4105_v26 }
0x10e7   : > { %3976 = vmatprep.subr.bf16.mxu1 %v4290_v24 }
0x11b8   : > { %v3112_v11 = vpop.f32.mrb[24].mxu1 }
0x11b9   : > { %v3113_v12 = vadd.f32 %v3751_v10, %v3112_v11  ;;  %v3964_v13 = vpop.f32.mrb[25].mxu1 }
0x11ba   : > { %v3115_v14 = vpop.f32.mrb[26].mxu1 }
0x11bb   : > { %v3118_v15 = vadd.f32 %v3113_v12, %v4829_v7  ;;  %v3965_v17 = vpop.f32.mrb[27].mxu1  ;;  %v4106_v7 = vld [vmem:[%s4679_s20 + $0x8] sm:$0xff]   ;;  %s5223_s20 = sld [smem:[#allocation12_spill]] }
0x11bc   : > { %3977 = vmatpush3.bf16.msra.mxu1 %v4106_v7 }
0x11bd   : > { %v3121_v18 = vsel %vm1336_vm4, %v3118_v15, 0.0  ;;  %3978 = vmatprep.subr.bf16.mxu1 %v4290_v24 }
0x11be   : > { %3122 = vadd.xlane.f32.xlu1 %v3121_v18 }
0x11c0   : > { %3979 = vmatpush3.bf16.msra.mxu1 %v4107_v44 }
0x11c1   : > { %3980 = vmatprep.subr.bf16.mxu1 %v4290_v24  ;;  %v3761_v24 = vld [vmem:[%s1235_s19] ss:$0 sm:$0xff]  ;;  %p3767_p13 = scmp.ne.s32.totalorder %s5223_s20, 1 }
0x11c2   : > { %s5224_s26 = sld [smem:[#allocation49_spill]] (!%p3767_p13)  ;;  %v3769_v12 = vld [vmem:[#allocation3] ss:$0 sm:$0xff] (!%p3767_p13) }
0x11c4   : > { %3981 = vmatpush3.bf16.msra.mxu1 %v4108_v45 }
0x11c8   : > { %v3768_v10 = vld [vmem:[%s5224_s26] ss:$0 sm:$0xff] (!%p3767_p13) }
0x124b   : > { %v3123_v16 = vpop.xlane.xlu1 %3122 }
0x124c   : > { %v3124_v19 = vmul.f32 0.03125, %v3123_v16 }
0x124e   : > { %v3125_v20 = vsub.f32 %v3118_v15, %v3124_v19 }
0x1250   : > { %v3126_v21 = vmul.f32 %v3125_v20, %v3125_v20 }
0x1252   : > { %v3127_v22 = vsel %vm1336_vm4, %v3126_v21, 0.0 }
0x1253   : > { %3128 = vadd.xlane.f32.xlu0 %v3127_v22 }
0x12e0   : > { %v3129_v27 = vpop.xlane.xlu0 %3128 }
0x12e1   : > { %v3130_v28 = vmul.f32 0.032258064, %v3129_v27 }
0x12e3   : > { %4149 = vrsqrt.f32 %v3130_v28  ;;  %vm3133_vm0 = vcmp.eq.f32.partialorder %v3130_v28, inf  ;;  %v3136_v31 = vand.u32 2147483648, %v3130_v28  ;;  %vm3135_vm1 = vcmp.eq.f32.partialorder %v3130_v28, 0.0 }
0x12ed   : > { %v4150_v29 = vpop.eup %4149 }
0x12ee   : > { %v3132_v30 = vmul.f32 %v4150_v29, %v3130_v28 }
0x12f0   : > { %v3134_v32 = vsel %vm3133_vm0, %v3130_v28, %v3132_v30 }
0x12f1   : > { %v3137_v33 = vsel %vm3135_vm1, %v3136_v31, %v3134_v32 }
0x12f2   : > { %v3138_v34 = vadd.f32 1e-06, %v3137_v33 }
0x12f4   : > { %4151 = vrcp.f32 %v3138_v34 }
0x12fe   : > { %v4152_v35 = vpop.eup %4151 }
0x12ff   : > { %v3140_v37 = vmul.f32 %v4152_v35, %v3125_v20 }
0x1301   : > { %v3147_v40 = vmul.f32 %v3755_v36, %v3140_v37 }
0x1303   : > { %v3154_v41 = vadd.f32 %v3756_v38, %v3147_v40 }
0x1305   : > { %v3155_v42 = vpack.c.bf16 %v3154_v41, %v3154_v41 }
0x1307   : > { %3971 = vmatmul.mubr.msk.bf16.vlgmr.msra.gmra.mrb[28].mxu0 %vm1336_vm4, %v3155_v42 }
0x13da   : > { %v3216_v47 = vpop.f32.mrb[28].mxu0 }
0x13db   : > { %v3217_v43 = vadd.f32 %v3757_v46, %v3216_v47  ;;  %v3972_v48 = vpop.f32.mrb[29].mxu0 }
0x13dc   : > { %v3219_v39 = vpop.f32.mrb[30].mxu0 }
0x13dd   : > { %v3222_v49 = vmax.f32 %v3217_v43, 0.0  ;;  %v3973_v50 = vpop.f32.mrb[31].mxu0 }
0x13df   : > { %v3223_v51 = vpack.c.bf16 %v3222_v49, %v3222_v49 }
0x13e1   : > { %3983 = vmatmul.mubr.msk.bf16.vlgmr.msra.gmra.mrb[28].mxu1 %vm3263_vm2, %v3223_v51 }
0x14b3   : > { %3312 = sbr.rel (%p3767_p13) target bundleno = 5634 (0x1602), region = 144 }
0x14b4   : > { %v3301_v52 = vpop.f32.mrb[28].mxu1 }
0x14b5   : > { %v3302_v53 = vadd.f32 %v3761_v24, %v3301_v52  ;;  %v3984_v54 = vpop.f32.mrb[29].mxu1 }
0x14b6   : > { %v3304_v55 = vpop.f32.mrb[30].mxu1 }
0x14b7   : > { %v3307_v56 = vadd.f32 %v3302_v53, %v3118_v15  ;;  %v3985_v57 = vpop.f32.mrb[31].mxu1 }
0x14b9   : > { %3308 = vst.msk [vmem:[#allocation2] sm:$0xff] %vm1336_vm4, %v3307_v56  ;;  %v3315_v58 = vsel (!%p3767_p13), %vm1336_vm4, %v3307_v56, 0.0 }
0x14ba   : > { %3316 = vadd.xlane.f32.xlu0 %v3315_v58 }
0x1547   : > { %v3317_v59 = vpop.xlane.xlu0 %3316 }
0x1548   : > { %v3318_v60 = vmul.f32 0.03125, %v3317_v59 }
0x154a   : > { %v3319_v61 = vsub.f32 %v3307_v56, %v3318_v60 }
0x154c   : > { %v3320_v62 = vmul.f32 %v3319_v61, %v3319_v61 }
0x154e   : > { %v3321_v63 = vsel %vm1336_vm4, %v3320_v62, 0.0 }
0x154f   : > { %3322 = vadd.xlane.f32.xlu0 %v3321_v63 }
0x15dc   : > { %v3323_v0 = vpop.xlane.xlu0 %3322 }
0x15dd   : > { %v3324_v1 = vmul.f32 0.032258064, %v3323_v0 }
0x15df   : > { %4153 = vrsqrt.f32 %v3324_v1  ;;  %vm3327_vm3 = vcmp.eq.f32.partialorder %v3324_v1, inf  ;;  %v3330_v4 = vand.u32 2147483648, %v3324_v1  ;;  %vm3329_vm5 = vcmp.eq.f32.partialorder %v3324_v1, 0.0 }
0x15e9   : > { %v4154_v2 = vpop.eup %4153 }
0x15ea   : > { %v3326_v3 = vmul.f32 %v4154_v2, %v3324_v1 }
0x15ec   : > { %v3328_v5 = vsel %vm3327_vm3, %v3324_v1, %v3326_v3 }
0x15ed   : > { %v3331_v6 = vsel %vm3329_vm5, %v3330_v4, %v3328_v5 }
0x15ee   : > { %v3332_v8 = vadd.f32 1e-06, %v3331_v6 }
0x15f0   : > { %4155 = vrcp.f32 %v3332_v8 }
0x15fa   : > { %v4156_v9 = vpop.eup %4155 }
0x15fb   : > { %v3334_v11 = vmul.f32 %v4156_v9, %v3319_v61 }
0x15fd   : > { %v3341_v13 = vmul.f32 %v3768_v10, %v3334_v11 }
0x15ff   : > { %v3348_v14 = vadd.f32 %v3769_v12, %v3341_v13 }
0x1601   : > { %3349 = vst.msk [vmem:[%s1146_s25] sm:$0xff] %vm1336_vm4, %v3348_v14 }
0x1602 PF: > { %s5225_s30 = sld [smem:[#allocation13_spill]]  ;;  %s5226_s9 = sld [smem:[#allocation10_spill]] }
0x1603   : > { %s5227_s29 = sld [smem:[#allocation18_spill]]  ;;  %s5228_s4 = sld [smem:[#allocation51_spill]] }
0x1604   : > { %s3364_s1 = sshll.u32 %s1146_s25, 4  ;;  %s4307_s11 = smov [#allocation6]   ;;  %s3365_s1 = int_to_ptr.vmem [resolvable:$true] %s3364_s1 }
0x1605   : > { %s4185_s5 = scalar_lea.vmem %s3365_s1, 128  ;;  %s4189_s12 = sshll.u32 %s4307_s11, 4  ;;  %s4190_s12 = int_to_ptr.vmem [resolvable:$false] %s4189_s12 }
0x1606   : > { %p4186_p0 = scmp.ne.s32.totalorder %s3365_s1, %s4185_s5  ;;  %s4191_s16 = scalar_lea.vmem %s4190_s12, 256 }
0x1607   : > { %p4192_p7 = scmp.lt.s32.totalorder %s3365_s1, %s4190_s12  ;;  %p4193_p8 = scmp.lt.s32.totalorder %s4191_s16, %s4185_s5 }
0x1608   : > { %s3771_s22 = sshll.u32 %s5225_s30, 7  ;;  %s5229_s2 = sand.u32 1, %s5226_s9  }
0x1609   : > { %s5013_s24 = scalar_lea.hbm %s5228_s4, %s3771_s22  ;;  %s3351_s18 = scalar_lea.sflag [#allocation5], %s5229_s2 }
0x160a   : > { %p5230_p2 = scmp.ne.s32.totalorder %s5227_s29, 0  ;;  %p4194_p11 = por %p4193_p8, %p4192_p7 }
0x160c   : > { %p4187_p5 = pnand %p4186_p0, %p5230_p2 }
0x160e   : > { %p4188_p6 = pneg %p4187_p5 }
0x1610   : > { %p4195_p12 = pnand %p4194_p11, %p4188_p6 }
0x1612   : > { %4198 = shalt.err (!%p4195_p12)
}
0x1613   : > { %s4199_s10 = scalar_lea.hbm %s5013_s24, 128  ;;  %s4203_s23 = scalar_lea.hbm %s5228_s4, 256 }
0x1614   : > { %p4200_p1 = scmp.ne.s32.totalorder %s5013_s24, %s4199_s10  ;;  %p4204_p9 = scmp.lt.u32.totalorder %s5013_s24, %s5228_s4 }
0x1615   : > { %p4205_p10 = scmp.lt.u32.totalorder %s4203_s23, %s4199_s10  ;;  %p4207_p0 = scmp.lt.u32.totalorder %s4199_s10, %s5013_s24 }
0x1616   : > { %p4201_p4 = pnand %p4200_p1, %p5230_p2 }
0x1617   : > { %p4206_p13 = por %p4205_p10, %p4204_p9 }
0x1618   : > { %p4202_p3 = pneg %p4201_p4 }
0x1619   : > { %p4208_p5 = por %p4207_p0, %p4206_p13 }
0x161b   : > { %p4209_p6 = pnand %p4208_p5, %p4202_p3 }
0x161d   : > { %4212 = shalt.err (!%p4209_p6)
}
0x161e   : > { %3993 = dma.vmem_to_hbm [thread:$0]  (%p5230_p2), %s3365_s1, 128, %s5013_s24, %s3351_s18  }
0x161f PF: > { %s5231_s14 = sld [smem:[#allocation16_spill]]  ;;  %s5232_s27 = sld [smem:[#allocation9_spill]] }
0x1620   : > { %s5233_s21 = sld [smem:[#allocation20_spill]] }
0x1625   : > { %p4005_p7 = scmp.ge.s32.totalorder %s5231_s14, 2  ;;  %s3376_s20 = sand.u32 1, %s5232_s27  }
0x1626   : > { %p5234_p8 = scmp.ne.s32.totalorder %s5233_s21, 0  ;;  %s3377_s19 = scalar_lea.sflag [#allocation5], %s3376_s20 }
0x1628   : > { %p4000_p11 = pnand %p4005_p7, %p5234_p8 }
0x162a   : > { %4250 = dma.done.wait (!%p4000_p11), %s3377_s19, 128  }
0x162b   : > { %4252 = vsyncadd (!%p4000_p11), %s3377_s19, 4294967168  ;;  %s42_s0 = sadd.s32 1, %s5231_s14   ;;  %s5235_s8 = sld [smem:[#allocation10_spill]] }
0x162c   : > { %p39_p12 = scmp.ge.s32.totalorder %s42_s0, 6   ;;  %s5236_s5 = sld [smem:[#allocation11_spill]] }
0x162d   : > { %s5237_s9 = sld [smem:[#allocation21_spill]]  ;;  %s5238_s30 = sld [smem:[#allocation14_spill]] }
0x162e   : > { %s5239_s3 = sld [smem:[#allocation15_spill]]  ;;  %s5240_s6 = sld [smem:[#allocation17_spill]] }
0x162f   : > { %s5241_s10 = sld [smem:[#allocation19_spill]]  ;;  %41 = sbr.rel (!%p39_p12) target bundleno = 34 (0x22), region = 249 }
0x1636   :  { %3382 = vsyncpa [#allocation4], 1 }
0x1637   :  { %3384 = vsyncpa [#allocation4 + $0x1], 1 }
0x1638   :  { %3385 = vsyncpa [#allocation5], 1 }
0x1639   :  { %3387 = vsyncpa [#allocation5 + $0x1], 1 }

</bundles_post_ra>
